<compile_context>
chip_gen: v6e
topology: v6e:2x2x1
jax: 0.10.0
libtpu: 0.0.40
codegen_flags: <defaults>
</compile_context>

<pallas_src>
import jax
import jax.numpy as jnp
from jax.experimental import pallas as pl
from jax.experimental.pallas import tpu as pltpu

T, H, W, D = 8, 7, 7, 768
HW = H * W
N_TOKENS = 1 + T * HW  # 393


def head_kernel(x_ref, out_ref):
    # x_ref:  (bb, 1 + T*HW, d_blk)   raw tokens, D on the lane axis
    # out_ref:(bb, HW, d_blk)         mean over T, still lane-dense
    xs = [x_ref[:, pl.ds(1 + t * HW, HW), :].astype(jnp.float32) for t in range(T)]
    # Pairwise reduction tree (review item: avoid the serialized 8-deep add chain).
    while len(xs) > 1:
        nxt = [xs[i] + xs[i + 1] for i in range(0, len(xs) - 1, 2)]
        if len(xs) % 2:
            nxt.append(xs[-1])
        xs = nxt
    out_ref[...] = (xs[0] * (1.0 / T)).astype(out_ref.dtype)


def _device_profile():
    """(num_tensorcores, max_batch_block) for the local TPU generation."""
    try:
        kind = jax.devices()[0].device_kind.lower()
    except Exception:
        kind = ""
    if "v7" in kind:
        return 2, 8            # 2 TCs/chip; plenty of VMEM for 8-batch blocks
    if "v5 lite" in kind or "v5e" in kind:
        return 1, 4            # respect v5e's 16 MiB default scoped VMEM
    return 1, 8                # v6e and other single-TC chips


def _select_tiling(B, n_tc, max_bb):
    """Pick (batch_block, d_block). Full-D blocks unless v7x needs a D split."""
    if n_tc >= 2 and B == 1:
        return 1, D // 2                       # only way to feed both TCs at B == 1
    if n_tc >= 2:
        bb = min(max_bb, pl.cdiv(B, n_tc))     # >= n_tc parallel grid steps
    else:
        bb = min(max_bb, B)                    # fewest, largest steps on 1-TC chips
    return bb, D


def aclassification_head(x):
    """x: (B, 1 + T*H*W, D) -> (B, D, H, W), matching the torch head."""
    B, N, Dx = x.shape
    assert N == N_TOKENS and Dx == D, (N, Dx)

    n_tc, max_bb = _device_profile()
    bb, d_blk = _select_tiling(B, n_tc, max_bb)
    grid = (pl.cdiv(B, bb), D // d_blk)

    itemsize = jnp.dtype(x.dtype).itemsize
    in_blk_bytes = bb * N_TOKENS * d_blk * itemsize
    out_blk_bytes = bb * HW * d_blk * itemsize
    # Double-buffered input + output blocks, plus headroom; clamped well under the
    # v7x 64 MiB physical VMEM.
    vmem_limit = min(max(2 * (in_blk_bytes + out_blk_bytes) + (4 << 20), 16 << 20),
                     48 << 20)

    cost = pl.CostEstimate(
        flops=B * T * HW * D,                                   # the T-sum adds
        transcendentals=0,
        bytes_accessed=B * N_TOKENS * D * itemsize + B * HW * D * itemsize,
    )

    # Lane-dense (B, HW, D) output; its row-major flat order equals the torch
    # (c, hw) flat order, so the reshape below is a pure flat reinterpretation.
    mean_tok = pl.pallas_call(
        head_kernel,
        out_shape=jax.ShapeDtypeStruct((B, HW, D), x.dtype),
        grid=grid,
        in_specs=[pl.BlockSpec((bb, N_TOKENS, d_blk), lambda b, j: (b, 0, j))],
        out_specs=pl.BlockSpec((bb, HW, d_blk), lambda b, j: (b, 0, j)),
        compiler_params=pltpu.CompilerParams(
            dimension_semantics=("parallel", "parallel"),
            vmem_limit_bytes=int(vmem_limit)),
        cost_estimate=cost,
    )(x)

    # NOTE: the torch `reshape(-1, 8, 768, 7, 7)` reinterprets each (49, 768) token
    # slab's flat bytes as (768, 7, 7); keep this exact semantics — do NOT "fix" it
    # into a transpose.  Because of that reinterpretation, the per-channel cls
    # broadcast is NOT a per-lane broadcast in the kernel layout, so it cannot be
    # fused into the kernel without changing results; it is done here, in one
    # expression, so XLA fuses it with the single unavoidable retiling copy to NCHW.
    out = mean_tok.reshape(B, D, H, W)                      # exact torch bit-reshape
    return out + x[:, 0, :][:, :, None, None]               # mean_T(tok + cls) == mean_T(tok) + cls


def reference_head(x):
    B = x.shape[0]
    out = x[:, 1:, :].reshape(B, T, D, H, W)
    cls = x[:, 0, :].reshape(B, 1, D, 1, 1)
    return jnp.mean(out + cls, axis=1)


if __name__ == "__main__":
    key = jax.random.PRNGKey(0)
    B = 2
    # Stand-in for the MViTv2 feature extractor output: (B, 1 + 8*7*7, 768).
    x = jax.random.normal(key, (B, N_TOKENS, D), dtype=jnp.float32)

    out = jax.jit(aclassification_head)(x)
    out = jax.block_until_ready(out)

    ref = reference_head(x)
    assert out.shape == (B, D, H, W), out.shape
    assert jnp.allclose(out, ref, atol=1e-5, rtol=1e-5), "mismatch vs reference"

    print("KERNEL_OK")
</pallas_src>

<mosaic_0001>
module attributes {stable_mosaic.version = 11 : i64} {
  func.func @head_kernel(%arg0: i32, %arg1: i32, %arg2: memref<2x393x768xf32, #tpu.memory_space<vmem>>, %arg3: memref<2x49x768xf32, #tpu.memory_space<vmem>>) attributes {dimension_semantics = [#tpu.dimension_semantics<parallel>, #tpu.dimension_semantics<parallel>], iteration_bounds = array<i64: 1, 1>, scalar_prefetch = 0 : i64, scratch_operands = 0 : i64, tpu.core_type = #tpu.core_type<tc>, window_params = [{transform_indices = @transform_0, window_bounds = array<i64: 2, 393, 768>}, {transform_indices = @transform_1, window_bounds = array<i64: 2, 49, 768>}]} {
    %c0 = arith.constant 0 : index
    %c1 = arith.constant 1 : index
    %c0_0 = arith.constant 0 : index
    %0 = vector.load %arg2[%c0, %c1, %c0_0] : memref<2x393x768xf32, #tpu.memory_space<vmem>>, vector<2x49x768xf32>
    %c0_1 = arith.constant 0 : index
    %c50 = arith.constant 50 : index
    %c0_2 = arith.constant 0 : index
    %1 = vector.load %arg2[%c0_1, %c50, %c0_2] : memref<2x393x768xf32, #tpu.memory_space<vmem>>, vector<2x49x768xf32>
    %c0_3 = arith.constant 0 : index
    %c99 = arith.constant 99 : index
    %c0_4 = arith.constant 0 : index
    %2 = vector.load %arg2[%c0_3, %c99, %c0_4] : memref<2x393x768xf32, #tpu.memory_space<vmem>>, vector<2x49x768xf32>
    %c0_5 = arith.constant 0 : index
    %c148 = arith.constant 148 : index
    %c0_6 = arith.constant 0 : index
    %3 = vector.load %arg2[%c0_5, %c148, %c0_6] : memref<2x393x768xf32, #tpu.memory_space<vmem>>, vector<2x49x768xf32>
    %c0_7 = arith.constant 0 : index
    %c197 = arith.constant 197 : index
    %c0_8 = arith.constant 0 : index
    %4 = vector.load %arg2[%c0_7, %c197, %c0_8] : memref<2x393x768xf32, #tpu.memory_space<vmem>>, vector<2x49x768xf32>
    %c0_9 = arith.constant 0 : index
    %c246 = arith.constant 246 : index
    %c0_10 = arith.constant 0 : index
    %5 = vector.load %arg2[%c0_9, %c246, %c0_10] : memref<2x393x768xf32, #tpu.memory_space<vmem>>, vector<2x49x768xf32>
    %c0_11 = arith.constant 0 : index
    %c295 = arith.constant 295 : index
    %c0_12 = arith.constant 0 : index
    %6 = vector.load %arg2[%c0_11, %c295, %c0_12] : memref<2x393x768xf32, #tpu.memory_space<vmem>>, vector<2x49x768xf32>
    %c0_13 = arith.constant 0 : index
    %c344 = arith.constant 344 : index
    %c0_14 = arith.constant 0 : index
    %7 = vector.load %arg2[%c0_13, %c344, %c0_14] : memref<2x393x768xf32, #tpu.memory_space<vmem>>, vector<2x49x768xf32>
    %8 = arith.addf %0, %1 : vector<2x49x768xf32>
    %9 = arith.addf %2, %3 : vector<2x49x768xf32>
    %10 = arith.addf %4, %5 : vector<2x49x768xf32>
    %11 = arith.addf %6, %7 : vector<2x49x768xf32>
    %12 = arith.addf %8, %9 : vector<2x49x768xf32>
    %13 = arith.addf %10, %11 : vector<2x49x768xf32>
    %14 = arith.addf %12, %13 : vector<2x49x768xf32>
    %cst = arith.constant 1.250000e-01 : f32
    %15 = vector.broadcast %cst : f32 to vector<2x49x768xf32>
    %16 = arith.mulf %14, %15 : vector<2x49x768xf32>
    %c0_15 = arith.constant 0 : index
    %c0_16 = arith.constant 0 : index
    %c0_17 = arith.constant 0 : index
    %17 = vector.load %arg3[%c0_15, %c0_16, %c0_17] : memref<2x49x768xf32, #tpu.memory_space<vmem>>, vector<2x49x768xf32>
    tpu.vector_store %arg3[%c0_15, %c0_16, %c0_17], %16 {strides = array<i32>} : memref<2x49x768xf32, #tpu.memory_space<vmem>>, vector<2x49x768xf32>,
    return
  }
  func.func @transform_0(%arg0: i32, %arg1: i32) -> (i32, i32, i32) {
    %c0_i32 = arith.constant 0 : i32
    %c0_i32_0 = arith.constant 0 : i32
    return %arg0, %c0_i32, %arg1 : i32, i32, i32
  }
  func.func @transform_1(%arg0: i32, %arg1: i32) -> (i32, i32, i32) {
    %c0_i32 = arith.constant 0 : i32
    %c0_i32_0 = arith.constant 0 : i32
    return %arg0, %c0_i32, %arg1 : i32, i32, i32
  }
}

</mosaic_0001>

<bundles_post_ra>
// kernel: aclassification_head.1
= control target key start
LH: loop header
LB: loop body
LE: loop exit
PB: predicated region body
PF: predicated region fallthrough
CT: control target
= control target key end

     0   :  { %vm764_vm0 = vcmask 1046528   ;;  %vm2397_vm1 = vcmask 1045504   ;;  %vm3214_vm2 = vcmask 1043456   ;;  %s9796_s0 = inlined_call_operand.vmem [shape: f32[2,393,768], index: 0, kind: input, shape index: {}]   ;;  %s9797_s1 = inlined_call_operand.vmem [shape: f32[2,49,768], index: 1, kind: output, shape index: {}]  }
   0x1   :  { %v92_v0 = vld [vmem:[%s9796_s0 + $0x120] sm:$0xfc]  ;;  %v98_v1 = vld [vmem:[%s9796_s0 + $0x150] sm:$0xff] }
   0x2   :  { %v4054_v2 = vld [vmem:[%s9796_s0 + $0x180] sm:$0xff]  ;;  %v765_v3 = vrot.slane %v92_v0, 1  ;;  %v766_v6 = vrot.slane %v98_v1, 1  ;;  %v266_v8 = vld [vmem:[%s9796_s0 + $0x390] sm:$0xff]  ;;  %v93_v0 = vld [vmem:[%s9796_s0 + $0x128] sm:$0xfc] }
   0x3   :  { %v8_v4 = vld [vmem:[%s9796_s0] sm:$0xfe]  ;;  %v9830_v7 = vrot.slane %v4054_v2, 1  ;;  %v4072_v10 = vld [vmem:[%s9796_s0 + $0x3f0] sm:$0xff]  ;;  %v1174_v15 = vrot.slane %v266_v8, 1 }
   0x4   :  { %v260_v5 = vld [vmem:[%s9796_s0 + $0x360] sm:$0xf0]  ;;  %v182_v13 = vld [vmem:[%s9796_s0 + $0x270] sm:$0xff]  ;;  %v767_v14 = vsel %vm764_vm0, %v765_v3, %v766_v6  ;;  %v9829_v21 = vrot.slane %v4072_v10, 1 }
   0x5   :  { %v272_v9 = vld [vmem:[%s9796_s0 + $0x3c0] sm:$0xff]  ;;  %v1173_v11 = vrot.slane %v260_v5, 1  ;;  %v434_v18 = vld [vmem:[%s9796_s0 + $0x5d0] sm:$0xff]  ;;  %v784_v20 = vsel %vm764_vm0, %v766_v6, %v9830_v7  ;;  %v1005_v32 = vadd.f32 %v767_v14, %v8_v4  ;;  %v99_v6 = vld [vmem:[%s9796_s0 + $0x158] sm:$0xff] }
   0x6   :  { %v176_v12 = vld [vmem:[%s9796_s0 + $0x240] sm:$0xf8]  ;;  %v1191_v16 = vrot.slane %v272_v9, 1  ;;  %v14_v22 = vld [vmem:[%s9796_s0 + $0x30] sm:$0xff]  ;;  %v1582_v28 = vrot.slane %v434_v18, 1  ;;  %v267_v18 = vld [vmem:[%s9796_s0 + $0x398] sm:$0xff] }
   0x7   :  { %v428_v17 = vld [vmem:[%s9796_s0 + $0x5a0] sm:$0xc0]  ;;  %v4103_v24 = vld [vmem:[%s9796_s0 + $0x630] sm:$0xff]  ;;  %v1175_v25 = vsel %vm764_vm0, %v1173_v11, %v1174_v15  ;;  %v1011_v45 = vadd.f32 %v784_v20, %v14_v22 }
   0x8   :  { %v440_v19 = vld [vmem:[%s9796_s0 + $0x600] sm:$0xff]  ;;  %v1192_v26 = vsel %vm764_vm0, %v1174_v15, %v1191_v16  ;;  %v1581_v27 = vrot.slane %v428_v17, 1  ;;  %v596_v31 = vld [vmem:[%s9796_s0 + $0x810] sm:$0xff]  ;;  %v1204_v33 = vsel %vm764_vm0, %v1191_v16, %v9829_v21  ;;  %v1413_v34 = vadd.f32 %v1175_v25, %v176_v12  ;;  %v261_v17 = vld [vmem:[%s9796_s0 + $0x368] sm:$0xf0] }
   0x9   :  { %v188_v23 = vld [vmem:[%s9796_s0 + $0x2a0] sm:$0xff]  ;;  %v1599_v35 = vrot.slane %v440_v19, 1  ;;  %v608_v37 = vld [vmem:[%s9796_s0 + $0x870] sm:$0xff]  ;;  %v1419_v39 = vadd.f32 %v1192_v26, %v182_v13  ;;  %v9828_v41 = vrot.slane %v4103_v24, 1  ;;  %v1989_v42 = vrot.slane %v596_v31, 1  ;;  %v4172_v13 = vld [vmem:[%s9796_s0 + $0x188] sm:$0xff] }
   0xa   :  { %v344_v29 = vld [vmem:[%s9796_s0 + $0x480] sm:$0xe0]  ;;  %v1583_v40 = vsel %vm764_vm0, %v1581_v27, %v1582_v28  ;;  %v518_v43 = vld [vmem:[%s9796_s0 + $0x6f0] sm:$0xff]  ;;  %v4138_v46 = vadd.f32 %v1204_v33, %v188_v23  ;;  %v2007_v48 = vrot.slane %v608_v37, 1  ;;  %v2398_v59 = vrot.slane %v1413_v34, 2 }
   0xb   :  { %v512_v30 = vld [vmem:[%s9796_s0 + $0x6c0] sm:$0x80]  ;;  %v350_v49 = vld [vmem:[%s9796_s0 + $0x4b0] sm:$0xff]  ;;  %v1600_v51 = vsel %vm764_vm0, %v1582_v28, %v1599_v35  ;;  %v1821_v52 = vadd.f32 %v1583_v40, %v344_v29  ;;  %v1612_v56 = vsel %vm764_vm0, %v1599_v35, %v9828_v41  ;;  %v2399_v63 = vrot.slane %v1419_v39, 2  ;;  %v9_v25 = vld [vmem:[%s9796_s0 + $0x8] sm:$0xfe] }
   0xc   :  { %v602_v36 = vld [vmem:[%s9796_s0 + $0x840] sm:$0xff]  ;;  %v530_v50 = vld [vmem:[%s9796_s0 + $0x750] sm:$0xff]  ;;  %v2229_v54 = vadd.f32 %v1989_v42, %v512_v30  ;;  %v1827_v1 = vadd.f32 %v1600_v51, %v350_v49  ;;  %v9816_v4 = vrot.slane %v4138_v46, 2  ;;  %v768_v19 = vrot.slane %v93_v0, 1  ;;  %v15_v30 = vld [vmem:[%s9796_s0 + $0x38] sm:$0xff] }
   0xd   :  { %v4128_v38 = vld [vmem:[%s9796_s0 + $0x8a0] sm:$0xff]  ;;  %v1995_v47 = vrot.slane %v602_v36, 1  ;;  %v2400_v9 = vsel %vm2397_vm1, %v2398_v59, %v2399_v63  ;;  %v769_v26 = vrot.slane %v99_v6, 1  ;;  %v177_v31 = vld [vmem:[%s9796_s0 + $0x248] sm:$0xf8]  ;;  %v9825_v33 = vrot.slane %v4172_v13, 1 }
   0xe   :  { %v524_v44 = vld [vmem:[%s9796_s0 + $0x720] sm:$0xff]  ;;  %v9826_v53 = vrot.slane %v4128_v38, 1  ;;  %v2806_v5 = vrot.slane %v2229_v54, 2  ;;  %v2417_v14 = vsel %vm2397_vm1, %v2399_v63, %v9816_v4  ;;  %v2638_v15 = vadd.f32 %v2400_v9, %v1005_v32  ;;  %v273_v32 = vld [vmem:[%s9796_s0 + $0x3c8] sm:$0xff]  ;;  %v4207_v35 = vld [vmem:[%s9796_s0 + $0x3f8] sm:$0xff] }
   0xf   :  { %v356_v55 = vld [vmem:[%s9796_s0 + $0x4e0] sm:$0xff]  ;;  %v1996_v57 = vsel %vm764_vm0, %v1989_v42, %v1995_v47  ;;  %v2008_v58 = vsel %vm764_vm0, %v1995_v47, %v2007_v48  ;;  %v2644_v20 = vadd.f32 %v2417_v14, %v1011_v45  ;;  %v429_v36 = vld [vmem:[%s9796_s0 + $0x5a8] sm:$0xc0]  ;;  %v770_v37 = vsel %vm764_vm0, %v768_v19, %v769_v26  ;;  %v183_v49 = vld [vmem:[%s9796_s0 + $0x278] sm:$0xff] }
  0x10   :  { %v2020_v60 = vsel %vm764_vm0, %v2007_v48, %v9826_v53  ;;  %v2235_v61 = vadd.f32 %v1996_v57, %v518_v43  ;;  %v2241_v62 = vadd.f32 %v2008_v58, %v524_v44  ;;  %v1833_v8 = vadd.f32 %v1612_v56, %v356_v55  ;;  %v435_v44 = vld [vmem:[%s9796_s0 + $0x5d8] sm:$0xff]  ;;  %v189_v56 = vld [vmem:[%s9796_s0 + $0x2a8] sm:$0xff]  ;;  %v4724_v21 = vld [vmem:[%s9796_s0 + $0x8c0] sm:$0xff] }
  0x11   :  { %v4162_v3 = vadd.f32 %v2020_v60, %v530_v50  ;;  %v1176_v39 = vrot.slane %v261_v17, 1  ;;  %v1177_v40 = vrot.slane %v267_v18, 1  ;;  %v786_v45 = vsel %vm764_vm0, %v769_v26, %v9825_v33  ;;  %v441_v50 = vld [vmem:[%s9796_s0 + $0x608] sm:$0xff]  ;;  %v4238_v57 = vld [vmem:[%s9796_s0 + $0x638] sm:$0xff]  ;;  %10142 = vst [vmem:[#allocation6_spill] sm:$0xff] %v4724_v21 }
  0x12   :  { %v2807_v11 = vrot.slane %v2235_v61, 2  ;;  %v2824_v12 = vrot.slane %v2241_v62, 2  ;;  %v4219_v47 = vadd.f32 %v770_v37, %v9_v25  ;;  %v4228_v51 = vadd.f32 %v786_v45, %v15_v30  ;;  %v345_v63 = vld [vmem:[%s9796_s0 + $0x488] sm:$0xe0]  ;;  %v597_v0 = vld [vmem:[%s9796_s0 + $0x818] sm:$0xff] }
  0x13   :  { %v9815_v16 = vrot.slane %v4162_v3, 2  ;;  %v1193_v54 = vrot.slane %v273_v32, 1  ;;  %v9823_v58 = vrot.slane %v4207_v35, 1  ;;  %v1584_v60 = vrot.slane %v429_v36, 1  ;;  %v603_v9 = vld [vmem:[%s9796_s0 + $0x848] sm:$0xff]  ;;  %v609_v18 = vld [vmem:[%s9796_s0 + $0x878] sm:$0xff] }
  0x14   :  { %v2808_v22 = vsel %vm2397_vm1, %v2806_v5, %v2807_v11  ;;  %v2825_v23 = vsel %vm2397_vm1, %v2807_v11, %v2824_v12  ;;  %v1585_v5 = vrot.slane %v435_v44, 1  ;;  %v1601_v14 = vrot.slane %v441_v50, 1  ;;  %v357_v17 = vld [vmem:[%s9796_s0 + $0x4e8] sm:$0xff] }
  0x15   :  { %v2837_v27 = vsel %vm2397_vm1, %v2824_v12, %v9815_v16  ;;  %v3046_v28 = vadd.f32 %v2808_v22, %v1821_v52  ;;  %v3052_v29 = vadd.f32 %v2825_v23, %v1827_v1  ;;  %v1178_v52 = vsel %vm764_vm0, %v1176_v39, %v1177_v40  ;;  %v4269_v19 = vld [vmem:[%s9796_s0 + $0x8a8] sm:$0xff] }
  0x16   :  { %v4202_v34 = vadd.f32 %v2837_v27, %v1833_v8  ;;  %v1414_v59 = vadd.f32 %v1178_v52, %v177_v31  ;;  %v1194_v1 = vsel %vm764_vm0, %v1177_v40, %v1193_v54  ;;  %v351_v8 = vld [vmem:[%s9796_s0 + $0x4b8] sm:$0xff]  ;;  %v1206_v11 = vsel %vm764_vm0, %v1193_v54, %v9823_v58  ;;  %v513_v26 = vld [vmem:[%s9796_s0 + $0x6c8] sm:$0x80]  ;;  %v606_v58 = vld [vmem:[%s9796_s0 + $0x860] sm:$0xff] }
  0x17   :  { %v3215_v42 = vrot.slane %v3046_v28, 4  ;;  %v3216_v43 = vrot.slane %v3052_v29, 4  ;;  %v1420_v12 = vadd.f32 %v1194_v1, %v183_v49  ;;  %v1586_v22 = vsel %vm764_vm0, %v1584_v60, %v1585_v5  ;;  %v519_v31 = vld [vmem:[%s9796_s0 + $0x6f8] sm:$0xff]  ;;  %v525_v40 = vld [vmem:[%s9796_s0 + $0x728] sm:$0xff] }
  0x18   :  { %v9808_v48 = vrot.slane %v4202_v34, 4  ;;  %v9814_v23 = vrot.slane %v4238_v57, 1  ;;  %v1602_v27 = vsel %vm764_vm0, %v1585_v5, %v1601_v14  ;;  %v1822_v28 = vadd.f32 %v1586_v22, %v345_v63  ;;  %v10_v22 = vld [vmem:[%s9796_s0 + $0x10] sm:$0xfe] }
  0x19   :  { %v3217_v55 = vsel %vm3214_vm2, %v3215_v42, %v3216_v43  ;;  %v1990_v29 = vrot.slane %v597_v0, 1  ;;  %v1828_v36 = vadd.f32 %v1602_v27, %v351_v8  ;;  %v1997_v37 = vrot.slane %v603_v9, 1  ;;  %v531_v42 = vld [vmem:[%s9796_s0 + $0x758] sm:$0xff]  ;;  %v262_v8 = vld [vmem:[%s9796_s0 + $0x370] sm:$0xf0] }
  0x1a   :  { %v3234_v61 = vsel %vm3214_vm2, %v3216_v43, %v9808_v48  ;;  %v3455_v62 = vadd.f32 %v3217_v55, %v2638_v15  ;;  %v1614_v32 = vsel %vm764_vm0, %v1601_v14, %v9814_v23  ;;  %v2009_v44 = vrot.slane %v609_v18, 1  ;;  %v94_v55 = vld [vmem:[%s9796_s0 + $0x130] sm:$0xfc]  ;;  %v611_v48 = vld [vmem:[%s9796_s0 + $0x888] sm:$0xff] }
  0x1b   :  { %v3461_v6 = vadd.f32 %v3234_v61, %v2644_v20  ;;  %v4271_v20 = vadd.f32 %v1206_v11, %v189_v56  ;;  %v1834_v43 = vadd.f32 %v1614_v32, %v357_v17  ;;  %v9813_v45 = vrot.slane %v4269_v19, 1 }
  0x1c   :  { %v3539_v15 = vmul.f32 0.125, %v3455_v62  ;;  %v1998_v49 = vsel %vm764_vm0, %v1990_v29, %v1997_v37  ;;  %v2230_v50 = vadd.f32 %v1990_v29, %v513_v26  ;;  %v2401_v52 = vrot.slane %v1414_v59, 2  ;;  %v100_v59 = vld [vmem:[%s9796_s0 + $0x160] sm:$0xff] }
  0x1d   :  { %v4275_v25 = vmul.f32 0.125, %v3461_v6  ;;  %v2402_v54 = vrot.slane %v1420_v12, 2  ;;  %v2010_v60 = vsel %vm764_vm0, %v1997_v37, %v2009_v44  ;;  %v2022_v61 = vsel %vm764_vm0, %v2009_v44, %v9813_v45  ;;  %v4319_v6 = vld [vmem:[%s9796_s0 + $0x190] sm:$0xff]  ;;  %v4351_v44 = vld [vmem:[%s9796_s0 + $0x400] sm:$0xff] }
  0x1e   :  { %v3707_v30 = vrot.slane %v3539_v15, 1  ;;  %v2236_v62 = vadd.f32 %v1998_v49, %v519_v31  ;;  %v2242_v63 = vadd.f32 %v2010_v60, %v525_v40  ;;  %v4312_v0 = vadd.f32 %v2022_v61, %v531_v42  ;;  %v274_v31 = vld [vmem:[%s9796_s0 + $0x3d0] sm:$0xff] }
  0x1f   :  { %v9798_v39 = vrot.slane %v4275_v25, 1  ;;  %v2403_v1 = vsel %vm2397_vm1, %v2401_v52, %v2402_v54  ;;  %v9812_v5 = vrot.slane %v4271_v20, 2  ;;  %v2809_v11 = vrot.slane %v2230_v50, 2  ;;  %v430_v49 = vld [vmem:[%s9796_s0 + $0x5b0] sm:$0xc0] }
  0x20   :  { %v2639_v9 = vadd.f32 %v2403_v1, %v4219_v47  ;;  %v2810_v12 = vrot.slane %v2236_v62, 2  ;;  %v771_v14 = vrot.slane %v94_v55, 1  ;;  %v2826_v17 = vrot.slane %v2242_v63, 2  ;;  %v16_v47 = vld [vmem:[%s9796_s0 + $0x40] sm:$0xff] }
  0x21   :  { %v3709_v56 = vsel %vm764_vm0, %v3707_v30, %v9798_v39  ;;  %v2419_v15 = vsel %vm2397_vm1, %v2402_v54, %v9812_v5  ;;  %v9805_v18 = vrot.slane %v4312_v0, 2  ;;  %v772_v26 = vrot.slane %v100_v59, 1  ;;  %v268_v30 = vld [vmem:[%s9796_s0 + $0x3a0] sm:$0xff] }
  0x22   :  { %3947 = vst [vmem:[%s9797_s1] sm:$0xff] %v3709_v56  ;;  %v2645_v27 = vadd.f32 %v2419_v15, %v4228_v51  ;;  %v2811_v29 = vsel %vm2397_vm1, %v2809_v11, %v2810_v12  ;;  %v9809_v32 = vrot.slane %v4319_v6, 1  ;;  %v1179_v37 = vrot.slane %v262_v8, 1  ;;  %v436_v55 = vld [vmem:[%s9796_s0 + $0x5e0] sm:$0xff]  ;;  %v190_v11 = vld [vmem:[%s9796_s0 + $0x2b0] sm:$0xff] }
  0x23   :  { %v2827_v40 = vsel %vm2397_vm1, %v2810_v12, %v2826_v17  ;;  %v2839_v51 = vsel %vm2397_vm1, %v2826_v17, %v9805_v18  ;;  %v3047_v42 = vadd.f32 %v2811_v29, %v1822_v28  ;;  %v773_v50 = vsel %vm764_vm0, %v771_v14, %v772_v26  ;;  %v442_v28 = vld [vmem:[%s9796_s0 + $0x610] sm:$0xff]  ;;  %v184_v8 = vld [vmem:[%s9796_s0 + $0x280] sm:$0xff]  ;;  %v191_v18 = vld [vmem:[%s9796_s0 + $0x2b8] sm:$0xff] }
  0x24   :  { %v3053_v52 = vadd.f32 %v2827_v40, %v1828_v36  ;;  %v4357_v54 = vadd.f32 %v2839_v51, %v1834_v43  ;;  %v788_v56 = vsel %vm764_vm0, %v772_v26, %v9809_v32  ;;  %v4368_v60 = vadd.f32 %v773_v50, %v10_v22  ;;  %v178_v36 = vld [vmem:[%s9796_s0 + $0x250] sm:$0xf8]  ;;  %v4386_v15 = vld [vmem:[%s9796_s0 + $0x640] sm:$0xff] }
  0x25   :  { %v3218_v61 = vrot.slane %v3047_v42, 4  ;;  %v4373_v43 = vadd.f32 %v788_v56, %v16_v47  ;;  %v1180_v62 = vrot.slane %v268_v30, 1  ;;  %v1195_v59 = vrot.slane %v274_v31, 1  ;;  %v598_v17 = vld [vmem:[%s9796_s0 + $0x820] sm:$0xff]  ;;  %v346_v40 = vld [vmem:[%s9796_s0 + $0x490] sm:$0xe0] }
  0x26   :  { %v3219_v63 = vrot.slane %v3053_v52, 4  ;;  %v9799_v1 = vrot.slane %v4357_v54, 4  ;;  %v9807_v12 = vrot.slane %v4351_v44, 1  ;;  %v1587_v14 = vrot.slane %v430_v49, 1  ;;  %v352_v51 = vld [vmem:[%s9796_s0 + $0x4c0] sm:$0xff]  ;;  %v604_v52 = vld [vmem:[%s9796_s0 + $0x850] sm:$0xff] }
  0x27   :  { %v1181_v22 = vsel %vm764_vm0, %v1179_v37, %v1180_v62  ;;  %v1196_v26 = vsel %vm764_vm0, %v1180_v62, %v1195_v59  ;;  %v1588_v29 = vrot.slane %v436_v55, 1  ;;  %v1603_v47 = vrot.slane %v442_v28, 1  ;;  %v610_v55 = vld [vmem:[%s9796_s0 + $0x880] sm:$0xff]  ;;  %v4415_v28 = vld [vmem:[%s9796_s0 + $0x8b0] sm:$0xff] }
  0x28   :  { %v3220_v30 = vsel %vm3214_vm2, %v3218_v61, %v3219_v63  ;;  %v3236_v31 = vsel %vm3214_vm2, %v3219_v63, %v9799_v1  ;;  %v1208_v37 = vsel %vm764_vm0, %v1195_v59, %v9807_v12  ;;  %v1415_v42 = vadd.f32 %v1181_v22, %v178_v36  ;;  %v605_v12 = vld [vmem:[%s9796_s0 + $0x858] sm:$0xff] }
  0x29   :  { %v3456_v49 = vadd.f32 %v3220_v30, %v2639_v9  ;;  %v3462_v50 = vadd.f32 %v3236_v31, %v2645_v27  ;;  %v1421_v56 = vadd.f32 %v1196_v26, %v184_v8  ;;  %v4417_v61 = vadd.f32 %v1208_v37, %v190_v11  ;;  %v358_v9 = vld [vmem:[%s9796_s0 + $0x4f0] sm:$0xff]  ;;  %v520_v26 = vld [vmem:[%s9796_s0 + $0x700] sm:$0xff] }
  0x2a   :  { %v514_v27 = vld [vmem:[%s9796_s0 + $0x6d0] sm:$0x80]  ;;  %v1589_v36 = vsel %vm764_vm0, %v1587_v14, %v1588_v29  ;;  %v1604_v62 = vsel %vm764_vm0, %v1588_v29, %v1603_v47  ;;  %v9804_v59 = vrot.slane %v4386_v15, 1  ;;  %v1991_v63 = vrot.slane %v598_v17, 1  ;;  %v532_v14 = vld [vmem:[%s9796_s0 + $0x760] sm:$0xff] }
  0x2b   :  { %v3540_v22 = vmul.f32 0.125, %v3456_v49  ;;  %v4428_v30 = vmul.f32 0.125, %v3462_v50  ;;  %v1823_v8 = vadd.f32 %v1589_v36, %v346_v40  ;;  %v1829_v11 = vadd.f32 %v1604_v62, %v352_v51  ;;  %v526_v31 = vld [vmem:[%s9796_s0 + $0x730] sm:$0xff]  ;;  %v95_v62 = vld [vmem:[%s9796_s0 + $0x138] sm:$0xfc] }
  0x2c   :  { %v1616_v17 = vsel %vm764_vm0, %v1603_v47, %v9804_v59  ;;  %v1999_v29 = vrot.slane %v604_v52, 1  ;;  %v2011_v37 = vrot.slane %v610_v55, 1  ;;  %v9802_v40 = vrot.slane %v4415_v28, 1  ;;  %v101_v55 = vld [vmem:[%s9796_s0 + $0x168] sm:$0xff] }
  0x2d   :  { %v3710_v51 = vrot.slane %v3540_v22, 1  ;;  %v9800_v49 = vrot.slane %v4428_v30, 1  ;;  %v1835_v50 = vadd.f32 %v1616_v17, %v358_v9  ;;  %v2231_v36 = vadd.f32 %v1991_v63, %v514_v27 }
  0x2e   :  { %v2000_v39 = vsel %vm764_vm0, %v1991_v63, %v1999_v29  ;;  %v2012_v1 = vsel %vm764_vm0, %v1999_v29, %v2011_v37  ;;  %v2024_v47 = vsel %vm764_vm0, %v2011_v37, %v9802_v40  ;;  %v2404_v52 = vrot.slane %v1415_v42, 2  ;;  %v4463_v63 = vld [vmem:[%s9796_s0 + $0x198] sm:$0xff] }
  0x2f   :  { %v3712_v9 = vsel %vm764_vm0, %v3710_v51, %v9800_v49  ;;  %v2237_v27 = vadd.f32 %v2000_v39, %v520_v26  ;;  %v2243_v22 = vadd.f32 %v2012_v1, %v526_v31  ;;  %v4458_v17 = vadd.f32 %v2024_v47, %v532_v14  ;;  %v263_v42 = vld [vmem:[%s9796_s0 + $0x378] sm:$0xf0] }
  0x30   :  { %3948 = vst [vmem:[%s9797_s1 + $0x8] sm:$0xff] %v3712_v9  ;;  %v2405_v29 = vrot.slane %v1421_v56, 2  ;;  %v9801_v37 = vrot.slane %v4417_v61, 2  ;;  %v2812_v39 = vrot.slane %v2231_v36, 2  ;;  %v774_v1 = vrot.slane %v95_v62, 1  ;;  %v269_v56 = vld [vmem:[%s9796_s0 + $0x3a8] sm:$0xff] }
  0x31   :  { %v2813_v26 = vrot.slane %v2237_v27, 2  ;;  %v2828_v31 = vrot.slane %v2243_v22, 2  ;;  %v9803_v14 = vrot.slane %v4458_v17, 2  ;;  %v775_v51 = vrot.slane %v101_v55, 1  ;;  %v11_v9 = vld [vmem:[%s9796_s0 + $0x18] sm:$0xfe] }
  0x32   :  { %v2406_v47 = vsel %vm2397_vm1, %v2404_v52, %v2405_v29  ;;  %v2421_v49 = vsel %vm2397_vm1, %v2405_v29, %v9801_v37  ;;  %v9806_v36 = vrot.slane %v4463_v63, 1  ;;  %v1182_v62 = vrot.slane %v263_v42, 1  ;;  %v17_v29 = vld [vmem:[%s9796_s0 + $0x48] sm:$0xff]  ;;  %v275_v37 = vld [vmem:[%s9796_s0 + $0x3d8] sm:$0xff] }
  0x33   :  { %v2640_v27 = vadd.f32 %v2406_v47, %v4368_v60  ;;  %v2646_v55 = vadd.f32 %v2421_v49, %v4373_v43  ;;  %v2814_v52 = vsel %vm2397_vm1, %v2812_v39, %v2813_v26  ;;  %v2829_v22 = vsel %vm2397_vm1, %v2813_v26, %v2828_v31  ;;  %v4500_v43 = vld [vmem:[%s9796_s0 + $0x408] sm:$0xff]  ;;  %v431_v49 = vld [vmem:[%s9796_s0 + $0x5b8] sm:$0xc0] }
  0x34   :  { %v2841_v42 = vsel %vm2397_vm1, %v2828_v31, %v9803_v14  ;;  %v3048_v40 = vadd.f32 %v2814_v52, %v1823_v8  ;;  %v3054_v60 = vadd.f32 %v2829_v22, %v1829_v11  ;;  %v776_v39 = vsel %vm764_vm0, %v774_v1, %v775_v51  ;;  %v179_v47 = vld [vmem:[%s9796_s0 + $0x258] sm:$0xf8]  ;;  %v437_v8 = vld [vmem:[%s9796_s0 + $0x5e8] sm:$0xff] }
  0x35   :  { %v4506_v26 = vadd.f32 %v2841_v42, %v1835_v50  ;;  %v790_v11 = vsel %vm764_vm0, %v775_v51, %v9806_v36  ;;  %v4517_v31 = vadd.f32 %v776_v39, %v11_v9  ;;  %v1183_v52 = vrot.slane %v269_v56, 1  ;;  %v185_v50 = vld [vmem:[%s9796_s0 + $0x288] sm:$0xff]  ;;  %v443_v51 = vld [vmem:[%s9796_s0 + $0x618] sm:$0xff] }
  0x36   :  { %v3221_v22 = vrot.slane %v3048_v40, 4  ;;  %v3222_v14 = vrot.slane %v3054_v60, 4  ;;  %v4522_v1 = vadd.f32 %v790_v11, %v17_v29  ;;  %v1197_v42 = vrot.slane %v275_v37, 1  ;;  %v347_v37 = vld [vmem:[%s9796_s0 + $0x498] sm:$0xe0]  ;;  %v4540_v29 = vld [vmem:[%s9796_s0 + $0x648] sm:$0xff] }
  0x37   :  { %v9810_v59 = vrot.slane %v4506_v26, 4  ;;  %v1184_v40 = vsel %vm764_vm0, %v1182_v62, %v1183_v52  ;;  %v9811_v9 = vrot.slane %v4500_v43, 1  ;;  %v1590_v56 = vrot.slane %v431_v49, 1  ;;  %v599_v39 = vld [vmem:[%s9796_s0 + $0x828] sm:$0xff] }
  0x38   :  { %v3223_v60 = vsel %vm3214_vm2, %v3221_v22, %v3222_v14  ;;  %v1198_v62 = vsel %vm764_vm0, %v1183_v52, %v1197_v42  ;;  %v1416_v11 = vadd.f32 %v1184_v40, %v179_v47  ;;  %v1591_v36 = vrot.slane %v437_v8, 1  ;;  %v353_v8 = vld [vmem:[%s9796_s0 + $0x4c8] sm:$0xff] }
  0x39   :  { %v3238_v49 = vsel %vm3214_vm2, %v3222_v14, %v9810_v59  ;;  %v3457_v22 = vadd.f32 %v3223_v60, %v2640_v27  ;;  %v1210_v32 = vsel %vm764_vm0, %v1197_v42, %v9811_v9  ;;  %v1422_v52 = vadd.f32 %v1198_v62, %v185_v50  ;;  %v4564_v14 = vld [vmem:[%s9796_s0 + $0x8b8] sm:$0xff] }
  0x3a   :  { %v3463_v47 = vadd.f32 %v3238_v49, %v2646_v55  ;;  %v4566_v27 = vadd.f32 %v1210_v32, %v191_v18  ;;  %v1592_v40 = vsel %vm764_vm0, %v1590_v56, %v1591_v36  ;;  %v1605_v60 = vrot.slane %v443_v51, 1  ;;  %v359_v50 = vld [vmem:[%s9796_s0 + $0x4f8] sm:$0xff]  ;;  %v521_v18 = vld [vmem:[%s9796_s0 + $0x708] sm:$0xff] }
  0x3b   :  { %v3541_v59 = vmul.f32 0.125, %v3457_v22  ;;  %v515_v55 = vld [vmem:[%s9796_s0 + $0x6d8] sm:$0x80]  ;;  %v9822_v42 = vrot.slane %v4540_v29, 1  ;;  %v1824_v62 = vadd.f32 %v1592_v40, %v347_v37  ;;  %v1992_v49 = vrot.slane %v599_v39, 1  ;;  %v533_v37 = vld [vmem:[%s9796_s0 + $0x768] sm:$0xff] }
  0x3c   :  { %v4576_v9 = vmul.f32 0.125, %v3463_v47  ;;  %v527_v32 = vld [vmem:[%s9796_s0 + $0x738] sm:$0xff]  ;;  %v1606_v51 = vsel %vm764_vm0, %v1591_v36, %v1605_v60  ;;  %v2001_v56 = vrot.slane %v605_v12, 1  ;;  %v2013_v22 = vrot.slane %v611_v48, 1 }
  0x3d   :  { %v3713_v5 = vrot.slane %v3541_v59, 1  ;;  %v1618_v39 = vsel %vm764_vm0, %v1605_v60, %v9822_v42  ;;  %v1830_v47 = vadd.f32 %v1606_v51, %v353_v8  ;;  %v9820_v40 = vrot.slane %v4564_v14, 1  ;;  %v96_v8 = vld [vmem:[%s9796_s0 + $0x140] sm:$0xfc]  ;;  %v102_v60 = vld [vmem:[%s9796_s0 + $0x170] sm:$0xff] }
  0x3e   :  { %10138 = vst [vmem:[#allocation2_spill] sm:$0xff] %v4576_v9  ;;  %v9817_v45 = vrot.slane %v4576_v9, 1  ;;  %v1836_v23 = vadd.f32 %v1618_v39, %v359_v50  ;;  %v2002_v16 = vsel %vm764_vm0, %v1992_v49, %v2001_v56  ;;  %v2014_v12 = vsel %vm764_vm0, %v2001_v56, %v2013_v22  ;;  %v600_v42 = vld [vmem:[%s9796_s0 + $0x830] sm:$0xff] }
  0x3f   :  { %v2026_v48 = vsel %vm764_vm0, %v2013_v22, %v9820_v40  ;;  %v2232_v59 = vadd.f32 %v1992_v49, %v515_v55  ;;  %v2238_v36 = vadd.f32 %v2002_v16, %v521_v18  ;;  %v2244_v4 = vadd.f32 %v2014_v12, %v527_v32 }
  0x40   :  { %v3715_v50 = vsel %vm764_vm0, %v3713_v5, %v9817_v45  ;;  %v4607_v51 = vadd.f32 %v2026_v48, %v533_v37  ;;  %v2407_v56 = vrot.slane %v1416_v11, 2  ;;  %v2408_v39 = vrot.slane %v1422_v52, 2  ;;  %v4618_v5 = vld [vmem:[%s9796_s0 + $0x1a0] sm:$0xff] }
  0x41   :  { %3949 = vst [vmem:[%s9797_s1 + $0x10] sm:$0xff] %v3715_v50  ;;  %v9819_v16 = vrot.slane %v4566_v27, 2  ;;  %v2815_v55 = vrot.slane %v2232_v59, 2  ;;  %v2816_v49 = vrot.slane %v2238_v36, 2  ;;  %v2830_v18 = vrot.slane %v2244_v4, 2  ;;  %v270_v50 = vld [vmem:[%s9796_s0 + $0x3b0] sm:$0xff] }
  0x42   :  { %v2409_v32 = vsel %vm2397_vm1, %v2407_v56, %v2408_v39  ;;  %v9818_v22 = vrot.slane %v4607_v51, 2  ;;  %v264_v11 = vld [vmem:[%s9796_s0 + $0x380] sm:$0xf0]  ;;  %v777_v52 = vrot.slane %v96_v8, 1  ;;  %v778_v37 = vrot.slane %v102_v60, 1 }
  0x43   :  { %v2423_v12 = vsel %vm2397_vm1, %v2408_v39, %v9819_v16  ;;  %v2641_v4 = vadd.f32 %v2409_v32, %v4517_v31  ;;  %v2817_v48 = vsel %vm2397_vm1, %v2815_v55, %v2816_v49  ;;  %v2831_v59 = vsel %vm2397_vm1, %v2816_v49, %v2830_v18  ;;  %v12_v36 = vld [vmem:[%s9796_s0 + $0x20] sm:$0xfe]  ;;  %v4645_v55 = vld [vmem:[%s9796_s0 + $0x410] sm:$0xff] }
  0x44   :  { %v2647_v8 = vadd.f32 %v2423_v12, %v4522_v1  ;;  %v2843_v60 = vsel %vm2397_vm1, %v2830_v18, %v9818_v22  ;;  %v3049_v56 = vadd.f32 %v2817_v48, %v1824_v62  ;;  %v3055_v31 = vadd.f32 %v2831_v59, %v1830_v47  ;;  %v276_v39 = vld [vmem:[%s9796_s0 + $0x3e0] sm:$0xff]  ;;  %v18_v1 = vld [vmem:[%s9796_s0 + $0x50] sm:$0xff] }
  0x45   :  { %v4647_v49 = vadd.f32 %v2843_v60, %v1836_v23  ;;  %v432_v62 = vld [vmem:[%s9796_s0 + $0x5c0] sm:$0xc0]  ;;  %v779_v47 = vsel %vm764_vm0, %v777_v52, %v778_v37  ;;  %v9821_v18 = vrot.slane %v4618_v5, 1  ;;  %v1185_v32 = vrot.slane %v264_v11, 1  ;;  %v186_v22 = vld [vmem:[%s9796_s0 + $0x290] sm:$0xff] }
  0x46   :  { %v3224_v12 = vrot.slane %v3049_v56, 4  ;;  %v3225_v48 = vrot.slane %v3055_v31, 4  ;;  %v180_v23 = vld [vmem:[%s9796_s0 + $0x260] sm:$0xf8]  ;;  %v4660_v59 = vadd.f32 %v779_v47, %v12_v36  ;;  %v1186_v60 = vrot.slane %v270_v50, 1  ;;  %v438_v50 = vld [vmem:[%s9796_s0 + $0x5f0] sm:$0xff] }
  0x47   :  { %10139 = vst [vmem:[#allocation3_spill] sm:$0xff] %v4647_v49  ;;  %v9824_v45 = vrot.slane %v4647_v49, 4  ;;  %v192_v52 = vld [vmem:[%s9796_s0 + $0x2c0] sm:$0xff]  ;;  %v792_v11 = vsel %vm764_vm0, %v778_v37, %v9821_v18  ;;  %v1199_v56 = vrot.slane %v276_v39, 1  ;;  %v9827_v31 = vrot.slane %v4645_v55, 1  ;;  %v4683_v16 = vld [vmem:[%s9796_s0 + $0x650] sm:$0xff] }
  0x48   :  { %v3226_v36 = vsel %vm3214_vm2, %v3224_v12, %v3225_v48  ;;  %v444_v47 = vld [vmem:[%s9796_s0 + $0x620] sm:$0xff]  ;;  %v4685_v40 = vadd.f32 %v792_v11, %v18_v1  ;;  %v1187_v37 = vsel %vm764_vm0, %v1185_v32, %v1186_v60  ;;  %v1593_v39 = vrot.slane %v432_v62, 1  ;;  %v612_v1 = vld [vmem:[%s9796_s0 + $0x890] sm:$0xff] }
  0x49   :  { %v3240_v12 = vsel %vm3214_vm2, %v3225_v48, %v9824_v45  ;;  %v3458_v18 = vadd.f32 %v3226_v36, %v2641_v4  ;;  %v1200_v32 = vsel %vm764_vm0, %v1186_v60, %v1199_v56  ;;  %v1212_v62 = vsel %vm764_vm0, %v1199_v56, %v9827_v31  ;;  %v348_v4 = vld [vmem:[%s9796_s0 + $0x4a0] sm:$0xe0]  ;;  %v354_v11 = vld [vmem:[%s9796_s0 + $0x4d0] sm:$0xff] }
  0x4a   :  { %v3464_v48 = vadd.f32 %v3240_v12, %v2647_v8  ;;  %v360_v36 = vld [vmem:[%s9796_s0 + $0x500] sm:$0xff]  ;;  %v1417_v45 = vadd.f32 %v1187_v37, %v180_v23  ;;  %v1423_v33 = vadd.f32 %v1200_v32, %v186_v22  ;;  %v4713_v60 = vadd.f32 %v1212_v62, %v192_v52 }
  0x4b   :  { %v3542_v53 = vmul.f32 0.125, %v3458_v18  ;;  %v516_v8 = vld [vmem:[%s9796_s0 + $0x6e0] sm:$0x80]  ;;  %v1594_v56 = vrot.slane %v438_v50, 1  ;;  %v1607_v12 = vrot.slane %v444_v47, 1  ;;  %v9835_v31 = vrot.slane %v4683_v16, 1 }
  0x4c   :  { %10140 = vst [vmem:[#allocation4_spill] sm:$0xff] %v4713_v60  ;;  %v4719_v41 = vmul.f32 0.125, %v3464_v48  ;;  %v1993_v23 = vrot.slane %v600_v42, 1  ;;  %v2003_v22 = vrot.slane %v606_v58, 1  ;;  %v2015_v52 = vrot.slane %v612_v1, 1  ;;  %v522_v18 = vld [vmem:[%s9796_s0 + $0x710] sm:$0xff] }
  0x4d   :  { %v3716_v37 = vrot.slane %v3542_v53, 1  ;;  %v528_v50 = vld [vmem:[%s9796_s0 + $0x740] sm:$0xff]  ;;  %v1595_v47 = vsel %vm764_vm0, %v1593_v39, %v1594_v56  ;;  %v1608_v32 = vsel %vm764_vm0, %v1594_v56, %v1607_v12  ;;  %v1620_v62 = vsel %vm764_vm0, %v1607_v12, %v9835_v31  ;;  %v534_v48 = vld [vmem:[%s9796_s0 + $0x770] sm:$0xff]  ;;  %v97_v12 = vld [vmem:[%s9796_s0 + $0x148] sm:$0xfc] }
  0x4e   :  { %10141 = vst [vmem:[#allocation5_spill] sm:$0xff] %v4719_v41  ;;  %v9832_v58 = vrot.slane %v4719_v41, 1  ;;  %v1825_v42 = vadd.f32 %v1595_v47, %v348_v4  ;;  %v1831_v53 = vadd.f32 %v1608_v32, %v354_v11  ;;  %v1837_v1 = vadd.f32 %v1620_v62, %v360_v36  ;;  %v103_v32 = vld [vmem:[%s9796_s0 + $0x178] sm:$0xff] }
  0x4f   :  { %v2004_v7 = vsel %vm764_vm0, %v1993_v23, %v2003_v22  ;;  %v2016_v9 = vsel %vm764_vm0, %v2003_v22, %v2015_v52  ;;  %v9834_v39 = vrot.slane %v4724_v21, 1  ;;  %v2233_v56 = vadd.f32 %v1993_v23, %v516_v8  ;;  %v4756_v22 = vld [vmem:[%s9796_s0 + $0x1a8] sm:$0xff] }
  0x50   :  { %v3718_v4 = vsel %vm764_vm0, %v3716_v37, %v9832_v58  ;;  %v2239_v11 = vadd.f32 %v2004_v7, %v522_v18  ;;  %v2245_v36 = vadd.f32 %v2016_v9, %v528_v50  ;;  %v2410_v47 = vrot.slane %v1417_v45, 2  ;;  %10143 = vst [vmem:[#allocation7_spill] sm:$0xff] %v4756_v22  ;;  %v13_v50 = vld [vmem:[%s9796_s0 + $0x28] sm:$0xfe] }
  0x51   :  { %3950 = vst [vmem:[%s9797_s1 + $0x18] sm:$0xff] %v3718_v4  ;;  %v2028_v8 = vsel %vm764_vm0, %v2015_v52, %v9834_v39  ;;  %v2411_v7 = vrot.slane %v1423_v33, 2  ;;  %v9833_v45 = vrot.slane %v4713_v60, 2  ;;  %v2818_v9 = vrot.slane %v2233_v56, 2  ;;  %v265_v33 = vld [vmem:[%s9796_s0 + $0x388] sm:$0xf0] }
  0x52   :  { %v4765_v23 = vadd.f32 %v2028_v8, %v534_v48  ;;  %v2819_v37 = vrot.slane %v2239_v11, 2  ;;  %v2832_v18 = vrot.slane %v2245_v36, 2  ;;  %v780_v62 = vrot.slane %v97_v12, 1  ;;  %v271_v52 = vld [vmem:[%s9796_s0 + $0x3b8] sm:$0xff] }
  0x53   :  { %v2412_v58 = vsel %vm2397_vm1, %v2410_v47, %v2411_v7  ;;  %v2425_v4 = vsel %vm2397_vm1, %v2411_v7, %v9833_v45  ;;  %v781_v48 = vrot.slane %v103_v32, 1  ;;  %v9840_v56 = vrot.slane %v4756_v22, 1  ;;  %v19_v8 = vld [vmem:[%s9796_s0 + $0x58] sm:$0xff]  ;;  %v181_v32 = vld [vmem:[%s9796_s0 + $0x268] sm:$0xf8] }
  0x54   :  { %10144 = vst [vmem:[#allocation8_spill] sm:$0xff] %v4765_v23  ;;  %v2642_v11 = vadd.f32 %v2412_v58, %v4660_v59  ;;  %v2648_v12 = vadd.f32 %v2425_v4, %v4685_v40  ;;  %v2820_v36 = vsel %vm2397_vm1, %v2818_v9, %v2819_v37  ;;  %v2833_v47 = vsel %vm2397_vm1, %v2819_v37, %v2832_v18  ;;  %v277_v40 = vld [vmem:[%s9796_s0 + $0x3e8] sm:$0xff]  ;;  %v4798_v59 = vld [vmem:[%s9796_s0 + $0x418] sm:$0xff] }
  0x55   :  { %v9839_v7 = vrot.slane %v4765_v23, 2  ;;  %v3050_v45 = vadd.f32 %v2820_v36, %v1825_v42  ;;  %v3056_v39 = vadd.f32 %v2833_v47, %v1831_v53  ;;  %10145 = vst [vmem:[#allocation9_spill] sm:$0xff] %v4798_v59  ;;  %v782_v58 = vsel %vm764_vm0, %v780_v62, %v781_v48  ;;  %v433_v42 = vld [vmem:[%s9796_s0 + $0x5c8] sm:$0xc0]  ;;  %v439_v53 = vld [vmem:[%s9796_s0 + $0x5f8] sm:$0xff] }
  0x56   :  { %v794_v9 = vsel %vm764_vm0, %v781_v48, %v9840_v56  ;;  %v4810_v37 = vadd.f32 %v782_v58, %v13_v50  ;;  %v1188_v4 = vrot.slane %v265_v33, 1  ;;  %v1189_v36 = vrot.slane %v271_v52, 1  ;;  %v187_v60 = vld [vmem:[%s9796_s0 + $0x298] sm:$0xff]  ;;  %v193_v50 = vld [vmem:[%s9796_s0 + $0x2c8] sm:$0xff] }
  0x57   :  { %v2845_v62 = vsel %vm2397_vm1, %v2832_v18, %v9839_v7  ;;  %v3227_v47 = vrot.slane %v3050_v45, 4  ;;  %v3228_v31 = vrot.slane %v3056_v39, 4  ;;  %v4815_v41 = vadd.f32 %v794_v9, %v19_v8  ;;  %v445_v33 = vld [vmem:[%s9796_s0 + $0x628] sm:$0xff]  ;;  %v4837_v48 = vld [vmem:[%s9796_s0 + $0x658] sm:$0xff] }
  0x58   :  { %v4817_v49 = vadd.f32 %v2845_v62, %v1837_v1  ;;  %v1190_v18 = vsel %vm764_vm0, %v1188_v4, %v1189_v36  ;;  %v1201_v45 = vrot.slane %v277_v40, 1  ;;  %v9842_v39 = vrot.slane %v4798_v59, 1  ;;  %v349_v52 = vld [vmem:[%s9796_s0 + $0x4a8] sm:$0xe0]  ;;  %10147 = vst [vmem:[#allocation11_spill] sm:$0xff] %v4837_v48  ;;  %v601_v40 = vld [vmem:[%s9796_s0 + $0x838] sm:$0xff] }
  0x59   :  { %v3229_v1 = vsel %vm3214_vm2, %v3227_v47, %v3228_v31  ;;  %v1418_v8 = vadd.f32 %v1190_v18, %v181_v32  ;;  %v1596_v58 = vrot.slane %v433_v42, 1  ;;  %v1597_v9 = vrot.slane %v439_v53, 1  ;;  %v607_v47 = vld [vmem:[%s9796_s0 + $0x868] sm:$0xff]  ;;  %v355_v32 = vld [vmem:[%s9796_s0 + $0x4d8] sm:$0xff] }
  0x5a   :  { %10146 = vst [vmem:[#allocation10_spill] sm:$0xff] %v4817_v49  ;;  %v9843_v62 = vrot.slane %v4817_v49, 4  ;;  %v3459_v4 = vadd.f32 %v3229_v1, %v2642_v11  ;;  %v1202_v7 = vsel %vm764_vm0, %v1189_v36, %v1201_v45  ;;  %v1214_v56 = vsel %vm764_vm0, %v1201_v45, %v9842_v39  ;;  %v613_v11 = vld [vmem:[%s9796_s0 + $0x898] sm:$0xff]  ;;  %v361_v45 = vld [vmem:[%s9796_s0 + $0x508] sm:$0xff] }
  0x5b   :  { %v1424_v42 = vadd.f32 %v1202_v7, %v187_v60  ;;  %v4856_v53 = vadd.f32 %v1214_v56, %v193_v50  ;;  %v1598_v18 = vsel %vm764_vm0, %v1596_v58, %v1597_v9  ;;  %v1609_v1 = vrot.slane %v445_v33, 1  ;;  %v4868_v39 = vld [vmem:[%s9796_s0 + $0x8c8] sm:$0xff]  ;;  %v535_v59 = vld [vmem:[%s9796_s0 + $0x778] sm:$0xff] }
  0x5c   :  { %v3242_v36 = vsel %vm3214_vm2, %v3228_v31, %v9843_v62  ;;  %v3543_v23 = vmul.f32 0.125, %v3459_v4  ;;  %v9864_v60 = vrot.slane %v4837_v48, 1  ;;  %v1826_v56 = vadd.f32 %v1598_v18, %v349_v52  ;;  %v517_v50 = vld [vmem:[%s9796_s0 + $0x6e8] sm:$0x80]  ;;  %v523_v31 = vld [vmem:[%s9796_s0 + $0x718] sm:$0xff] }
  0x5d   :  { %v3465_v7 = vadd.f32 %v3242_v36, %v2648_v12  ;;  %v1610_v33 = vsel %vm764_vm0, %v1597_v9, %v1609_v1  ;;  %v1994_v58 = vrot.slane %v601_v40, 1  ;;  %v2005_v4 = vrot.slane %v607_v47, 1  ;;  %v529_v49 = vld [vmem:[%s9796_s0 + $0x748] sm:$0xff] }
  0x5e   :  { %v3719_v62 = vrot.slane %v3543_v23, 1  ;;  %v1622_v12 = vsel %vm764_vm0, %v1609_v1, %v9864_v60  ;;  %v1832_v52 = vadd.f32 %v1610_v33, %v355_v32  ;;  %v2017_v18 = vrot.slane %v613_v11, 1  ;;  %v4895_v32 = vld [vmem:[%s9796_s0 + $0x1b0] sm:$0xff] }
  0x5f   :  { %v4884_v36 = vmul.f32 0.125, %v3465_v7  ;;  %v1838_v9 = vadd.f32 %v1622_v12, %v361_v45  ;;  %v2006_v40 = vsel %vm764_vm0, %v1994_v58, %v2005_v4  ;;  %v9854_v23 = vrot.slane %v4868_v39, 1 }
  0x60   :  { %v2018_v47 = vsel %vm764_vm0, %v2005_v4, %v2017_v18  ;;  %v2234_v22 = vadd.f32 %v1994_v58, %v517_v50  ;;  %v2240_v21 = vadd.f32 %v2006_v40, %v523_v31  ;;  %v2413_v48 = vrot.slane %v1418_v8, 2  ;;  %v20_v40 = vld [vmem:[%s9796_s0 + $0x60] sm:$0xff] }
  0x61   :  { %v9849_v11 = vrot.slane %v4884_v36, 1  ;;  %v2030_v1 = vsel %vm764_vm0, %v2017_v18, %v9854_v23  ;;  %v2246_v45 = vadd.f32 %v2018_v47, %v529_v49  ;;  %v2414_v7 = vrot.slane %v1424_v42, 2  ;;  %v4914_v49 = vld [vmem:[%s9796_s0 + $0x420] sm:$0xff]  ;;  %v4934_v18 = vld [vmem:[%s9796_s0 + $0x8d0] sm:$0xff] }
  0x62   :  { %v4901_v33 = vadd.f32 %v2030_v1, %v535_v59  ;;  %v9851_v4 = vrot.slane %v4856_v53, 2  ;;  %v2821_v50 = vrot.slane %v2234_v22, 2  ;;  %v2822_v31 = vrot.slane %v2240_v21, 2  ;;  %v4929_v42 = vld [vmem:[%s9796_s0 + $0x660] sm:$0xff] }
  0x63   :  { %v3721_v8 = vsel %vm764_vm0, %v3719_v62, %v9849_v11  ;;  %v2415_v58 = vsel %vm2397_vm1, %v2413_v48, %v2414_v7  ;;  %v2834_v12 = vrot.slane %v2246_v45, 2  ;;  %v9853_v59 = vrot.slane %v4895_v32, 1  ;;  %v536_v11 = vld [vmem:[%s9796_s0 + $0x780] sm:$0xff] }
  0x64   :  { %3951 = vst [vmem:[%s9797_s1 + $0x20] sm:$0xff] %v3721_v8  ;;  %v2427_v21 = vsel %vm2397_vm1, %v2414_v7, %v9851_v4  ;;  %v2643_v22 = vadd.f32 %v2415_v58, %v4810_v37  ;;  %v2823_v48 = vsel %vm2397_vm1, %v2821_v50, %v2822_v31  ;;  %v9850_v62 = vrot.slane %v4901_v33, 2  ;;  %v4946_v50 = vld [vmem:[%s9796_s0 + $0x1b8] sm:$0xff]  ;;  %v4951_v8 = vld [vmem:[%s9796_s0 + $0x428] sm:$0xff] }
  0x65   :  { %v2649_v47 = vadd.f32 %v2427_v21, %v4815_v41  ;;  %v2835_v1 = vsel %vm2397_vm1, %v2822_v31, %v2834_v12  ;;  %v3051_v45 = vadd.f32 %v2823_v48, %v1826_v56  ;;  %v10148_v37 = vrot.slane %v4054_v2, 1  ;;  %v194_v2 = vld [vmem:[%s9796_s0 + $0x2d0] sm:$0xff] }
  0x66   :  { %v2847_v41 = vsel %vm2397_vm1, %v2834_v12, %v9850_v62  ;;  %v3057_v56 = vadd.f32 %v2835_v1, %v1832_v52  ;;  %v9852_v58 = vrot.slane %v4914_v49, 1  ;;  %v9856_v52 = vrot.slane %v4929_v42, 1 }
  0x67   :  { %v796_v7 = vsel %vm764_vm0, %v10148_v37, %v9853_v59  ;;  %v4960_v21 = vadd.f32 %v2847_v41, %v1838_v9  ;;  %v3230_v48 = vrot.slane %v3051_v45, 4  ;;  %v362_v37 = vld [vmem:[%s9796_s0 + $0x510] sm:$0xff]  ;;  %v9855_v12 = vrot.slane %v4934_v18, 1  ;;  %v21_v45 = vld [vmem:[%s9796_s0 + $0x68] sm:$0xff] }
  0x68   :  { %v1017_v31 = vadd.f32 %v796_v7, %v20_v40  ;;  %v3231_v1 = vrot.slane %v3057_v56, 4  ;;  %v10149_v40 = vrot.slane %v4072_v10, 1  ;;  %v9857_v7 = vrot.slane %v4946_v50, 1  ;;  %v4996_v59 = vld [vmem:[%s9796_s0 + $0x668] sm:$0xff] }
  0x69   :  { %v9860_v41 = vrot.slane %v4951_v8, 1  ;;  %v9861_v62 = vrot.slane %v4960_v21, 4  ;;  %v10150_v56 = vrot.slane %v4103_v24, 1  ;;  %v195_v24 = vld [vmem:[%s9796_s0 + $0x2d8] sm:$0xff]  ;;  %v10159_v60 = vrot.slane %v4319_v6, 1  ;;  %v538_v6 = vld [vmem:[%s9796_s0 + $0x790] sm:$0xff] }
  0x6a   :  { %v1216_v9 = vsel %vm764_vm0, %v10149_v40, %v9852_v58  ;;  %v10151_v40 = vrot.slane %v4128_v38, 1  ;;  %v5007_v38 = vld [vmem:[%s9796_s0 + $0x8d8] sm:$0xff] }
  0x6b   :  { %v4981_v4 = vadd.f32 %v1216_v9, %v194_v2  ;;  %v1624_v10 = vsel %vm764_vm0, %v10150_v56, %v9856_v52  ;;  %v3232_v2 = vsel %vm3214_vm2, %v3230_v48, %v3231_v1  ;;  %v10152_v56 = vrot.slane %v4172_v13, 1  ;;  %v363_v52 = vld [vmem:[%s9796_s0 + $0x518] sm:$0xff] }
  0x6c   :  { %v2032_v58 = vsel %vm764_vm0, %v10151_v40, %v9855_v12  ;;  %v1839_v9 = vadd.f32 %v1624_v10, %v362_v37  ;;  %v10153_v13 = vrot.slane %v4207_v35, 1  ;;  %v5042_v35 = vld [vmem:[%s9796_s0 + $0x1c0] sm:$0xff] }
  0x6d   :  { %v4999_v23 = vadd.f32 %v2032_v58, %v536_v11  ;;  %v798_v40 = vsel %vm764_vm0, %v10152_v56, %v9857_v7  ;;  %v3244_v11 = vsel %vm3214_vm2, %v3231_v1, %v9861_v62  ;;  %v3460_v58 = vadd.f32 %v3232_v2, %v2643_v22  ;;  %v22_v62 = vld [vmem:[%s9796_s0 + $0x70] sm:$0xff] }
  0x6e   :  { %v9863_v48 = vrot.slane %v4981_v4, 2  ;;  %v1018_v37 = vadd.f32 %v798_v40, %v21_v45  ;;  %v3466_v10 = vadd.f32 %v3244_v11, %v2649_v47  ;;  %v1218_v56 = vsel %vm764_vm0, %v10153_v13, %v9860_v41  ;;  %v537_v45 = vld [vmem:[%s9796_s0 + $0x788] sm:$0xff] }
  0x6f   :  { %v9858_v12 = vrot.slane %v4999_v23, 2  ;;  %v9859_v7 = vrot.slane %v4996_v59, 1  ;;  %v3544_v1 = vmul.f32 0.125, %v3460_v58  ;;  %v10154_v22 = vrot.slane %v4138_v46, 2 }
  0x70   :  { %v5036_v2 = vadd.f32 %v1218_v56, %v195_v24  ;;  %v9862_v40 = vrot.slane %v5007_v38, 1  ;;  %v5044_v11 = vmul.f32 0.125, %v3466_v10  ;;  %v10155_v46 = vrot.slane %v4162_v3, 2  ;;  %v5069_v3 = vld [vmem:[%s9796_s0 + $0x8e0] sm:$0xff] }
  0x71   :  { %v2429_v47 = vsel %vm2397_vm1, %v10154_v22, %v9863_v48  ;;  %v10156_v24 = vrot.slane %v4238_v57, 1  ;;  %v5059_v22 = vld [vmem:[%s9796_s0 + $0x430] sm:$0xff]  ;;  %v3722_v10 = vrot.slane %v3544_v1, 1  ;;  %v364_v48 = vld [vmem:[%s9796_s0 + $0x520] sm:$0xff] }
  0x72   :  { %v2650_v58 = vadd.f32 %v2429_v47, %v1017_v31  ;;  %v2849_v13 = vsel %vm2397_vm1, %v10155_v46, %v9858_v12  ;;  %v5064_v31 = vld [vmem:[%s9796_s0 + $0x670] sm:$0xff]  ;;  %v10157_v46 = vrot.slane %v4269_v19, 1  ;;  %v9865_v12 = vrot.slane %v5044_v11, 1  ;;  %v196_v19 = vld [vmem:[%s9796_s0 + $0x2e0] sm:$0xff] }
  0x73   :  { %v1626_v56 = vsel %vm764_vm0, %v10156_v24, %v9859_v7  ;;  %v5071_v47 = vadd.f32 %v2849_v13, %v1839_v9  ;;  %v9866_v41 = vrot.slane %v5036_v2, 2  ;;  %v9867_v9 = vrot.slane %v5042_v35, 1 }
  0x74   :  { %v1840_v57 = vadd.f32 %v1626_v56, %v363_v52  ;;  %v2034_v24 = vsel %vm764_vm0, %v10157_v46, %v9862_v40  ;;  %v9870_v1 = vrot.slane %v5059_v22, 1  ;;  %v9869_v13 = vrot.slane %v5064_v31, 1 }
  0x75   :  { %v5079_v7 = vadd.f32 %v2034_v24, %v537_v45  ;;  %v9871_v52 = vrot.slane %v5071_v47, 4  ;;  %v3724_v56 = vsel %vm764_vm0, %v3722_v10, %v9865_v12  ;;  %v10158_v46 = vrot.slane %v4271_v20, 2  ;;  %v5113_v10 = vld [vmem:[%s9796_s0 + $0x1c8] sm:$0xff] }
  0x76   :  { %v800_v45 = vsel %vm764_vm0, %v10159_v60, %v9867_v9  ;;  %3952 = vst [vmem:[%s9797_s1 + $0x28] sm:$0xff] %v3724_v56  ;;  %v10160_v20 = vrot.slane %v4202_v34, 4  ;;  %v5134_v56 = vld [vmem:[%s9796_s0 + $0x438] sm:$0xff] }
  0x77   :  { %v2431_v24 = vsel %vm2397_vm1, %v10158_v46, %v9866_v41  ;;  %v9868_v40 = vrot.slane %v5079_v7, 2  ;;  %v1019_v60 = vadd.f32 %v800_v45, %v22_v62  ;;  %v10161_v41 = vrot.slane %v4351_v44, 1 }
  0x78   :  { %v3246_v46 = vsel %vm3214_vm2, %v10160_v20, %v9871_v52  ;;  %v2651_v12 = vadd.f32 %v2431_v24, %v1018_v37  ;;  %v10162_v37 = vrot.slane %v4312_v0, 2  ;;  %v10163_v44 = vrot.slane %v4386_v15, 1 }
  0x79   :  { %v1220_v9 = vsel %vm764_vm0, %v10161_v41, %v9870_v1  ;;  %v3467_v34 = vadd.f32 %v3246_v46, %v2650_v58  ;;  %v5151_v41 = vld [vmem:[%s9796_s0 + $0x678] sm:$0xff]  ;;  %v5156_v58 = vld [vmem:[%s9796_s0 + $0x8e8] sm:$0xff]  ;;  %v10165_v45 = vrot.slane %v4415_v28, 1 }
  0x7a   :  { %v2851_v24 = vsel %vm2397_vm1, %v10162_v37, %v9868_v40  ;;  %v5141_v20 = vadd.f32 %v1220_v9, %v196_v19  ;;  %v1628_v62 = vsel %vm764_vm0, %v10163_v44, %v9869_v13  ;;  %v10164_v19 = vrot.slane %v5069_v3, 1  ;;  %v23_v46 = vld [vmem:[%s9796_s0 + $0x78] sm:$0xff]  ;;  %v197_v28 = vld [vmem:[%s9796_s0 + $0x2e8] sm:$0xff] }
  0x7b   :  { %v5158_v0 = vadd.f32 %v2851_v24, %v1840_v57  ;;  %v1841_v9 = vadd.f32 %v1628_v62, %v364_v48  ;;  %v9872_v37 = vrot.slane %v5113_v10, 1  ;;  %v5169_v44 = vmul.f32 0.125, %v3467_v34 }
  0x7c   :  { %v2036_v15 = vsel %vm764_vm0, %v10165_v45, %v10164_v19  ;;  %v9873_v57 = vrot.slane %v5141_v20, 2  ;;  %v9874_v48 = vrot.slane %v5134_v56, 1  ;;  %v10166_v62 = vrot.slane %v4463_v63, 1  ;;  %v365_v63 = vld [vmem:[%s9796_s0 + $0x528] sm:$0xff] }
  0x7d   :  { %v5171_v40 = vadd.f32 %v2036_v15, %v538_v6  ;;  %v9877_v24 = vrot.slane %v5158_v0, 4  ;;  %v9876_v34 = vrot.slane %v5151_v41, 1  ;;  %v9875_v45 = vrot.slane %v5169_v44, 1 }
  0x7e   :  { %v802_v19 = vsel %vm764_vm0, %v10166_v62, %v9872_v37  ;;  %v10167_v15 = vrot.slane %v4417_v61, 2  ;;  %v5199_v62 = vld [vmem:[%s9796_s0 + $0x1d0] sm:$0xff]  ;;  %v10168_v37 = vrot.slane %v4357_v54, 4  ;;  %v5222_v54 = vld [vmem:[%s9796_s0 + $0x440] sm:$0xff] }
  0x7f   :  { %v1020_v52 = vadd.f32 %v802_v19, %v23_v46  ;;  %v10169_v46 = vrot.slane %v4500_v43, 1 }
  0x80   :  { %v2433_v13 = vsel %vm2397_vm1, %v10167_v15, %v9873_v57  ;;  %v3248_v61 = vsel %vm3214_vm2, %v10168_v37, %v9877_v24  ;;  %v539_v15 = vld [vmem:[%s9796_s0 + $0x798] sm:$0xff]  ;;  %v10170_v57 = vrot.slane %v4540_v29, 1  ;;  %v10172_v37 = vrot.slane %v5171_v40, 2 }
  0x81   :  { %v2652_v6 = vadd.f32 %v2433_v13, %v1019_v60  ;;  %v1222_v19 = vsel %vm764_vm0, %v10169_v46, %v9874_v48  ;;  %v10171_v13 = vrot.slane %v4275_v25, 1  ;;  %v3468_v43 = vadd.f32 %v3248_v61, %v2651_v12  ;;  %v5244_v25 = vld [vmem:[%s9796_s0 + $0x8f0] sm:$0xff] }
  0x82   :  { %v1630_v1 = vsel %vm764_vm0, %v10170_v57, %v9876_v34  ;;  %v10173_v46 = vrot.slane %v4458_v17, 2  ;;  %v5234_v48 = vadd.f32 %v1222_v19, %v197_v28  ;;  %v5239_v57 = vld [vmem:[%s9796_s0 + $0x680] sm:$0xff]  ;;  %10174 = vst [vmem:[#allocation12_spill] sm:$0xff] %v5244_v25  ;;  %v10175_v28 = vrot.slane %v5156_v58, 1 }
  0x83   :  { %v3726_v60 = vsel %vm764_vm0, %v10171_v13, %v9875_v45  ;;  %v1842_v17 = vadd.f32 %v1630_v1, %v365_v63  ;;  %v10176_v61 = vrot.slane %v4564_v14, 1  ;;  %v24_v13 = vld [vmem:[%s9796_s0 + $0x80] sm:$0xff]  ;;  %v9880_v1 = vrot.slane %v5222_v54, 1  ;;  %v198_v14 = vld [vmem:[%s9796_s0 + $0x2f0] sm:$0xff] }
  0x84   :  { %v2853_v29 = vsel %vm2397_vm1, %v10173_v46, %v10172_v37  ;;  %3953 = vst [vmem:[%s9797_s1 + $0x30] sm:$0xff] %v3726_v60  ;;  %v9878_v37 = vrot.slane %v5199_v62, 1  ;;  %v5260_v46 = vmul.f32 0.125, %v3468_v43  ;;  %v10178_v60 = vrot.slane %v4618_v5, 1  ;;  %v366_v5 = vld [vmem:[%s9796_s0 + $0x530] sm:$0xff] }
  0x85   :  { %v5249_v12 = vadd.f32 %v2853_v29, %v1841_v9  ;;  %v2038_v19 = vsel %vm764_vm0, %v10176_v61, %v10175_v28  ;;  %v9879_v9 = vrot.slane %v5234_v48, 2  ;;  %v9882_v43 = vrot.slane %v5239_v57, 1 }
  0x86   :  { %v5262_v45 = vadd.f32 %v2038_v19, %v539_v15  ;;  %v804_v29 = vsel %vm764_vm0, %v10178_v60, %v9878_v37  ;;  %v9881_v28 = vrot.slane %v5260_v46, 1  ;;  %v10179_v61 = vrot.slane %v4566_v27, 2  ;;  %v5290_v60 = vld [vmem:[%s9796_s0 + $0x1d8] sm:$0xff] }
  0x87   :  { %v9883_v63 = vrot.slane %v5249_v12, 4  ;;  %v1021_v24 = vadd.f32 %v804_v29, %v24_v13  ;;  %10180 = vst [vmem:[#allocation14_spill] sm:$0xff] %v5290_v60  ;;  %v10181_v37 = vrot.slane %v4506_v26, 4  ;;  %v10182_v13 = vrot.slane %v4645_v55, 1  ;;  %v5313_v26 = vld [vmem:[%s9796_s0 + $0x448] sm:$0xff] }
  0x88   :  { %10177 = vst [vmem:[#allocation13_spill] sm:$0xff] %v5262_v45  ;;  %v2435_v19 = vsel %vm2397_vm1, %v10179_v61, %v9879_v9  ;;  %v540_v61 = vld [vmem:[%s9796_s0 + $0x7a0] sm:$0xff]  ;;  %v10183_v9 = vrot.slane %v4683_v16, 1  ;;  %10184 = vst [vmem:[#allocation15_spill] sm:$0xff] %v5313_v26 }
  0x89   :  { %v3250_v27 = vsel %vm3214_vm2, %v10181_v37, %v9883_v63  ;;  %v2653_v15 = vadd.f32 %v2435_v19, %v1020_v52  ;;  %v1224_v29 = vsel %vm764_vm0, %v10182_v13, %v9880_v1  ;;  %v10185_v52 = vrot.slane %v4428_v30, 1  ;;  %v5335_v30 = vld [vmem:[%s9796_s0 + $0x8f8] sm:$0xff] }
  0x8a   :  { %v1632_v34 = vsel %vm764_vm0, %v10183_v9, %v9882_v43  ;;  %v3469_v55 = vadd.f32 %v3250_v27, %v2652_v6  ;;  %v10186_v19 = vrot.slane %v5262_v45, 2  ;;  %v10187_v13 = vrot.slane %v4607_v51, 2  ;;  %v5330_v9 = vld [vmem:[%s9796_s0 + $0x688] sm:$0xff]  ;;  %v10192_v27 = vld [vmem:[#allocation6_spill] sm:$0xff] }
  0x8b   :  { %v3728_v37 = vsel %vm764_vm0, %v10185_v52, %v9881_v28  ;;  %v5325_v1 = vadd.f32 %v1224_v29, %v198_v14  ;;  %10189 = vst [vmem:[#allocation17_spill] sm:$0xff] %v5330_v9  ;;  %v1843_v51 = vadd.f32 %v1632_v34, %v366_v5  ;;  %v10191_v14 = vrot.slane %v5244_v25, 1  ;;  %v10202_v5 = vld [vmem:[#allocation9_spill] sm:$0xff]  ;;  %v10205_v25 = vld [vmem:[#allocation11_spill] sm:$0xff] }
  0x8c   :  { %v2855_v16 = vsel %vm2397_vm1, %v10187_v13, %v10186_v19  ;;  %3954 = vst [vmem:[%s9797_s1 + $0x38] sm:$0xff] %v3728_v37  ;;  %v10193_v29 = vrot.slane %v10192_v27, 1  ;;  %v25_v19 = vld [vmem:[%s9796_s0 + $0x88] sm:$0xff]  ;;  %v9885_v13 = vrot.slane %v5290_v60, 1  ;;  %v5351_v28 = vmul.f32 0.125, %v3469_v55  ;;  %v199_v37 = vld [vmem:[%s9796_s0 + $0x2f8] sm:$0xff] }
  0x8d   :  { %10188 = vst [vmem:[#allocation16_spill] sm:$0xff] %v5325_v1  ;;  %v5340_v6 = vadd.f32 %v2855_v16, %v1842_v17  ;;  %v9886_v17 = vrot.slane %v5325_v1, 2  ;;  %v10194_v16 = vld [vmem:[#allocation7_spill] sm:$0xff]  ;;  %v10204_v1 = vrot.slane %v5330_v9, 1  ;;  %v10206_v45 = vrot.slane %v10205_v25, 1 }
  0x8e   :  { %v2040_v52 = vsel %vm764_vm0, %v10193_v29, %v10191_v14  ;;  %v10195_v14 = vrot.slane %v10194_v16, 1  ;;  %v367_v16 = vld [vmem:[%s9796_s0 + $0x538] sm:$0xff] }
  0x8f   :  { %10190 = vst [vmem:[#allocation18_spill] sm:$0xff] %v5340_v6  ;;  %v5353_v43 = vadd.f32 %v2040_v52, %v540_v61  ;;  %v10196_v52 = vld [vmem:[#allocation4_spill] sm:$0xff]  ;;  %v10199_v61 = vld [vmem:[#allocation3_spill] sm:$0xff] }
  0x90   :  { %v806_v27 = vsel %vm764_vm0, %v10195_v14, %v9885_v13  ;;  %v10197_v63 = vrot.slane %v10196_v52, 2  ;;  %v5381_v14 = vld [vmem:[%s9796_s0 + $0x1e0] sm:$0xff]  ;;  %v10198_v13 = vrot.slane %v5340_v6, 4  ;;  %v10200_v29 = vrot.slane %v10199_v61, 4 }
  0x91   :  { %v1022_v60 = vadd.f32 %v806_v27, %v25_v19  ;;  %v10203_v19 = vrot.slane %v10202_v5, 1  ;;  %v1634_v6 = vsel %vm764_vm0, %v10206_v45, %v10204_v1  ;;  %v5421_v45 = vld [vmem:[%s9796_s0 + $0x690] sm:$0xff]  ;;  %v5426_v1 = vld [vmem:[%s9796_s0 + $0x900] sm:$0xff] }
  0x92   :  { %v2437_v34 = vsel %vm2397_vm1, %v10197_v63, %v9886_v17  ;;  %v3252_v52 = vsel %vm3214_vm2, %v10200_v29, %v10198_v13  ;;  %v541_v63 = vld [vmem:[%s9796_s0 + $0x7a8] sm:$0xff]  ;;  %v10201_v17 = vrot.slane %v5313_v26, 1  ;;  %v10207_v13 = vrot.slane %v5351_v28, 1  ;;  %10213 = vst [vmem:[#allocation6_spill] sm:$0xff] %v5421_v45 }
  0x93   :  { %v2654_v55 = vadd.f32 %v2437_v34, %v1021_v24  ;;  %v5404_v24 = vld [vmem:[%s9796_s0 + $0x450] sm:$0xff]  ;;  %v10208_v34 = vld [vmem:[#allocation2_spill] sm:$0xff]  ;;  %v3470_v5 = vadd.f32 %v3252_v52, %v2653_v15  ;;  %v1844_v52 = vadd.f32 %v1634_v6, %v367_v16 }
  0x94   :  { %v1226_v27 = vsel %vm764_vm0, %v10203_v19, %v10201_v17  ;;  %v10209_v61 = vrot.slane %v10208_v34, 1  ;;  %v10210_v17 = vrot.slane %v5353_v43, 2  ;;  %v10211_v19 = vld [vmem:[#allocation8_spill] sm:$0xff]  ;;  %v9893_v34 = vrot.slane %v5381_v14, 1 }
  0x95   :  { %v10212_v9 = vrot.slane %v10211_v19, 2  ;;  %v5416_v26 = vadd.f32 %v1226_v27, %v199_v37  ;;  %v10216_v37 = vrot.slane %v4868_v39, 1  ;;  %v200_v39 = vld [vmem:[%s9796_s0 + $0x300] sm:$0xff] }
  0x96   :  { %v3730_v29 = vsel %vm764_vm0, %v10209_v61, %v10207_v13  ;;  %v26_v13 = vld [vmem:[%s9796_s0 + $0x90] sm:$0xff]  ;;  %v5442_v61 = vmul.f32 0.125, %v3470_v5  ;;  %v9898_v5 = vrot.slane %v5421_v45, 1 }
  0x97   :  { %v2857_v25 = vsel %vm2397_vm1, %v10212_v9, %v10210_v17  ;;  %3955 = vst [vmem:[%s9797_s1 + $0x40] sm:$0xff] %v3730_v29  ;;  %v10215_v9 = vrot.slane %v5335_v30, 1  ;;  %v10217_v29 = vrot.slane %v4895_v32, 1  ;;  %v368_v32 = vld [vmem:[%s9796_s0 + $0x540] sm:$0xff] }
  0x98   :  { %v5431_v15 = vadd.f32 %v2857_v25, %v1843_v51  ;;  %v9894_v51 = vrot.slane %v5416_v26, 2 }
  0x99   :  { %v2042_v27 = vsel %vm764_vm0, %v10216_v37, %v10215_v9  ;;  %v808_v19 = vsel %vm764_vm0, %v10217_v29, %v9893_v34  ;;  %v10218_v9 = vrot.slane %v4856_v53, 2  ;;  %v5472_v29 = vld [vmem:[%s9796_s0 + $0x1e8] sm:$0xff]  ;;  %v10219_v34 = vld [vmem:[#allocation10_spill] sm:$0xff] }
  0x9a   :  { %10214 = vst [vmem:[#allocation7_spill] sm:$0xff] %v5431_v15  ;;  %v5444_v17 = vadd.f32 %v2042_v27, %v541_v63  ;;  %v9896_v16 = vrot.slane %v5431_v15, 4  ;;  %v1023_v6 = vadd.f32 %v808_v19, %v26_v13  ;;  %v10220_v63 = vrot.slane %v10219_v34, 4 }
  0x9b   :  { %v2439_v37 = vsel %vm2397_vm1, %v10218_v9, %v9894_v51  ;;  %v542_v9 = vld [vmem:[%s9796_s0 + $0x7b0] sm:$0xff]  ;;  %v10221_v51 = vrot.slane %v5404_v24, 1  ;;  %v10222_v13 = vrot.slane %v4914_v49, 1  ;;  %v10223_v27 = vrot.slane %v4929_v42, 1 }
  0x9c   :  { %v3254_v53 = vsel %vm3214_vm2, %v10220_v63, %v9896_v16  ;;  %v2655_v25 = vadd.f32 %v2439_v37, %v1022_v60  ;;  %v5495_v60 = vld [vmem:[%s9796_s0 + $0x458] sm:$0xff]  ;;  %v10224_v34 = vrot.slane %v5442_v61, 1 }
  0x9d   :  { %v1228_v19 = vsel %vm764_vm0, %v10222_v13, %v10221_v51  ;;  %v1636_v15 = vsel %vm764_vm0, %v10223_v27, %v9898_v5  ;;  %v10225_v63 = vld [vmem:[#allocation5_spill] sm:$0xff]  ;;  %v3471_v49 = vadd.f32 %v3254_v53, %v2654_v55  ;;  %v10227_v51 = vrot.slane %v5444_v17, 2 }
  0x9e   :  { %v10226_v37 = vrot.slane %v10225_v63, 1  ;;  %v10228_v13 = vrot.slane %v4901_v33, 2  ;;  %v5507_v45 = vadd.f32 %v1228_v19, %v200_v39  ;;  %v5512_v27 = vld [vmem:[%s9796_s0 + $0x698] sm:$0xff]  ;;  %v5517_v63 = vld [vmem:[%s9796_s0 + $0x908] sm:$0xff]  ;;  %v1845_v33 = vadd.f32 %v1636_v15, %v368_v32 }
  0x9f   :  { %v10229_v39 = vrot.slane %v5426_v1, 1  ;;  %v10230_v53 = vrot.slane %v4934_v18, 1  ;;  %v201_v18 = vld [vmem:[%s9796_s0 + $0x308] sm:$0xff]  ;;  %v10231_v32 = vrot.slane %v4946_v50, 1  ;;  %v10236_v5 = vrot.slane %v4996_v59, 1 }
  0xa0   :  { %v3732_v16 = vsel %vm764_vm0, %v10226_v37, %v10224_v34  ;;  %v2859_v42 = vsel %vm2397_vm1, %v10228_v13, %v10227_v51  ;;  %v27_v34 = vld [vmem:[%s9796_s0 + $0x98] sm:$0xff]  ;;  %v9899_v37 = vrot.slane %v5472_v29, 1  ;;  %v5533_v51 = vmul.f32 0.125, %v3471_v49  ;;  %v369_v50 = vld [vmem:[%s9796_s0 + $0x548] sm:$0xff] }
  0xa1   :  { %3956 = vst [vmem:[%s9797_s1 + $0x48] sm:$0xff] %v3732_v16  ;;  %v5522_v55 = vadd.f32 %v2859_v42, %v1844_v52  ;;  %v2044_v19 = vsel %vm764_vm0, %v10230_v53, %v10229_v39  ;;  %v9900_v52 = vrot.slane %v5507_v45, 2  ;;  %v9902_v49 = vrot.slane %v5512_v27, 1 }
  0xa2   :  { %v5535_v13 = vadd.f32 %v2044_v19, %v542_v9  ;;  %v810_v42 = vsel %vm764_vm0, %v10231_v32, %v9899_v37  ;;  %v10232_v53 = vrot.slane %v4981_v4, 2  ;;  %v5563_v32 = vld [vmem:[%s9796_s0 + $0x1f0] sm:$0xff]  ;;  %v10233_v37 = vrot.slane %v4960_v21, 4  ;;  %v5586_v21 = vld [vmem:[%s9796_s0 + $0x460] sm:$0xff] }
  0xa3   :  { %v9901_v16 = vrot.slane %v5522_v55, 4  ;;  %v1024_v15 = vadd.f32 %v810_v42, %v27_v34  ;;  %v10235_v34 = vrot.slane %v4951_v8, 1  ;;  %v1638_v39 = vsel %vm764_vm0, %v10236_v5, %v9902_v49  ;;  %v5603_v5 = vld [vmem:[%s9796_s0 + $0x6a0] sm:$0xff] }
  0xa4   :  { %v2441_v19 = vsel %vm2397_vm1, %v10232_v53, %v9900_v52  ;;  %v543_v53 = vld [vmem:[%s9796_s0 + $0x7b8] sm:$0xff]  ;;  %v10234_v52 = vrot.slane %v5495_v60, 1  ;;  %v10248_v49 = vrot.slane %v5064_v31, 1 }
  0xa5   :  { %v3256_v4 = vsel %vm3214_vm2, %v10233_v37, %v9901_v16  ;;  %v2656_v9 = vadd.f32 %v2441_v19, %v1023_v6  ;;  %v10237_v6 = vrot.slane %v5533_v51, 1  ;;  %v10238_v37 = vrot.slane %v4884_v36, 1  ;;  %v5608_v36 = vld [vmem:[%s9796_s0 + $0x910] sm:$0xff] }
  0xa6   :  { %v1230_v42 = vsel %vm764_vm0, %v10235_v34, %v10234_v52  ;;  %v3472_v8 = vadd.f32 %v3256_v4, %v2655_v25  ;;  %v10239_v52 = vrot.slane %v5535_v13, 2  ;;  %v10240_v34 = vrot.slane %v4999_v23, 2 }
  0xa7   :  { %v3734_v19 = vsel %vm764_vm0, %v10238_v37, %v10237_v6  ;;  %v5598_v16 = vadd.f32 %v1230_v42, %v201_v18  ;;  %v1846_v23 = vadd.f32 %v1638_v39, %v369_v50  ;;  %v10241_v18 = vrot.slane %v5517_v63, 1  ;;  %v28_v6 = vld [vmem:[%s9796_s0 + $0xa0] sm:$0xff] }
  0xa8   :  { %v2861_v59 = vsel %vm2397_vm1, %v10240_v34, %v10239_v52  ;;  %3957 = vst [vmem:[%s9797_s1 + $0x50] sm:$0xff] %v3734_v19  ;;  %v10242_v4 = vrot.slane %v5007_v38, 1  ;;  %v9903_v37 = vrot.slane %v5563_v32, 1  ;;  %v5624_v52 = vmul.f32 0.125, %v3472_v8  ;;  %v202_v38 = vld [vmem:[%s9796_s0 + $0x310] sm:$0xff] }
  0xa9   :  { %v5613_v25 = vadd.f32 %v2861_v59, %v1845_v33  ;;  %v9904_v33 = vrot.slane %v5598_v16, 2  ;;  %v10243_v19 = vrot.slane %v5042_v35, 1  ;;  %v9906_v8 = vrot.slane %v5603_v5, 1  ;;  %v370_v35 = vld [vmem:[%s9796_s0 + $0x550] sm:$0xff] }
  0xaa   :  { %v2046_v42 = vsel %vm764_vm0, %v10242_v4, %v10241_v18  ;;  %v10244_v4 = vrot.slane %v5036_v2, 2 }
  0xab   :  { %v5626_v34 = vadd.f32 %v2046_v42, %v543_v53  ;;  %v9905_v50 = vrot.slane %v5613_v25, 4  ;;  %v812_v59 = vsel %vm764_vm0, %v10243_v19, %v9903_v37  ;;  %v5654_v19 = vld [vmem:[%s9796_s0 + $0x1f8] sm:$0xff]  ;;  %v10245_v37 = vrot.slane %v5071_v47, 4  ;;  %v5677_v47 = vld [vmem:[%s9796_s0 + $0x468] sm:$0xff] }
  0xac   :  { %v2443_v42 = vsel %vm2397_vm1, %v10244_v4, %v9904_v33  ;;  %v1025_v39 = vadd.f32 %v812_v59, %v28_v6  ;;  %v544_v4 = vld [vmem:[%s9796_s0 + $0x7c0] sm:$0xff]  ;;  %v10246_v33 = vrot.slane %v5586_v21, 1  ;;  %v10247_v6 = vrot.slane %v5059_v22, 1 }
  0xad   :  { %v3258_v2 = vsel %vm3214_vm2, %v10245_v37, %v9905_v50  ;;  %v2657_v53 = vadd.f32 %v2443_v42, %v1024_v15  ;;  %v1640_v18 = vsel %vm764_vm0, %v10248_v49, %v9906_v8  ;;  %v10249_v15 = vrot.slane %v5624_v52, 1  ;;  %v5694_v49 = vld [vmem:[%s9796_s0 + $0x6a8] sm:$0xff] }
  0xae   :  { %v1232_v59 = vsel %vm764_vm0, %v10247_v6, %v10246_v33  ;;  %v10250_v37 = vrot.slane %v5044_v11, 1  ;;  %v3473_v22 = vadd.f32 %v3258_v2, %v2656_v9  ;;  %v10251_v33 = vrot.slane %v5626_v34, 2  ;;  %v5699_v11 = vld [vmem:[%s9796_s0 + $0x918] sm:$0xff] }
  0xaf   :  { %v10252_v6 = vrot.slane %v5079_v7, 2  ;;  %v5689_v50 = vadd.f32 %v1232_v59, %v202_v38  ;;  %v1847_v7 = vadd.f32 %v1640_v18, %v370_v35  ;;  %v10253_v38 = vrot.slane %v5608_v36, 1 }
  0xb0   :  { %v3736_v42 = vsel %vm764_vm0, %v10250_v37, %v10249_v15  ;;  %v10254_v2 = vrot.slane %v5069_v3, 1  ;;  %v29_v15 = vld [vmem:[%s9796_s0 + $0xa8] sm:$0xff]  ;;  %v9907_v37 = vrot.slane %v5654_v19, 1  ;;  %v203_v3 = vld [vmem:[%s9796_s0 + $0x318] sm:$0xff]  ;;  %v10260_v8 = vrot.slane %v5151_v41, 1 }
  0xb1   :  { %v2863_v31 = vsel %vm2397_vm1, %v10252_v6, %v10251_v33  ;;  %3958 = vst [vmem:[%s9797_s1 + $0x58] sm:$0xff] %v3736_v42  ;;  %v5715_v33 = vmul.f32 0.125, %v3473_v22  ;;  %v10255_v42 = vrot.slane %v5113_v10, 1  ;;  %v9910_v22 = vrot.slane %v5694_v49, 1  ;;  %v371_v10 = vld [vmem:[%s9796_s0 + $0x558] sm:$0xff] }
  0xb2   :  { %v5704_v9 = vadd.f32 %v2863_v31, %v1846_v23  ;;  %v2048_v59 = vsel %vm764_vm0, %v10254_v2, %v10253_v38  ;;  %v9908_v23 = vrot.slane %v5689_v50, 2  ;;  %v10256_v2 = vrot.slane %v5141_v20, 2 }
  0xb3   :  { %v5717_v6 = vadd.f32 %v2048_v59, %v544_v4  ;;  %v814_v31 = vsel %vm764_vm0, %v10255_v42, %v9907_v37  ;;  %v5745_v42 = vld [vmem:[%s9796_s0 + $0x200] sm:$0xff]  ;;  %v10257_v37 = vrot.slane %v5158_v0, 4  ;;  %v1642_v38 = vsel %vm764_vm0, %v10260_v8, %v9910_v22  ;;  %v5768_v0 = vld [vmem:[%s9796_s0 + $0x470] sm:$0xff] }
  0xb4   :  { %v9909_v35 = vrot.slane %v5704_v9, 4  ;;  %v2445_v59 = vsel %vm2397_vm1, %v10256_v2, %v9908_v23  ;;  %v1026_v18 = vadd.f32 %v814_v31, %v29_v15  ;;  %v545_v2 = vld [vmem:[%s9796_s0 + $0x7c8] sm:$0xff]  ;;  %v10258_v23 = vrot.slane %v5677_v47, 1  ;;  %v5785_v8 = vld [vmem:[%s9796_s0 + $0x6b0] sm:$0xff] }
  0xb5   :  { %v2658_v4 = vadd.f32 %v2445_v59, %v1025_v39  ;;  %v10259_v15 = vrot.slane %v5134_v56, 1  ;;  %v10261_v39 = vrot.slane %v5715_v33, 1  ;;  %10265 = vst [vmem:[#allocation4_spill] sm:$0xff] %v5785_v8  ;;  %v10277_v22 = vrot.slane %v5239_v57, 1 }
  0xb6   :  { %v3260_v20 = vsel %vm3214_vm2, %v10257_v37, %v9909_v35  ;;  %v10262_v37 = vrot.slane %v5169_v44, 1  ;;  %v5790_v44 = vld [vmem:[%s9796_s0 + $0x920] sm:$0xff] }
  0xb7   :  { %v1234_v31 = vsel %vm764_vm0, %v10259_v15, %v10258_v23  ;;  %v3474_v56 = vadd.f32 %v3260_v20, %v2657_v53  ;;  %v10263_v23 = vrot.slane %v5717_v6, 2  ;;  %v10264_v15 = vrot.slane %v5171_v40, 2  ;;  %10266 = vst [vmem:[#allocation3_spill] sm:$0xff] %v5790_v44 }
  0xb8   :  { %v3738_v59 = vsel %vm764_vm0, %v10262_v37, %v10261_v39  ;;  %v5780_v35 = vadd.f32 %v1234_v31, %v203_v3  ;;  %v1848_v40 = vadd.f32 %v1642_v38, %v371_v10  ;;  %v10267_v3 = vrot.slane %v5699_v11, 1  ;;  %v30_v39 = vld [vmem:[%s9796_s0 + $0xb0] sm:$0xff] }
  0xb9   :  { %v2865_v41 = vsel %vm2397_vm1, %v10264_v15, %v10263_v23  ;;  %3959 = vst [vmem:[%s9797_s1 + $0x60] sm:$0xff] %v3738_v59  ;;  %v10268_v20 = vrot.slane %v5156_v58, 1  ;;  %v9911_v37 = vrot.slane %v5745_v42, 1  ;;  %v5806_v23 = vmul.f32 0.125, %v3474_v56  ;;  %v204_v58 = vld [vmem:[%s9796_s0 + $0x320] sm:$0xff] }
  0xba   :  { %v5795_v53 = vadd.f32 %v2865_v41, %v1847_v7  ;;  %v9912_v7 = vrot.slane %v5780_v35, 2  ;;  %v10271_v59 = vrot.slane %v5199_v62, 1  ;;  %v9915_v56 = vrot.slane %v5785_v8, 1  ;;  %v372_v62 = vld [vmem:[%s9796_s0 + $0x560] sm:$0xff] }
  0xbb   :  { %v2050_v31 = vsel %vm764_vm0, %v10268_v20, %v10267_v3  ;;  %10269 = vst [vmem:[#allocation9_spill] sm:$0xff] %v5806_v23  ;;  %v10272_v20 = vrot.slane %v5234_v48, 2 }
  0xbc   :  { %v5808_v15 = vadd.f32 %v2050_v31, %v545_v2  ;;  %v9913_v10 = vrot.slane %v5795_v53, 4  ;;  %v816_v41 = vsel %vm764_vm0, %v10271_v59, %v9911_v37  ;;  %v5836_v59 = vld [vmem:[%s9796_s0 + $0x208] sm:$0xff]  ;;  %v10274_v37 = vrot.slane %v5249_v12, 4  ;;  %v5859_v12 = vld [vmem:[%s9796_s0 + $0x478] sm:$0xff] }
  0xbd   :  { %v2447_v31 = vsel %vm2397_vm1, %v10272_v20, %v9912_v7  ;;  %v1027_v38 = vadd.f32 %v816_v41, %v30_v39  ;;  %10273 = vst [vmem:[#allocation2_spill] sm:$0xff] %v5836_v59  ;;  %v546_v20 = vld [vmem:[%s9796_s0 + $0x7d0] sm:$0xff]  ;;  %v10275_v7 = vrot.slane %v5768_v0, 1  ;;  %v10276_v39 = vrot.slane %v5222_v54, 1 }
  0xbe   :  { %10270 = vst [vmem:[#allocation11_spill] sm:$0xff] %v5808_v15  ;;  %v3262_v48 = vsel %vm3214_vm2, %v10274_v37, %v9913_v10  ;;  %v2659_v2 = vadd.f32 %v2447_v31, %v1026_v18  ;;  %v1644_v3 = vsel %vm764_vm0, %v10277_v22, %v9915_v56  ;;  %v10278_v18 = vrot.slane %v5806_v23, 1  ;;  %v5876_v22 = vld [vmem:[%s9796_s0 + $0x6b8] sm:$0xff] }
  0xbf   :  { %v1236_v41 = vsel %vm764_vm0, %v10276_v39, %v10275_v7  ;;  %v10279_v37 = vrot.slane %v5260_v46, 1  ;;  %v3475_v54 = vadd.f32 %v3262_v48, %v2658_v4  ;;  %v10280_v7 = vrot.slane %v5808_v15, 2  ;;  %v10281_v39 = vld [vmem:[#allocation13_spill] sm:$0xff]  ;;  %v5881_v46 = vld [vmem:[%s9796_s0 + $0x928] sm:$0xff] }
  0xc0   :  { %v10282_v10 = vrot.slane %v10281_v39, 2  ;;  %v5871_v8 = vadd.f32 %v1236_v41, %v204_v58  ;;  %v1849_v48 = vadd.f32 %v1644_v3, %v372_v62  ;;  %v10286_v58 = vld [vmem:[#allocation12_spill] sm:$0xff]  ;;  %v10299_v15 = vld [vmem:[#allocation17_spill] sm:$0xff] }
  0xc1   :  { %v3740_v31 = vsel %vm764_vm0, %v10279_v37, %v10278_v18  ;;  %v10287_v41 = vrot.slane %v10286_v58, 1  ;;  %v31_v37 = vld [vmem:[%s9796_s0 + $0xb8] sm:$0xff]  ;;  %v5897_v39 = vmul.f32 0.125, %v3475_v54  ;;  %v10300_v23 = vrot.slane %v10299_v15, 1 }
  0xc2   :  { %v2867_v57 = vsel %vm2397_vm1, %v10282_v10, %v10280_v7  ;;  %10283 = vst [vmem:[#allocation8_spill] sm:$0xff] %v5871_v8  ;;  %3960 = vst [vmem:[%s9797_s1 + $0x68] sm:$0xff] %v3740_v31  ;;  %v10285_v10 = vrot.slane %v5790_v44, 1  ;;  %v9918_v7 = vrot.slane %v5836_v59, 1  ;;  %v205_v31 = vld [vmem:[%s9796_s0 + $0x328] sm:$0xff] }
  0xc3   :  { %v5886_v4 = vadd.f32 %v2867_v57, %v1848_v40  ;;  %v9919_v40 = vrot.slane %v5871_v8, 2  ;;  %v10288_v57 = vld [vmem:[#allocation14_spill] sm:$0xff]  ;;  %v10296_v44 = vld [vmem:[#allocation15_spill] sm:$0xff]  ;;  %v10298_v8 = vrot.slane %v5876_v22, 1 }
  0xc4   :  { %v2052_v18 = vsel %vm764_vm0, %v10287_v41, %v10285_v10  ;;  %v10289_v10 = vrot.slane %v10288_v57, 1  ;;  %v373_v57 = vld [vmem:[%s9796_s0 + $0x568] sm:$0xff] }
  0xc5   :  { %10284 = vst [vmem:[#allocation10_spill] sm:$0xff] %v5886_v4  ;;  %v5899_v56 = vadd.f32 %v2052_v18, %v546_v20  ;;  %v10290_v18 = vld [vmem:[#allocation16_spill] sm:$0xff]  ;;  %v10293_v20 = vld [vmem:[#allocation18_spill] sm:$0xff] }
  0xc6   :  { %v818_v58 = vsel %vm764_vm0, %v10289_v10, %v9918_v7  ;;  %v10291_v3 = vrot.slane %v10290_v18, 2  ;;  %v5927_v10 = vld [vmem:[%s9796_s0 + $0x210] sm:$0xff]  ;;  %v10292_v7 = vrot.slane %v5886_v4, 4  ;;  %v10294_v41 = vrot.slane %v10293_v20, 4 }
  0xc7   :  { %v1028_v59 = vadd.f32 %v818_v58, %v31_v37  ;;  %v10297_v37 = vrot.slane %v10296_v44, 1  ;;  %v1646_v4 = vsel %vm764_vm0, %v10300_v23, %v10298_v8  ;;  %v5967_v8 = vld [vmem:[%s9796_s0 + $0x6c0] sm:$0x7f] }
  0xc8   :  { %v2449_v62 = vsel %vm2397_vm1, %v10291_v3, %v9919_v40  ;;  %v3264_v18 = vsel %vm3214_vm2, %v10294_v41, %v10292_v7  ;;  %v547_v3 = vld [vmem:[%s9796_s0 + $0x7d8] sm:$0xff]  ;;  %v10295_v40 = vrot.slane %v5859_v12, 1  ;;  %v10301_v7 = vrot.slane %v5897_v39, 1 }
  0xc9   :  { %v2660_v54 = vadd.f32 %v2449_v62, %v1027_v38  ;;  %v5950_v38 = vld [vmem:[%s9796_s0 + $0x480] sm:$0x1f]  ;;  %v10302_v62 = vrot.slane %v5351_v28, 1  ;;  %v3476_v44 = vadd.f32 %v3264_v18, %v2659_v2  ;;  %v10304_v41 = vrot.slane %v5353_v43, 2  ;;  %v632_v28 = vld [vmem:[%s9796_s0 + $0x930] sm:$0x1] }
  0xca   :  { %v1238_v58 = vsel %vm764_vm0, %v10297_v37, %v10295_v40  ;;  %v10303_v40 = vrot.slane %v5899_v56, 2  ;;  %v1850_v43 = vadd.f32 %v1646_v4, %v373_v57  ;;  %v10307_v2 = vrot.slane %v5881_v46, 1  ;;  %v374_v4 = vld [vmem:[%s9796_s0 + $0x570] sm:$0xff] }
  0xcb   :  { %v3742_v20 = vsel %vm764_vm0, %v10302_v62, %v10301_v7  ;;  %v5962_v37 = vadd.f32 %v1238_v58, %v205_v31  ;;  %v10308_v31 = vrot.slane %v5335_v30, 1  ;;  %v32_v58 = vld [vmem:[%s9796_s0 + $0xc0] sm:$0xff]  ;;  %v9924_v7 = vrot.slane %v5927_v10, 1  ;;  %v206_v30 = vld [vmem:[%s9796_s0 + $0x330] sm:$0xff] }
  0xcc   :  { %v2869_v15 = vsel %vm2397_vm1, %v10304_v41, %v10303_v40  ;;  %3961 = vst [vmem:[%s9797_s1 + $0x70] sm:$0xff] %v3742_v20  ;;  %v5986_v62 = vmul.f32 0.125, %v3476_v44  ;;  %v10309_v20 = vrot.slane %v5381_v14, 1  ;;  %v9929_v44 = vrot.slane %v5967_v8, 1 }
  0xcd   :  { %10305 = vst [vmem:[#allocation5_spill] sm:$0xff] %v5962_v37  ;;  %v5975_v23 = vadd.f32 %v2869_v15, %v1849_v48  ;;  %v2054_v18 = vsel %vm764_vm0, %v10308_v31, %v10307_v2  ;;  %v9925_v48 = vrot.slane %v5962_v37, 2  ;;  %v10310_v2 = vrot.slane %v5416_v26, 2 }
  0xce   :  { %v5988_v40 = vadd.f32 %v2054_v18, %v547_v3  ;;  %v820_v41 = vsel %vm764_vm0, %v10309_v20, %v9924_v7  ;;  %v2055_v3 = vrot.slane %v632_v28, 1  ;;  %v6015_v20 = vld [vmem:[%s9796_s0 + $0x218] sm:$0xff]  ;;  %v10311_v28 = vld [vmem:[#allocation7_spill] sm:$0xff]  ;;  %v10315_v18 = vld [vmem:[#allocation6_spill] sm:$0xff] }
  0xcf   :  { %10306 = vst [vmem:[#allocation13_spill] sm:$0xff] %v5975_v23  ;;  %v9928_v57 = vrot.slane %v5975_v23, 4  ;;  %v2451_v31 = vsel %vm2397_vm1, %v10310_v2, %v9925_v48  ;;  %v1029_v14 = vadd.f32 %v820_v41, %v32_v58  ;;  %v10312_v7 = vrot.slane %v10311_v28, 4  ;;  %v548_v2 = vld [vmem:[%s9796_s0 + $0x7e0] sm:$0xff] }
  0xd0   :  { %v2661_v15 = vadd.f32 %v2451_v31, %v1028_v59  ;;  %v10313_v48 = vrot.slane %v5950_v38, 1  ;;  %v10314_v58 = vrot.slane %v5404_v24, 1  ;;  %v10316_v37 = vrot.slane %v10315_v18, 1  ;;  %v6038_v59 = vld [vmem:[%s9796_s0 + $0x488] sm:$0x1f] }
  0xd1   :  { %v3266_v26 = vsel %vm3214_vm2, %v10312_v7, %v9928_v57  ;;  %v10317_v7 = vrot.slane %v5986_v62, 1  ;;  %v10318_v31 = vrot.slane %v5442_v61, 1  ;;  %v633_v61 = vld [vmem:[%s9796_s0 + $0x938] sm:$0x1] }
  0xd2   :  { %v1240_v41 = vsel %vm764_vm0, %v10314_v58, %v10313_v48  ;;  %v1648_v23 = vsel %vm764_vm0, %v10316_v37, %v9929_v44  ;;  %v3477_v24 = vadd.f32 %v3266_v26, %v2660_v54  ;;  %v10319_v48 = vrot.slane %v5988_v40, 2  ;;  %v6055_v37 = vld [vmem:[%s9796_s0 + $0x6c8] sm:$0x7f]  ;;  %v375_v44 = vld [vmem:[%s9796_s0 + $0x578] sm:$0xff] }
  0xd3   :  { %v3744_v28 = vsel %vm764_vm0, %v10318_v31, %v10317_v7  ;;  %v10320_v58 = vrot.slane %v5444_v17, 2  ;;  %v6050_v57 = vadd.f32 %v1240_v41, %v206_v30  ;;  %v1851_v17 = vadd.f32 %v1648_v23, %v374_v4  ;;  %v33_v41 = vld [vmem:[%s9796_s0 + $0xc8] sm:$0xff] }
  0xd4   :  { %3962 = vst [vmem:[%s9797_s1 + $0x78] sm:$0xff] %v3744_v28  ;;  %v10321_v26 = vrot.slane %v5426_v1, 1  ;;  %v9930_v7 = vrot.slane %v6015_v20, 1  ;;  %v6072_v31 = vmul.f32 0.125, %v3477_v24  ;;  %v207_v1 = vld [vmem:[%s9796_s0 + $0x338] sm:$0xff]  ;;  %v10322_v4 = vrot.slane %v5472_v29, 1 }
  0xd5   :  { %v2871_v18 = vsel %vm2397_vm1, %v10320_v58, %v10319_v48  ;;  %v9931_v58 = vrot.slane %v6050_v57, 2  ;;  %v9934_v28 = vrot.slane %v6055_v37, 1 }
  0xd6   :  { %v6063_v54 = vadd.f32 %v2871_v18, %v1850_v43  ;;  %v2056_v30 = vsel %vm764_vm0, %v10321_v26, %v2055_v3  ;;  %v9937_v43 = vrot.slane %v6038_v59, 1  ;;  %v822_v3 = vsel %vm764_vm0, %v10322_v4, %v9930_v7  ;;  %v6101_v4 = vld [vmem:[%s9796_s0 + $0x220] sm:$0xff] }
  0xd7   :  { %v6074_v48 = vadd.f32 %v2056_v30, %v548_v2  ;;  %v2057_v2 = vrot.slane %v633_v61, 1  ;;  %v9933_v24 = vrot.slane %v6072_v31, 1  ;;  %v10323_v18 = vrot.slane %v5507_v45, 2 }
  0xd8   :  { %v9932_v23 = vrot.slane %v6063_v54, 4  ;;  %v1030_v29 = vadd.f32 %v822_v3, %v33_v41  ;;  %v10324_v61 = vrot.slane %v5522_v55, 4  ;;  %v10325_v41 = vrot.slane %v5495_v60, 1  ;;  %v6124_v55 = vld [vmem:[%s9796_s0 + $0x490] sm:$0x1f] }
  0xd9   :  { %v2453_v26 = vsel %vm2397_vm1, %v10323_v18, %v9931_v58  ;;  %v549_v18 = vld [vmem:[%s9796_s0 + $0x7e8] sm:$0xff]  ;;  %v10326_v58 = vrot.slane %v5512_v27, 1 }
  0xda   :  { %v3268_v45 = vsel %vm3214_vm2, %v10324_v61, %v9932_v23  ;;  %v2662_v7 = vadd.f32 %v2453_v26, %v1029_v14  ;;  %v1242_v3 = vsel %vm764_vm0, %v10325_v41, %v9937_v43  ;;  %v10327_v14 = vrot.slane %v5533_v51, 1  ;;  %v634_v51 = vld [vmem:[%s9796_s0 + $0x940] sm:$0x1] }
  0xdb   :  { %v1650_v30 = vsel %vm764_vm0, %v10326_v58, %v9934_v28  ;;  %v3478_v60 = vadd.f32 %v3268_v45, %v2661_v15  ;;  %v10328_v61 = vrot.slane %v6074_v48, 2  ;;  %v10329_v41 = vrot.slane %v5535_v13, 2  ;;  %v6141_v58 = vld [vmem:[%s9796_s0 + $0x6d0] sm:$0x7f]  ;;  %v376_v28 = vld [vmem:[%s9796_s0 + $0x580] sm:$0xff] }
  0xdc   :  { %v3746_v26 = vsel %vm764_vm0, %v10327_v14, %v9933_v24  ;;  %v6136_v23 = vadd.f32 %v1242_v3, %v207_v1  ;;  %v1852_v13 = vadd.f32 %v1650_v30, %v375_v44  ;;  %v10330_v45 = vrot.slane %v5517_v63, 1  ;;  %v34_v3 = vld [vmem:[%s9796_s0 + $0xd0] sm:$0xff]  ;;  %v208_v63 = vld [vmem:[%s9796_s0 + $0x340] sm:$0xff] }
  0xdd   :  { %v2873_v27 = vsel %vm2397_vm1, %v10329_v41, %v10328_v61  ;;  %3963 = vst [vmem:[%s9797_s1 + $0x80] sm:$0xff] %v3746_v26  ;;  %v9935_v14 = vrot.slane %v6101_v4, 1  ;;  %v6158_v61 = vmul.f32 0.125, %v3478_v60  ;;  %v9939_v26 = vrot.slane %v6141_v58, 1 }
  0xde   :  { %v6149_v15 = vadd.f32 %v2873_v27, %v1851_v17  ;;  %v2058_v1 = vsel %vm764_vm0, %v10330_v45, %v2057_v2  ;;  %v9936_v24 = vrot.slane %v6136_v23, 2  ;;  %v9943_v17 = vrot.slane %v6124_v55, 1 }
  0xdf   :  { %v6160_v41 = vadd.f32 %v2058_v1, %v549_v18  ;;  %v10331_v2 = vrot.slane %v5563_v32, 1  ;;  %v2059_v18 = vrot.slane %v634_v51, 1  ;;  %v9938_v60 = vrot.slane %v6158_v61, 1 }
  0xe0   :  { %v9956_v44 = vrot.slane %v6149_v15, 4  ;;  %v10332_v27 = vrot.slane %v5598_v16, 2  ;;  %v10333_v51 = vrot.slane %v5613_v25, 4  ;;  %v6210_v25 = vld [vmem:[%s9796_s0 + $0x498] sm:$0x1f] }
  0xe1   :  { %v824_v30 = vsel %vm764_vm0, %v10331_v2, %v9935_v14  ;;  %v9940_v1 = vrot.slane %v6160_v41, 2  ;;  %v6187_v2 = vld [vmem:[%s9796_s0 + $0x228] sm:$0xff] }
  0xe2   :  { %v2455_v45 = vsel %vm2397_vm1, %v10332_v27, %v9936_v24  ;;  %v1031_v32 = vadd.f32 %v824_v30, %v34_v3  ;;  %v3270_v16 = vsel %vm3214_vm2, %v10333_v51, %v9956_v44  ;;  %v550_v27 = vld [vmem:[%s9796_s0 + $0x7f0] sm:$0xff]  ;;  %v10334_v3 = vrot.slane %v5586_v21, 1 }
  0xe3   :  { %v2663_v14 = vadd.f32 %v2455_v45, %v1030_v29  ;;  %v10335_v24 = vrot.slane %v5603_v5, 1  ;;  %v10336_v29 = vrot.slane %v5624_v52, 1  ;;  %v3479_v21 = vadd.f32 %v3270_v16, %v2662_v7  ;;  %v635_v52 = vld [vmem:[%s9796_s0 + $0x948] sm:$0x1] }
  0xe4   :  { %v1244_v30 = vsel %vm764_vm0, %v10334_v3, %v9943_v17  ;;  %v10337_v51 = vrot.slane %v5626_v34, 2  ;;  %v10338_v16 = vrot.slane %v5608_v36, 1  ;;  %v209_v36 = vld [vmem:[%s9796_s0 + $0x348] sm:$0xff] }
  0xe5   :  { %v1652_v43 = vsel %vm764_vm0, %v10335_v24, %v9939_v26  ;;  %v3748_v45 = vsel %vm764_vm0, %v10336_v29, %v9938_v60  ;;  %v6222_v3 = vadd.f32 %v1244_v30, %v208_v63  ;;  %v6227_v24 = vld [vmem:[%s9796_s0 + $0x6d8] sm:$0x7f]  ;;  %v9941_v29 = vrot.slane %v6187_v2, 1 }
  0xe6   :  { %v2875_v5 = vsel %vm2397_vm1, %v10337_v51, %v9940_v1  ;;  %3964 = vst [vmem:[%s9797_s1 + $0x88] sm:$0xff] %v3748_v45  ;;  %v1853_v34 = vadd.f32 %v1652_v43, %v376_v28  ;;  %v2060_v63 = vsel %vm764_vm0, %v10338_v16, %v2059_v18  ;;  %v35_v30 = vld [vmem:[%s9796_s0 + $0xd8] sm:$0xff]  ;;  %v6244_v51 = vmul.f32 0.125, %v3479_v21  ;;  %v377_v1 = vld [vmem:[%s9796_s0 + $0x588] sm:$0xff] }
  0xe7   :  { %v6235_v7 = vadd.f32 %v2875_v5, %v1852_v13  ;;  %v6246_v60 = vadd.f32 %v2060_v63, %v550_v27  ;;  %v9942_v26 = vrot.slane %v6222_v3, 2  ;;  %v9946_v13 = vrot.slane %v6210_v25, 1 }
  0xe8   :  { %v10339_v28 = vrot.slane %v5654_v19, 1  ;;  %v9945_v45 = vrot.slane %v6227_v24, 1  ;;  %v2061_v27 = vrot.slane %v635_v52, 1  ;;  %v9944_v21 = vrot.slane %v6244_v51, 1 }
  0xe9   :  { %v9949_v43 = vrot.slane %v6235_v7, 4  ;;  %v10340_v5 = vrot.slane %v5689_v50, 2  ;;  %v9950_v63 = vrot.slane %v6246_v60, 2  ;;  %v10341_v52 = vrot.slane %v5704_v9, 4  ;;  %v6296_v9 = vld [vmem:[%s9796_s0 + $0x4a0] sm:$0x1f] }
  0xea   :  { %v826_v18 = vsel %vm764_vm0, %v10339_v28, %v9941_v29  ;;  %v6273_v28 = vld [vmem:[%s9796_s0 + $0x230] sm:$0xff] }
  0xeb   :  { %v2457_v16 = vsel %vm2397_vm1, %v10340_v5, %v9942_v26  ;;  %v1032_v19 = vadd.f32 %v826_v18, %v35_v30  ;;  %v3272_v50 = vsel %vm3214_vm2, %v10341_v52, %v9949_v43  ;;  %v551_v5 = vld [vmem:[%s9796_s0 + $0x7f8] sm:$0xff]  ;;  %v10342_v30 = vrot.slane %v5677_v47, 1 }
  0xec   :  { %v2664_v29 = vadd.f32 %v2457_v16, %v1031_v32  ;;  %v10343_v26 = vrot.slane %v5694_v49, 1  ;;  %v10344_v32 = vrot.slane %v5715_v33, 1  ;;  %v3480_v47 = vadd.f32 %v3272_v50, %v2663_v14  ;;  %v636_v33 = vld [vmem:[%s9796_s0 + $0x950] sm:$0x1] }
  0xed   :  { %v1246_v18 = vsel %vm764_vm0, %v10342_v30, %v9946_v13  ;;  %v10345_v52 = vrot.slane %v5717_v6, 2  ;;  %v10346_v50 = vrot.slane %v5699_v11, 1  ;;  %v210_v11 = vld [vmem:[%s9796_s0 + $0x350] sm:$0xff] }
  0xee   :  { %v1654_v17 = vsel %vm764_vm0, %v10343_v26, %v9945_v45  ;;  %v3750_v16 = vsel %vm764_vm0, %v10344_v32, %v9944_v21  ;;  %v6308_v30 = vadd.f32 %v1246_v18, %v209_v36  ;;  %v6313_v26 = vld [vmem:[%s9796_s0 + $0x6e0] sm:$0x7f]  ;;  %v9947_v32 = vrot.slane %v6273_v28, 1  ;;  %v378_v13 = vld [vmem:[%s9796_s0 + $0x590] sm:$0xff] }
  0xef   :  { %v2877_v49 = vsel %vm2397_vm1, %v10345_v52, %v9950_v63  ;;  %3965 = vst [vmem:[%s9797_s1 + $0x90] sm:$0xff] %v3750_v16  ;;  %v1854_v6 = vadd.f32 %v1654_v17, %v377_v1  ;;  %v2062_v36 = vsel %vm764_vm0, %v10346_v50, %v2061_v27  ;;  %v36_v18 = vld [vmem:[%s9796_s0 + $0xe0] sm:$0xff]  ;;  %v6330_v52 = vmul.f32 0.125, %v3480_v47 }
  0xf0   :  { %v6321_v14 = vadd.f32 %v2877_v49, %v1853_v34  ;;  %v6332_v21 = vadd.f32 %v2062_v36, %v551_v5  ;;  %v9948_v45 = vrot.slane %v6308_v30, 2  ;;  %v9951_v34 = vrot.slane %v6296_v9, 1 }
  0xf1   :  { %v10347_v1 = vrot.slane %v5745_v42, 1  ;;  %v9954_v16 = vrot.slane %v6313_v26, 1  ;;  %v2063_v5 = vrot.slane %v636_v33, 1  ;;  %v9953_v47 = vrot.slane %v6330_v52, 1 }
  0xf2   :  { %v9952_v17 = vrot.slane %v6321_v14, 4  ;;  %v10348_v49 = vrot.slane %v5780_v35, 2  ;;  %v9955_v36 = vrot.slane %v6332_v21, 2  ;;  %v10350_v33 = vrot.slane %v5795_v53, 4  ;;  %v6382_v53 = vld [vmem:[%s9796_s0 + $0x4a8] sm:$0x1f] }
  0xf3   :  { %v828_v27 = vsel %vm764_vm0, %v10347_v1, %v9947_v32  ;;  %v6359_v1 = vld [vmem:[%s9796_s0 + $0x238] sm:$0xff] }
  0xf4   :  { %v2459_v50 = vsel %vm2397_vm1, %v10348_v49, %v9948_v45  ;;  %v1033_v42 = vadd.f32 %v828_v27, %v36_v18  ;;  %10349 = vst [vmem:[#allocation12_spill] sm:$0xff] %v6359_v1  ;;  %v3274_v35 = vsel %vm3214_vm2, %v10350_v33, %v9952_v17  ;;  %v552_v49 = vld [vmem:[%s9796_s0 + $0x800] sm:$0xff]  ;;  %v10351_v18 = vrot.slane %v5768_v0, 1  ;;  %v10352_v45 = vld [vmem:[#allocation4_spill] sm:$0xff] }
  0xf5   :  { %v2665_v32 = vadd.f32 %v2459_v50, %v1032_v19  ;;  %v10353_v43 = vrot.slane %v10352_v45, 1  ;;  %v10354_v19 = vld [vmem:[#allocation9_spill] sm:$0xff]  ;;  %v3481_v0 = vadd.f32 %v3274_v35, %v2664_v29 }
  0xf6   :  { %v1248_v27 = vsel %vm764_vm0, %v10351_v18, %v9951_v34  ;;  %v10355_v50 = vrot.slane %v10354_v19, 1  ;;  %v10356_v18 = vld [vmem:[#allocation11_spill] sm:$0xff]  ;;  %v637_v19 = vld [vmem:[%s9796_s0 + $0x958] sm:$0x1] }
  0xf7   :  { %v1656_v63 = vsel %vm764_vm0, %v10353_v43, %v9954_v16  ;;  %v10357_v34 = vrot.slane %v10356_v18, 2  ;;  %v6394_v17 = vadd.f32 %v1248_v27, %v210_v11  ;;  %v6399_v43 = vld [vmem:[%s9796_s0 + $0x6e8] sm:$0x7f]  ;;  %v9957_v18 = vrot.slane %v6359_v1, 1 }
  0xf8   :  { %v3752_v33 = vsel %vm764_vm0, %v10355_v50, %v9953_v47  ;;  %v1855_v35 = vadd.f32 %v1656_v63, %v378_v13  ;;  %v10359_v50 = vld [vmem:[#allocation3_spill] sm:$0xff]  ;;  %v6416_v47 = vmul.f32 0.125, %v3481_v0  ;;  %v211_v63 = vld [vmem:[%s9796_s0 + $0x358] sm:$0xff] }
  0xf9   :  { %v2879_v45 = vsel %vm2397_vm1, %v10357_v34, %v9955_v36  ;;  %10358 = vst [vmem:[#allocation14_spill] sm:$0xff] %v6394_v17  ;;  %3966 = vst [vmem:[%s9797_s1 + $0x98] sm:$0xff] %v3752_v33  ;;  %v10360_v34 = vrot.slane %v10359_v50, 1  ;;  %v37_v27 = vld [vmem:[%s9796_s0 + $0xe8] sm:$0xff]  ;;  %v9958_v36 = vrot.slane %v6394_v17, 2  ;;  %v379_v13 = vld [vmem:[%s9796_s0 + $0x598] sm:$0xff] }
  0xfa   :  { %v6407_v29 = vadd.f32 %v2879_v45, %v1854_v6  ;;  %v10370_v6 = vrot.slane %v6399_v43, 1  ;;  %v10371_v17 = vrot.slane %v5876_v22, 1 }
  0xfb   :  { %v2064_v11 = vsel %vm764_vm0, %v10360_v34, %v2063_v5  ;;  %v10361_v5 = vld [vmem:[#allocation2_spill] sm:$0xff]  ;;  %v10363_v34 = vld [vmem:[#allocation8_spill] sm:$0xff] }
  0xfc   :  { %v6418_v16 = vadd.f32 %v2064_v11, %v552_v49  ;;  %v10362_v33 = vrot.slane %v10361_v5, 1  ;;  %v2065_v49 = vrot.slane %v637_v19, 1  ;;  %v10364_v11 = vrot.slane %v10363_v34, 2 }
  0xfd   :  { %v10365_v19 = vrot.slane %v6407_v29, 4  ;;  %v1658_v1 = vsel %vm764_vm0, %v10371_v17, %v10370_v6  ;;  %v380_v17 = vld [vmem:[%s9796_s0 + $0x5a0] sm:$0x3f]  ;;  %v6486_v6 = vld [vmem:[%s9796_s0 + $0x248] sm:$0x7] }
  0xfe   :  { %v830_v45 = vsel %vm764_vm0, %v10362_v33, %v9957_v18  ;;  %v2461_v44 = vsel %vm2397_vm1, %v10364_v11, %v9958_v36  ;;  %v6445_v33 = vld [vmem:[%s9796_s0 + $0x240] sm:$0x7]  ;;  %v553_v11 = vld [vmem:[%s9796_s0 + $0x808] sm:$0xff]  ;;  %v10368_v36 = vrot.slane %v6382_v53, 1 }
  0xff   :  { %v1034_v5 = vadd.f32 %v830_v45, %v37_v27  ;;  %v10366_v18 = vld [vmem:[#allocation10_spill] sm:$0xff]  ;;  %v2666_v0 = vadd.f32 %v2461_v44, %v1033_v42  ;;  %v10369_v27 = vrot.slane %v5859_v12, 1  ;;  %v10372_v42 = vrot.slane %v6416_v47, 1 }
 0x100   :  { %v10367_v50 = vrot.slane %v10366_v18, 4  ;;  %v212_v44 = vld [vmem:[%s9796_s0 + $0x360] sm:$0xf]  ;;  %v10373_v18 = vrot.slane %v5897_v39, 1  ;;  %v10374_v12 = vrot.slane %v6418_v16, 2 }
 0x101   :  { %v1250_v45 = vsel %vm764_vm0, %v10369_v27, %v10368_v36  ;;  %v10375_v36 = vrot.slane %v5899_v56, 2  ;;  %v1856_v56 = vadd.f32 %v1658_v1, %v379_v13  ;;  %v10378_v1 = vrot.slane %v5927_v10, 1  ;;  %v39_v10 = vld [vmem:[%s9796_s0 + $0xf8] sm:$0xff] }
 0x102   :  { %v3276_v34 = vsel %vm3214_vm2, %v10367_v50, %v10365_v19  ;;  %v3754_v50 = vsel %vm764_vm0, %v10373_v18, %v10372_v42  ;;  %v6478_v22 = vadd.f32 %v1250_v45, %v211_v63  ;;  %v9961_v45 = vrot.slane %v6445_v33, 1 }
 0x103   :  { %v3482_v19 = vadd.f32 %v3276_v34, %v2665_v32  ;;  %v2881_v27 = vsel %vm2397_vm1, %v10375_v36, %v10374_v12  ;;  %3967 = vst [vmem:[%s9797_s1 + $0xa0] sm:$0xff] %v3754_v50  ;;  %v10376_v32 = vrot.slane %v5881_v46, 1  ;;  %v38_v34 = vld [vmem:[%s9796_s0 + $0xf0] sm:$0xff] }
 0x104   :  { %v6491_v39 = vadd.f32 %v2881_v27, %v1855_v35  ;;  %v2462_v12 = vrot.slane %v6478_v22, 2  ;;  %v10377_v35 = vrot.slane %v5950_v38, 1  ;;  %v832_v13 = vsel %vm764_vm0, %v10378_v1, %v9961_v45  ;;  %v10380_v38 = vld [vmem:[#allocation5_spill] sm:$0xff] }
 0x105   :  { %v2066_v63 = vsel %vm764_vm0, %v10376_v32, %v2065_v49  ;;  %v6500_v42 = vmul.f32 0.125, %v3482_v19  ;;  %v10379_v49 = vrot.slane %v5967_v8, 1  ;;  %v10382_v8 = vld [vmem:[#allocation13_spill] sm:$0xff] }
 0x106   :  { %v6502_v18 = vadd.f32 %v2066_v63, %v553_v11  ;;  %v6507_v50 = vadd.f32 %v10377_v35, %v212_v44  ;;  %v9963_v46 = vrot.slane %v6491_v39, 4  ;;  %v833_v11 = vrot.slane %v6486_v6, 1 }
 0x107   :  { %v1857_v19 = vadd.f32 %v10379_v49, %v380_v17  ;;  %v9962_v36 = vrot.slane %v6500_v42, 1  ;;  %v10381_v44 = vrot.slane %v10380_v38, 2  ;;  %v1035_v63 = vadd.f32 %v832_v13, %v38_v34  ;;  %v213_v34 = vld [vmem:[%s9796_s0 + $0x368] sm:$0xf] }
 0x108   :  { %v2882_v32 = vrot.slane %v6502_v18, 2  ;;  %v10383_v17 = vrot.slane %v10382_v8, 4  ;;  %v2464_v49 = vrot.slane %v6507_v50, 2  ;;  %v10384_v38 = vrot.slane %v6074_v48, 2  ;;  %v381_v13 = vld [vmem:[%s9796_s0 + $0x5a8] sm:$0x3f] }
 0x109   :  { %v2463_v27 = vsel %vm2397_vm1, %v10381_v44, %v2462_v12  ;;  %v10385_v44 = vrot.slane %v5986_v62, 1  ;;  %v10386_v48 = vrot.slane %v5988_v40, 2  ;;  %v10387_v8 = vrot.slane %v6015_v20, 1  ;;  %v214_v62 = vld [vmem:[%s9796_s0 + $0x370] sm:$0xf] }
 0x10a   :  { %v3278_v35 = vsel %vm3214_vm2, %v10383_v17, %v9963_v46  ;;  %v2667_v1 = vadd.f32 %v2463_v27, %v1034_v5  ;;  %v6536_v45 = vadd.f32 %v10384_v38, %v1857_v19  ;;  %v6562_v38 = vld [vmem:[%s9796_s0 + $0x250] sm:$0x7]  ;;  %v10388_v20 = vrot.slane %v6050_v57, 2  ;;  %v47_v18 = vld [vmem:[%s9796_s0 + $0x138] sm:$0x3] }
 0x10b   :  { %v3756_v5 = vsel %vm764_vm0, %v10385_v44, %v9962_v36  ;;  %v3483_v27 = vadd.f32 %v3278_v35, %v2666_v0  ;;  %v2883_v19 = vsel %vm2397_vm1, %v10386_v48, %v2882_v32  ;;  %v834_v17 = vsel %vm764_vm0, %v10387_v8, %v833_v11 }
 0x10c   :  { %3968 = vst [vmem:[%s9797_s1 + $0xa8] sm:$0xff] %v3756_v5  ;;  %v6570_v40 = vadd.f32 %v2883_v19, %v1856_v56  ;;  %v2465_v0 = vsel %vm2397_vm1, %v10388_v20, %v2464_v49  ;;  %v3281_v35 = vrot.slane %v6536_v45, 4  ;;  %v1036_v44 = vadd.f32 %v834_v17, %v39_v10  ;;  %v382_v19 = vld [vmem:[%s9796_s0 + $0x5b0] sm:$0x3f] }
 0x10d   :  { %v6578_v48 = vmul.f32 0.125, %v3483_v27  ;;  %v2668_v8 = vadd.f32 %v2465_v0, %v1035_v63  ;;  %v10389_v36 = vrot.slane %v6038_v59, 1  ;;  %v10390_v5 = vrot.slane %v6055_v37, 1 }
 0x10e   :  { %v3279_v57 = vrot.slane %v6570_v40, 4  ;;  %v10391_v10 = vrot.slane %v6149_v15, 4  ;;  %v835_v63 = vrot.slane %v6562_v38, 1  ;;  %v10392_v59 = vrot.slane %v6124_v55, 1  ;;  %v40_v15 = vld [vmem:[%s9796_s0 + $0x100] sm:$0xff] }
 0x10f   :  { %v6582_v46 = vadd.f32 %v10389_v36, %v213_v34  ;;  %v1858_v56 = vadd.f32 %v10390_v5, %v381_v13  ;;  %v9966_v37 = vrot.slane %v6578_v48, 1  ;;  %v10393_v17 = vrot.slane %v6160_v41, 2 }
 0x110   :  { %v3282_v27 = vsel %vm3214_vm2, %v10391_v10, %v3281_v35  ;;  %v6598_v36 = vadd.f32 %v10392_v59, %v214_v62  ;;  %v10394_v0 = vrot.slane %v6063_v54, 4  ;;  %v10395_v62 = vrot.slane %v6101_v4, 1  ;;  %v6625_v10 = vld [vmem:[%s9796_s0 + $0x258] sm:$0x7] }
 0x111   :  { %v3485_v34 = vadd.f32 %v3282_v27, %v2668_v8  ;;  %v2466_v13 = vrot.slane %v6582_v46, 2  ;;  %v6604_v20 = vadd.f32 %v10393_v17, %v1858_v56  ;;  %v10396_v41 = vrot.slane %v6141_v58, 1  ;;  %v215_v17 = vld [vmem:[%s9796_s0 + $0x378] sm:$0xf] }
 0x112   :  { %v3280_v55 = vsel %vm3214_vm2, %v10394_v0, %v3279_v57  ;;  %v836_v8 = vsel %vm764_vm0, %v10395_v62, %v835_v63  ;;  %v2468_v56 = vrot.slane %v6598_v36, 2  ;;  %v10397_v54 = vrot.slane %v6072_v31, 1  ;;  %v383_v0 = vld [vmem:[%s9796_s0 + $0x5b8] sm:$0x3f] }
 0x113   :  { %v1859_v5 = vadd.f32 %v10396_v41, %v382_v19  ;;  %v3484_v59 = vadd.f32 %v3280_v55, %v2667_v1  ;;  %v6632_v4 = vmul.f32 0.125, %v3485_v34  ;;  %v10398_v58 = vrot.slane %v6136_v23, 2 }
 0x114   :  { %v3758_v27 = vsel %vm764_vm0, %v10397_v54, %v9966_v37  ;;  %v3283_v1 = vrot.slane %v6604_v20, 4  ;;  %v1037_v34 = vadd.f32 %v836_v8, %v40_v15  ;;  %v10399_v23 = vrot.slane %v6222_v3, 2 }
 0x115   :  { %v2467_v19 = vsel %vm2397_vm1, %v10398_v58, %v2466_v13  ;;  %3969 = vst [vmem:[%s9797_s1 + $0xb0] sm:$0xff] %v3758_v27  ;;  %v6654_v62 = vmul.f32 0.125, %v3484_v59  ;;  %v9964_v41 = vrot.slane %v6632_v4, 1  ;;  %v10400_v54 = vrot.slane %v6246_v60, 2  ;;  %v41_v60 = vld [vmem:[%s9796_s0 + $0x108] sm:$0xff] }
 0x116   :  { %v2669_v31 = vadd.f32 %v2467_v19, %v1036_v44  ;;  %v2469_v55 = vsel %vm2397_vm1, %v10399_v23, %v2468_v56  ;;  %v837_v27 = vrot.slane %v6625_v10, 1  ;;  %v6665_v44 = vld [vmem:[%s9796_s0 + $0x260] sm:$0x7]  ;;  %v10401_v3 = vrot.slane %v6235_v7, 4 }
 0x117   :  { %v6659_v58 = vadd.f32 %v10400_v54, %v1859_v5  ;;  %v2670_v8 = vadd.f32 %v2469_v55, %v1037_v34  ;;  %v10402_v5 = vrot.slane %v6210_v25, 1  ;;  %v10403_v19 = vrot.slane %v6227_v24, 1 }
 0x118   :  { %v3284_v15 = vsel %vm3214_vm2, %v10401_v3, %v3283_v1  ;;  %v9965_v54 = vrot.slane %v6654_v62, 1  ;;  %v10404_v7 = vrot.slane %v6244_v51, 1  ;;  %v10405_v25 = vrot.slane %v6187_v2, 1 }
 0x119   :  { %v6677_v59 = vadd.f32 %v10402_v5, %v215_v17  ;;  %v1860_v23 = vadd.f32 %v10403_v19, %v383_v0  ;;  %v3486_v34 = vadd.f32 %v3284_v15, %v2669_v31  ;;  %v3285_v55 = vrot.slane %v6659_v58, 4  ;;  %v42_v31 = vld [vmem:[%s9796_s0 + $0x110] sm:$0xff]  ;;  %v216_v15 = vld [vmem:[%s9796_s0 + $0x380] sm:$0xf] }
 0x11a   :  { %v3762_v3 = vsel %vm764_vm0, %v10404_v7, %v9964_v41  ;;  %v838_v24 = vsel %vm764_vm0, %v10405_v25, %v837_v27  ;;  %v10406_v0 = vrot.slane %v6332_v21, 2  ;;  %v839_v5 = vrot.slane %v6665_v44, 1  ;;  %v384_v25 = vld [vmem:[%s9796_s0 + $0x5c0] sm:$0x3f] }
 0x11b   :  { %3971 = vst [vmem:[%s9797_s1 + $0xc0] sm:$0xff] %v3762_v3  ;;  %v9967_v17 = vrot.slane %v6677_v59, 2  ;;  %v10407_v2 = vrot.slane %v6158_v61, 1  ;;  %v6713_v7 = vmul.f32 0.125, %v3486_v34  ;;  %v10408_v21 = vrot.slane %v6321_v14, 4 }
 0x11c   :  { %v6699_v51 = vadd.f32 %v10406_v0, %v1860_v23  ;;  %v1038_v3 = vadd.f32 %v838_v24, %v41_v60  ;;  %v6726_v0 = vld [vmem:[%s9796_s0 + $0x268] sm:$0x7]  ;;  %v10409_v14 = vrot.slane %v6308_v30, 2  ;;  %v10410_v24 = vrot.slane %v6273_v28, 1 }
 0x11d   :  { %v3760_v19 = vsel %vm764_vm0, %v10407_v2, %v9965_v54  ;;  %v3286_v23 = vsel %vm3214_vm2, %v10408_v21, %v3285_v55  ;;  %v217_v21 = vld [vmem:[%s9796_s0 + $0x388] sm:$0xf]  ;;  %v10411_v30 = vrot.slane %v6296_v9, 1  ;;  %v10412_v28 = vrot.slane %v6407_v29, 4  ;;  %v43_v9 = vld [vmem:[%s9796_s0 + $0x118] sm:$0xff] }
 0x11e   :  { %3970 = vst [vmem:[%s9797_s1 + $0xb8] sm:$0xff] %v3760_v19  ;;  %v3487_v61 = vadd.f32 %v3286_v23, %v2670_v8  ;;  %v2471_v60 = vsel %vm2397_vm1, %v10409_v14, %v9967_v17  ;;  %v3287_v34 = vrot.slane %v6699_v51, 4  ;;  %v840_v2 = vsel %vm764_vm0, %v10410_v24, %v839_v5  ;;  %v385_v14 = vld [vmem:[%s9796_s0 + $0x5c8] sm:$0x3f]  ;;  %v6874_v51 = vld [vmem:[%s9796_s0 + $0xae0] sm:$0xff] }
 0x11f   :  { %v3763_v8 = vrot.slane %v6713_v7, 1  ;;  %v2671_v19 = vadd.f32 %v2471_v60, %v1038_v3  ;;  %v1039_v23 = vadd.f32 %v840_v2, %v42_v31  ;;  %v1453_v41 = vadd.f32 %v10411_v30, %v216_v15 }
 0x120   :  { %v6751_v54 = vmul.f32 0.125, %v3487_v61  ;;  %v3288_v24 = vsel %vm3214_vm2, %v10412_v28, %v3287_v34  ;;  %v10413_v37 = vrot.slane %v6313_v26, 1  ;;  %v841_v31 = vrot.slane %v6726_v0, 1  ;;  %v10417_v0 = vld [vmem:[#allocation12_spill] sm:$0xff] }
 0x121   :  { %v10414_v15 = vrot.slane %v6330_v52, 1  ;;  %v3488_v61 = vadd.f32 %v3288_v24, %v2671_v19  ;;  %v2472_v60 = vrot.slane %v1453_v41, 2  ;;  %v10415_v29 = vrot.slane %v6382_v53, 1  ;;  %v44_v53 = vld [vmem:[%s9796_s0 + $0x120] sm:$0x3] }
 0x122   :  { %v1861_v17 = vadd.f32 %v10413_v37, %v384_v25  ;;  %v3765_v26 = vrot.slane %v6751_v54, 1  ;;  %v10416_v37 = vrot.slane %v6418_v16, 2  ;;  %v10418_v30 = vrot.slane %v10417_v0, 1  ;;  %v45_v41 = vld [vmem:[%s9796_s0 + $0x128] sm:$0x3]  ;;  %v10420_v24 = vld [vmem:[#allocation14_spill] sm:$0xff] }
 0x123   :  { %v3764_v3 = vsel %vm764_vm0, %v10414_v15, %v3763_v8  ;;  %v1454_v2 = vadd.f32 %v10415_v29, %v217_v21  ;;  %v10419_v28 = vrot.slane %v6399_v43, 1  ;;  %v6788_v21 = vmul.f32 0.125, %v3488_v61  ;;  %v46_v43 = vld [vmem:[%s9796_s0 + $0x130] sm:$0x3] }
 0x124   :  { %3972 = vst [vmem:[%s9797_s1 + $0xc8] sm:$0xff] %v3764_v3  ;;  %v3086_v25 = vadd.f32 %v10416_v37, %v1861_v17  ;;  %v842_v52 = vsel %vm764_vm0, %v10418_v30, %v841_v31  ;;  %v10421_v16 = vrot.slane %v10420_v24, 2  ;;  %v10423_v30 = vrot.slane %v6445_v33, 1  ;;  %v6930_v54 = vld [vmem:[%s9796_s0 + $0xd50] sm:$0xff] }
 0x125   :  { %v1862_v19 = vadd.f32 %v10419_v28, %v385_v14  ;;  %v1040_v15 = vadd.f32 %v842_v52, %v43_v9  ;;  %v2474_v3 = vrot.slane %v1454_v2, 2  ;;  %v10422_v14 = vrot.slane %v6416_v47, 1 }
 0x126   :  { %v2473_v17 = vsel %vm2397_vm1, %v10421_v16, %v2472_v60  ;;  %v3289_v0 = vrot.slane %v3086_v25, 4  ;;  %v3767_v9 = vrot.slane %v6788_v21, 1  ;;  %v1041_v47 = vadd.f32 %v10423_v30, %v44_v53  ;;  %v49_v53 = vld [vmem:[%s9796_s0 + $0x148] sm:$0x3]  ;;  %v470_v21 = vld [vmem:[%s9796_s0 + $0xf00] sm:$0xc0] }
 0x127   :  { %v3766_v29 = vsel %vm764_vm0, %v10422_v14, %v3765_v26  ;;  %v2672_v37 = vadd.f32 %v2473_v17, %v1039_v23  ;;  %v3087_v61 = vadd.f32 %v2882_v32, %v1862_v19  ;;  %v2475_v2 = vsel %vm2397_vm1, %v2462_v12, %v2474_v3  ;;  %v48_v32 = vld [vmem:[%s9796_s0 + $0x140] sm:$0x3]  ;;  %v140_v17 = vld [vmem:[%s9796_s0 + $0xab0] sm:$0xff] }
 0x128   :  { %3973 = vst [vmem:[%s9797_s1 + $0xd0] sm:$0xff] %v3766_v29  ;;  %v1042_v23 = vadd.f32 %v833_v11, %v45_v41  ;;  %v10424_v25 = vrot.slane %v6491_v39, 4  ;;  %v2673_v52 = vadd.f32 %v2475_v2, %v1040_v15  ;;  %v1043_v33 = vadd.f32 %v835_v63, %v46_v43  ;;  %v302_v43 = vld [vmem:[%s9796_s0 + $0xcc0] sm:$0xf0]  ;;  %v308_v14 = vld [vmem:[%s9796_s0 + $0xcf0] sm:$0xff] }
 0x129   :  { %v3291_v12 = vrot.slane %v3087_v61, 4  ;;  %v10425_v6 = vrot.slane %v6500_v42, 1  ;;  %v2674_v19 = vadd.f32 %v2464_v49, %v1041_v47  ;;  %v1044_v50 = vadd.f32 %v837_v27, %v47_v18  ;;  %v50_v18 = vld [vmem:[%s9796_s0 + $0x960] sm:$0xfe] }
 0x12a   :  { %v3290_v22 = vsel %vm3214_vm2, %v10424_v25, %v3289_v0  ;;  %v2675_v39 = vadd.f32 %v2466_v13, %v1042_v23  ;;  %v2676_v38 = vadd.f32 %v2468_v56, %v1043_v33  ;;  %v1045_v46 = vadd.f32 %v839_v5, %v48_v32  ;;  %v224_v32 = vld [vmem:[%s9796_s0 + $0xbd0] sm:$0xff] }
 0x12b   :  { %v3768_v11 = vsel %vm764_vm0, %v10425_v6, %v3767_v9  ;;  %v3489_v28 = vadd.f32 %v3290_v22, %v2672_v37  ;;  %v3292_v42 = vsel %vm3214_vm2, %v3279_v57, %v3291_v12  ;;  %v3491_v13 = vadd.f32 %v3281_v35, %v2674_v19 }
 0x12c   :  { %3974 = vst [vmem:[%s9797_s1 + $0xd8] sm:$0xff] %v3768_v11  ;;  %v3490_v63 = vadd.f32 %v3292_v42, %v2673_v52  ;;  %v3492_v41 = vadd.f32 %v3283_v1, %v2675_v39  ;;  %v3493_v40 = vadd.f32 %v3285_v55, %v2676_v38  ;;  %v10426_v57 = vrot.slane %v6677_v59, 2  ;;  %v134_v1 = vld [vmem:[%s9796_s0 + $0xa80] sm:$0xfc]  ;;  %v638_v42 = vld [vmem:[%s9796_s0 + $0x1170] sm:$0xff] }
 0x12d   :  { %v3573_v49 = vmul.f32 0.125, %v3489_v28  ;;  %v2678_v56 = vadd.f32 %v2472_v60, %v1045_v46  ;;  %v1046_v10 = vadd.f32 %v841_v31, %v49_v53  ;;  %v3575_v44 = vmul.f32 0.125, %v3491_v13  ;;  %v230_v28 = vld [vmem:[%s9796_s0 + $0xc00] sm:$0xff]  ;;  %v6970_v53 = vld [vmem:[%s9796_s0 + $0xf90] sm:$0xff] }
 0x12e   :  { %v2677_v36 = vadd.f32 %v10426_v57, %v1044_v50  ;;  %v6857_v24 = vmul.f32 0.125, %v3490_v63  ;;  %v3576_v5 = vmul.f32 0.125, %v3492_v41  ;;  %v3577_v16 = vmul.f32 0.125, %v3493_v40  ;;  %v482_v39 = vld [vmem:[%s9796_s0 + $0xf60] sm:$0xff]  ;;  %v650_v41 = vld [vmem:[%s9796_s0 + $0x11d0] sm:$0xff] }
 0x12f   :  { %v3769_v27 = vrot.slane %v3573_v49, 1  ;;  %v3495_v35 = vadd.f32 %v3289_v0, %v2678_v56  ;;  %v2679_v20 = vadd.f32 %v2474_v3, %v1046_v10  ;;  %v10427_v58 = vrot.slane %v6578_v48, 1  ;;  %v644_v13 = vld [vmem:[%s9796_s0 + $0x11a0] sm:$0xff] }
 0x130   :  { %v3494_v45 = vadd.f32 %v3287_v34, %v2677_v36  ;;  %v3771_v55 = vrot.slane %v6857_v24, 1  ;;  %v3773_v31 = vrot.slane %v3575_v44, 1  ;;  %v3775_v60 = vrot.slane %v3576_v5, 1  ;;  %v6994_v40 = vld [vmem:[%s9796_s0 + $0x1200] sm:$0xff] }
 0x131   :  { %v3770_v59 = vsel %vm764_vm0, %v10427_v58, %v3769_v27  ;;  %v3777_v48 = vrot.slane %v3577_v16, 1  ;;  %v3579_v15 = vmul.f32 0.125, %v3495_v35  ;;  %v3496_v3 = vadd.f32 %v3291_v12, %v2679_v20  ;;  %v386_v10 = vld [vmem:[%s9796_s0 + $0xde0] sm:$0xe0] }
 0x132   :  { %3975 = vst [vmem:[%s9797_s1 + $0xe0] sm:$0xff] %v3770_v59  ;;  %v3578_v34 = vmul.f32 0.125, %v3494_v45  ;;  %v10428_v29 = vrot.slane %v6654_v62, 1  ;;  %v10429_v0 = vrot.slane %v6632_v4, 1  ;;  %3983 = vst [vmem:[%s9797_s1 + $0x120] sm:$0x1] %v3773_v31  ;;  %v3776_v2 = vsel %vm764_vm0, %v3763_v8, %v3775_v60 }
 0x133   :  { %3984 = vst [vmem:[%s9797_s1 + $0x128] sm:$0x1] %v3775_v60  ;;  %v56_v62 = vld [vmem:[%s9796_s0 + $0x990] sm:$0xff]  ;;  %v314_v4 = vld [vmem:[%s9796_s0 + $0xd20] sm:$0xff]  ;;  %v843_v30 = vrot.slane %v134_v1, 1  ;;  %3978 = vst [vmem:[%s9797_s1 + $0xf8] sm:$0xff] %v3776_v2  ;;  %v3778_v7 = vsel %vm764_vm0, %v3765_v26, %v3777_v48 }
 0x134   :  { %v3772_v37 = vsel %vm764_vm0, %v10428_v29, %v3771_v55  ;;  %v3774_v61 = vsel %vm764_vm0, %v10429_v0, %v3773_v31  ;;  %3985 = vst [vmem:[%s9797_s1 + $0x130] sm:$0x1] %v3777_v48  ;;  %v3779_v8 = vrot.slane %v3578_v34, 1  ;;  %v3781_v47 = vrot.slane %v3579_v15, 1  ;;  %3979 = vst [vmem:[%s9797_s1 + $0x100] sm:$0xff] %v3778_v7  ;;  %v398_v45 = vld [vmem:[%s9796_s0 + $0xe40] sm:$0xff] }
 0x135   :  { %3976 = vst [vmem:[%s9797_s1 + $0xe8] sm:$0xff] %v3772_v37  ;;  %3977 = vst [vmem:[%s9797_s1 + $0xf0] sm:$0xff] %v3774_v61  ;;  %v3580_v23 = vmul.f32 0.125, %v3496_v3  ;;  %v218_v26 = vld [vmem:[%s9796_s0 + $0xba0] sm:$0xf8]  ;;  %v844_v25 = vrot.slane %v140_v17, 1 }
 0x136   :  { %v10000_v22 = vrot.slane %v6874_v51, 1  ;;  %v1251_v52 = vrot.slane %v302_v43, 1  ;;  %v1252_v12 = vrot.slane %v308_v14, 1  ;;  %v3780_v33 = vsel %vm764_vm0, %v3767_v9, %v3779_v8  ;;  %3986 = vst [vmem:[%s9797_s1 + $0x138] sm:$0x1] %v3779_v8  ;;  %v476_v9 = vld [vmem:[%s9796_s0 + $0xf30] sm:$0xff] }
 0x137   :  { %v3782_v6 = vsel %vm764_vm0, %v3769_v27, %v3781_v47  ;;  %3987 = vst [vmem:[%s9797_s1 + $0x140] sm:$0x1] %v3781_v47  ;;  %v3783_v11 = vrot.slane %v3580_v23, 1  ;;  %v1269_v19 = vrot.slane %v314_v4, 1  ;;  %3980 = vst [vmem:[%s9797_s1 + $0x108] sm:$0xff] %v3780_v33  ;;  %v845_v38 = vsel %vm764_vm0, %v843_v30, %v844_v25  ;;  %v392_v27 = vld [vmem:[%s9796_s0 + $0xe10] sm:$0xff] }
 0x138   :  { %3981 = vst [vmem:[%s9797_s1 + $0x110] sm:$0xff] %v3782_v6  ;;  %v862_v50 = vsel %vm764_vm0, %v844_v25, %v10000_v22  ;;  %v1253_v46 = vsel %vm764_vm0, %v1251_v52, %v1252_v12  ;;  %v9999_v49 = vrot.slane %v6930_v54, 1  ;;  %v1047_v57 = vadd.f32 %v845_v38, %v50_v18  ;;  %v554_v35 = vld [vmem:[%s9796_s0 + $0x1020] sm:$0x80]  ;;  %v572_v15 = vld [vmem:[%s9796_s0 + $0x10b0] sm:$0xff]  ;;  %v141_v4 = vld [vmem:[%s9796_s0 + $0xab8] sm:$0xff] }
 0x139   :  { %v3784_v63 = vsel %vm764_vm0, %v3771_v55, %v3783_v11  ;;  %3988 = vst [vmem:[%s9797_s1 + $0x148] sm:$0x1] %v3783_v11  ;;  %v1053_v36 = vadd.f32 %v862_v50, %v56_v62  ;;  %v1270_v56 = vsel %vm764_vm0, %v1252_v12, %v1269_v19  ;;  %v1455_v44 = vadd.f32 %v1253_v46, %v218_v26  ;;  %v560_v55 = vld [vmem:[%s9796_s0 + $0x1050] sm:$0xff]  ;;  %v566_v34 = vld [vmem:[%s9796_s0 + $0x1080] sm:$0xff]  ;;  %v135_v62 = vld [vmem:[%s9796_s0 + $0xa88] sm:$0xfc] }
 0x13a   :  { %3982 = vst [vmem:[%s9797_s1 + $0x118] sm:$0xff] %v3784_v63  ;;  %v1282_v24 = vsel %vm764_vm0, %v1269_v19, %v9999_v49  ;;  %v1461_v5 = vadd.f32 %v1270_v56, %v224_v32  ;;  %v1659_v16 = vrot.slane %v470_v21, 1  ;;  %v1660_v1 = vrot.slane %v476_v9, 1  ;;  %v7050_v12 = vld [vmem:[%s9796_s0 + $0xae8] sm:$0xff]  ;;  %v309_v46 = vld [vmem:[%s9796_s0 + $0xcf8] sm:$0xff]  ;;  %v576_v49 = vld [vmem:[%s9796_s0 + $0x10d0] sm:$0xff] }
 0x13b   :  { %v7015_v20 = vadd.f32 %v1282_v24, %v230_v28  ;;  %v1677_v58 = vrot.slane %v482_v39, 1  ;;  %v9998_v59 = vrot.slane %v6970_v53, 1  ;;  %v2067_v31 = vrot.slane %v638_v42, 1  ;;  %v51_v19 = vld [vmem:[%s9796_s0 + $0x968] sm:$0xfe] }
 0x13c   :  { %v2073_v60 = vrot.slane %v644_v13, 1  ;;  %v2085_v17 = vrot.slane %v650_v41, 1  ;;  %v9996_v48 = vrot.slane %v6994_v40, 1  ;;  %v1661_v3 = vsel %vm764_vm0, %v1659_v16, %v1660_v1  ;;  %v303_v39 = vld [vmem:[%s9796_s0 + $0xcc8] sm:$0xf0]  ;;  %v477_v16 = vld [vmem:[%s9796_s0 + $0xf38] sm:$0xff] }
 0x13d   :  { %v1678_v43 = vsel %vm764_vm0, %v1660_v1, %v1677_v58  ;;  %v1690_v14 = vsel %vm764_vm0, %v1677_v58, %v9998_v59  ;;  %v2476_v29 = vrot.slane %v1455_v44, 2  ;;  %v1863_v37 = vadd.f32 %v1661_v3, %v386_v10  ;;  %v315_v63 = vld [vmem:[%s9796_s0 + $0xd28] sm:$0xff]  ;;  %v7081_v10 = vld [vmem:[%s9796_s0 + $0xd58] sm:$0xff] }
 0x13e   :  { %v1869_v0 = vadd.f32 %v1678_v43, %v392_v27  ;;  %v1875_v61 = vadd.f32 %v1690_v14, %v398_v45  ;;  %v2074_v2 = vsel %vm764_vm0, %v2067_v31, %v2073_v60  ;;  %v2086_v30 = vsel %vm764_vm0, %v2073_v60, %v2085_v17  ;;  %v219_v58 = vld [vmem:[%s9796_s0 + $0xba8] sm:$0xf8] }
 0x13f   :  { %v2098_v7 = vsel %vm764_vm0, %v2085_v17, %v9996_v48  ;;  %v2271_v8 = vadd.f32 %v2067_v31, %v554_v35  ;;  %v2277_v47 = vadd.f32 %v2074_v2, %v560_v55  ;;  %v2283_v23 = vadd.f32 %v2086_v30, %v566_v34  ;;  %v231_v3 = vld [vmem:[%s9796_s0 + $0xc08] sm:$0xff] }
 0x140   :  { %v7044_v18 = vadd.f32 %v2098_v7, %v572_v15  ;;  %v2477_v32 = vrot.slane %v1461_v5, 2  ;;  %v9986_v26 = vrot.slane %v7015_v20, 2  ;;  %v846_v33 = vrot.slane %v135_v62, 1  ;;  %v471_v5 = vld [vmem:[%s9796_s0 + $0xf08] sm:$0xc0]  ;;  %v225_v15 = vld [vmem:[%s9796_s0 + $0xbd8] sm:$0xff] }
 0x141   :  { %v2884_v25 = vrot.slane %v2271_v8, 2  ;;  %v2885_v52 = vrot.slane %v2277_v47, 2  ;;  %v847_v6 = vrot.slane %v141_v4, 1  ;;  %v2902_v21 = vrot.slane %v2283_v23, 2  ;;  %v387_v8 = vld [vmem:[%s9796_s0 + $0xde8] sm:$0xe0] }
 0x142   :  { %v2478_v11 = vsel %vm2397_vm1, %v2476_v29, %v2477_v32  ;;  %v2495_v28 = vsel %vm2397_vm1, %v2477_v32, %v9986_v26  ;;  %v9985_v9 = vrot.slane %v7044_v18, 2  ;;  %v9995_v27 = vrot.slane %v7050_v12, 1  ;;  %v483_v29 = vld [vmem:[%s9796_s0 + $0xf68] sm:$0xff] }
 0x143   :  { %v2680_v42 = vadd.f32 %v2478_v11, %v1047_v57  ;;  %v2686_v38 = vadd.f32 %v2495_v28, %v1053_v36  ;;  %v2886_v50 = vsel %vm2397_vm1, %v2884_v25, %v2885_v52  ;;  %v848_v13 = vsel %vm764_vm0, %v846_v33, %v847_v6  ;;  %v57_v36 = vld [vmem:[%s9796_s0 + $0x998] sm:$0xff]  ;;  %v645_v47 = vld [vmem:[%s9796_s0 + $0x11a8] sm:$0xff] }
 0x144   :  { %v2903_v41 = vsel %vm2397_vm1, %v2885_v52, %v2902_v21  ;;  %v2915_v56 = vsel %vm2397_vm1, %v2902_v21, %v9985_v9  ;;  %v3088_v57 = vadd.f32 %v2886_v50, %v1863_v37  ;;  %v7092_v45 = vadd.f32 %v848_v13, %v51_v19  ;;  %v7116_v37 = vld [vmem:[%s9796_s0 + $0xf98] sm:$0xff]  ;;  %v399_v19 = vld [vmem:[%s9796_s0 + $0xe48] sm:$0xff] }
 0x145   :  { %v3094_v24 = vadd.f32 %v2903_v41, %v1869_v0  ;;  %v7084_v44 = vadd.f32 %v2915_v56, %v1875_v61  ;;  %v1254_v35 = vrot.slane %v303_v39, 1  ;;  %v864_v55 = vsel %vm764_vm0, %v847_v6, %v9995_v27  ;;  %v639_v0 = vld [vmem:[%s9796_s0 + $0x1178] sm:$0xff]  ;;  %v7142_v6 = vld [vmem:[%s9796_s0 + $0x1208] sm:$0xff] }
 0x146   :  { %v3293_v1 = vrot.slane %v3088_v57, 4  ;;  %v1255_v31 = vrot.slane %v309_v46, 1  ;;  %v1271_v60 = vrot.slane %v315_v63, 1  ;;  %v7107_v43 = vadd.f32 %v864_v55, %v57_v36  ;;  %v651_v33 = vld [vmem:[%s9796_s0 + $0x11d8] sm:$0xff]  ;;  %v555_v13 = vld [vmem:[%s9796_s0 + $0x1028] sm:$0x80] }
 0x147   :  { %v3294_v17 = vrot.slane %v3094_v24, 4  ;;  %v9978_v34 = vrot.slane %v7084_v44, 4  ;;  %v9993_v14 = vrot.slane %v7081_v10, 1  ;;  %v1662_v62 = vrot.slane %v471_v5, 1  ;;  %v393_v21 = vld [vmem:[%s9796_s0 + $0xe18] sm:$0xff]  ;;  %v567_v36 = vld [vmem:[%s9796_s0 + $0x1088] sm:$0xff] }
 0x148   :  { %v1256_v61 = vsel %vm764_vm0, %v1254_v35, %v1255_v31  ;;  %v1272_v2 = vsel %vm764_vm0, %v1255_v31, %v1271_v60  ;;  %v1663_v4 = vrot.slane %v477_v16, 1  ;;  %v2068_v50 = vrot.slane %v639_v0, 1  ;;  %v561_v57 = vld [vmem:[%s9796_s0 + $0x1058] sm:$0xff]  ;;  %v136_v0 = vld [vmem:[%s9796_s0 + $0xa90] sm:$0xfc] }
 0x149   :  { %v3295_v30 = vsel %vm3214_vm2, %v3293_v1, %v3294_v17  ;;  %v3312_v7 = vsel %vm3214_vm2, %v3294_v17, %v9978_v34  ;;  %v1284_v23 = vsel %vm764_vm0, %v1271_v60, %v9993_v14  ;;  %v1456_v32 = vadd.f32 %v1256_v61, %v219_v58  ;;  %v573_v24 = vld [vmem:[%s9796_s0 + $0x10b8] sm:$0xff]  ;;  %v653_v34 = vld [vmem:[%s9796_s0 + $0x11e8] sm:$0xff]  ;;  %v648_v14 = vld [vmem:[%s9796_s0 + $0x11c0] sm:$0xff] }
 0x14a   :  { %v3497_v25 = vadd.f32 %v3295_v30, %v2680_v42  ;;  %v3503_v52 = vadd.f32 %v3312_v7, %v2686_v38  ;;  %v1462_v11 = vadd.f32 %v1272_v2, %v225_v15  ;;  %v7144_v28 = vadd.f32 %v1284_v23, %v231_v3  ;;  %v142_v30 = vld [vmem:[%s9796_s0 + $0xac0] sm:$0xff]  ;;  %v7193_v7 = vld [vmem:[%s9796_s0 + $0xaf0] sm:$0xff] }
 0x14b   :  { %v1664_v39 = vsel %vm764_vm0, %v1662_v62, %v1663_v4  ;;  %v1679_v42 = vrot.slane %v483_v29, 1  ;;  %v9984_v38 = vrot.slane %v7116_v37, 1  ;;  %v2075_v56 = vrot.slane %v645_v47, 1 }
 0x14c   :  { %v3581_v46 = vmul.f32 0.125, %v3497_v25  ;;  %v7154_v63 = vmul.f32 0.125, %v3503_v52  ;;  %v1864_v41 = vadd.f32 %v1664_v39, %v387_v8  ;;  %v2087_v35 = vrot.slane %v651_v33, 1 }
 0x14d   :  { %v1680_v5 = vsel %vm764_vm0, %v1663_v4, %v1679_v42  ;;  %v1692_v16 = vsel %vm764_vm0, %v1679_v42, %v9984_v38  ;;  %v9983_v1 = vrot.slane %v7142_v6, 1  ;;  %v2076_v17 = vsel %vm764_vm0, %v2068_v50, %v2075_v56 }
 0x14e   :  { %v3785_v58 = vrot.slane %v3581_v46, 1  ;;  %v9968_v55 = vrot.slane %v7154_v63, 1  ;;  %v1870_v31 = vadd.f32 %v1680_v5, %v393_v21  ;;  %v1876_v60 = vadd.f32 %v1692_v16, %v399_v19  ;;  %v310_v5 = vld [vmem:[%s9796_s0 + $0xd00] sm:$0xff] }
 0x14f   :  { %v2088_v15 = vsel %vm764_vm0, %v2075_v56, %v2087_v35  ;;  %v2100_v3 = vsel %vm764_vm0, %v2087_v35, %v9983_v1  ;;  %v2272_v29 = vadd.f32 %v2068_v50, %v555_v13  ;;  %v2278_v2 = vadd.f32 %v2076_v17, %v561_v57  ;;  %v52_v50 = vld [vmem:[%s9796_s0 + $0x970] sm:$0xfe] }
 0x150   :  { %v3787_v61 = vsel %vm764_vm0, %v3785_v58, %v9968_v55  ;;  %v2284_v62 = vadd.f32 %v2088_v15, %v567_v36  ;;  %v7185_v4 = vadd.f32 %v2100_v3, %v573_v24  ;;  %v2479_v8 = vrot.slane %v1456_v32, 2  ;;  %v304_v32 = vld [vmem:[%s9796_s0 + $0xcd0] sm:$0xf0]  ;;  %v58_v24 = vld [vmem:[%s9796_s0 + $0x9a0] sm:$0xff] }
 0x151   :  { %3989 = vst [vmem:[%s9797_s1 + $0x150] sm:$0xff] %v3787_v61  ;;  %v2480_v47 = vrot.slane %v1462_v11, 2  ;;  %v9982_v23 = vrot.slane %v7144_v28, 2  ;;  %v2887_v25 = vrot.slane %v2272_v29, 2  ;;  %v2888_v52 = vrot.slane %v2278_v2, 2  ;;  %v7230_v58 = vld [vmem:[%s9796_s0 + $0xd60] sm:$0xff] }
 0x152   :  { %v2904_v33 = vrot.slane %v2284_v62, 2  ;;  %v9975_v21 = vrot.slane %v7185_v4, 2  ;;  %v849_v19 = vrot.slane %v136_v0, 1  ;;  %v850_v11 = vrot.slane %v142_v30, 1  ;;  %v472_v17 = vld [vmem:[%s9796_s0 + $0xf10] sm:$0xc0] }
 0x153   :  { %v2481_v39 = vsel %vm2397_vm1, %v2479_v8, %v2480_v47  ;;  %v2497_v42 = vsel %vm2397_vm1, %v2480_v47, %v9982_v23  ;;  %v9979_v46 = vrot.slane %v7193_v7, 1  ;;  %v2889_v57 = vsel %vm2397_vm1, %v2887_v25, %v2888_v52  ;;  %v226_v25 = vld [vmem:[%s9796_s0 + $0xbe0] sm:$0xff] }
 0x154   :  { %v2681_v13 = vadd.f32 %v2481_v39, %v7092_v45  ;;  %v2687_v56 = vadd.f32 %v2497_v42, %v7107_v43  ;;  %v2905_v36 = vsel %vm2397_vm1, %v2888_v52, %v2904_v33  ;;  %v2917_v16 = vsel %vm2397_vm1, %v2904_v33, %v9975_v21  ;;  %v316_v43 = vld [vmem:[%s9796_s0 + $0xd30] sm:$0xff]  ;;  %v233_v21 = vld [vmem:[%s9796_s0 + $0xc18] sm:$0xff] }
 0x155   :  { %v3089_v35 = vadd.f32 %v2889_v57, %v1864_v41  ;;  %v3095_v45 = vadd.f32 %v2905_v36, %v1870_v31  ;;  %v851_v15 = vsel %vm764_vm0, %v849_v19, %v850_v11  ;;  %v7236_v3 = vadd.f32 %v2917_v16, %v1876_v60  ;;  %v478_v41 = vld [vmem:[%s9796_s0 + $0xf40] sm:$0xff]  ;;  %v484_v31 = vld [vmem:[%s9796_s0 + $0xf70] sm:$0xff] }
 0x156   :  { %v866_v29 = vsel %vm764_vm0, %v850_v11, %v9979_v46  ;;  %v7247_v0 = vadd.f32 %v851_v15, %v52_v50  ;;  %v1257_v61 = vrot.slane %v304_v32, 1  ;;  %v220_v60 = vld [vmem:[%s9796_s0 + $0xbb0] sm:$0xf8]  ;;  %v1258_v8 = vrot.slane %v310_v5, 1  ;;  %v7266_v50 = vld [vmem:[%s9796_s0 + $0xfa0] sm:$0xff] }
 0x157   :  { %v3296_v2 = vrot.slane %v3089_v35, 4  ;;  %v3297_v62 = vrot.slane %v3095_v45, 4  ;;  %v7252_v30 = vadd.f32 %v866_v29, %v58_v24  ;;  %v9969_v47 = vrot.slane %v7236_v3, 4  ;;  %v232_v52 = vld [vmem:[%s9796_s0 + $0xc10] sm:$0xff]  ;;  %v394_v16 = vld [vmem:[%s9796_s0 + $0xe20] sm:$0xff] }
 0x158   :  { %v1273_v33 = vrot.slane %v316_v43, 1  ;;  %v9977_v19 = vrot.slane %v7230_v58, 1  ;;  %v1665_v39 = vrot.slane %v472_v17, 1  ;;  %v1259_v32 = vsel %vm764_vm0, %v1257_v61, %v1258_v8  ;;  %v388_v5 = vld [vmem:[%s9796_s0 + $0xdf0] sm:$0xe0]  ;;  %v640_v35 = vld [vmem:[%s9796_s0 + $0x1180] sm:$0xff] }
 0x159   :  { %v3298_v42 = vsel %vm3214_vm2, %v3296_v2, %v3297_v62  ;;  %v1666_v11 = vrot.slane %v478_v41, 1  ;;  %v1681_v57 = vrot.slane %v484_v31, 1  ;;  %v3314_v36 = vsel %vm3214_vm2, %v3297_v62, %v9969_v47  ;;  %v652_v15 = vld [vmem:[%s9796_s0 + $0x11e0] sm:$0xff]  ;;  %v400_v2 = vld [vmem:[%s9796_s0 + $0xe50] sm:$0xff] }
 0x15a   :  { %v3498_v24 = vadd.f32 %v3298_v42, %v2681_v13  ;;  %v1274_v45 = vsel %vm764_vm0, %v1258_v8, %v1273_v33  ;;  %v1286_v43 = vsel %vm764_vm0, %v1273_v33, %v9977_v19  ;;  %v3504_v17 = vadd.f32 %v3314_v36, %v2687_v56  ;;  %v646_v13 = vld [vmem:[%s9796_s0 + $0x11b0] sm:$0xff]  ;;  %v647_v19 = vld [vmem:[%s9796_s0 + $0x11b8] sm:$0xff] }
 0x15b   :  { %v1457_v41 = vadd.f32 %v1259_v32, %v220_v60  ;;  %v1463_v31 = vadd.f32 %v1274_v45, %v226_v25  ;;  %v7291_v29 = vadd.f32 %v1286_v43, %v232_v52  ;;  %v556_v56 = vld [vmem:[%s9796_s0 + $0x1030] sm:$0x80]  ;;  %v1667_v8 = vsel %vm764_vm0, %v1665_v39, %v1666_v11 }
 0x15c   :  { %v3582_v61 = vmul.f32 0.125, %v3498_v24  ;;  %v7302_v62 = vld [vmem:[%s9796_s0 + $0x1210] sm:$0xff]  ;;  %v1682_v60 = vsel %vm764_vm0, %v1666_v11, %v1681_v57  ;;  %v9974_v25 = vrot.slane %v7266_v50, 1  ;;  %v7307_v52 = vmul.f32 0.125, %v3504_v17  ;;  %v562_v24 = vld [vmem:[%s9796_s0 + $0x1060] sm:$0xff] }
 0x15d   :  { %v1865_v33 = vadd.f32 %v1667_v8, %v388_v5  ;;  %v1871_v42 = vadd.f32 %v1682_v60, %v394_v16  ;;  %v2069_v32 = vrot.slane %v640_v35, 1  ;;  %v568_v45 = vld [vmem:[%s9796_s0 + $0x1090] sm:$0xff]  ;;  %v2077_v11 = vrot.slane %v646_v13, 1  ;;  %v574_v5 = vld [vmem:[%s9796_s0 + $0x10c0] sm:$0xff] }
 0x15e   :  { %v3788_v36 = vrot.slane %v3582_v61, 1  ;;  %v1694_v39 = vsel %vm764_vm0, %v1681_v57, %v9974_v25  ;;  %v2089_v43 = vrot.slane %v652_v15, 1  ;;  %v9970_v17 = vrot.slane %v7307_v52, 1  ;;  %v137_v57 = vld [vmem:[%s9796_s0 + $0xa98] sm:$0xfc] }
 0x15f   :  { %v1877_v16 = vadd.f32 %v1694_v39, %v400_v2  ;;  %v9972_v35 = vrot.slane %v7302_v62, 1  ;;  %v2273_v61 = vadd.f32 %v2069_v32, %v556_v56  ;;  %v2078_v8 = vsel %vm764_vm0, %v2069_v32, %v2077_v11  ;;  %v143_v32 = vld [vmem:[%s9796_s0 + $0xac8] sm:$0xff]  ;;  %v305_v39 = vld [vmem:[%s9796_s0 + $0xcd8] sm:$0xf0] }
 0x160   :  { %v2090_v60 = vsel %vm764_vm0, %v2077_v11, %v2089_v43  ;;  %v2482_v55 = vrot.slane %v1457_v41, 2  ;;  %v2483_v47 = vrot.slane %v1463_v31, 2  ;;  %v3790_v13 = vsel %vm764_vm0, %v3788_v36, %v9970_v17  ;;  %v7340_v41 = vld [vmem:[%s9796_s0 + $0xaf8] sm:$0xff] }
 0x161   :  { %v2102_v15 = vsel %vm764_vm0, %v2089_v43, %v9972_v35  ;;  %v2279_v2 = vadd.f32 %v2078_v8, %v562_v24  ;;  %v2285_v56 = vadd.f32 %v2090_v60, %v568_v45  ;;  %3990 = vst [vmem:[%s9797_s1 + $0x158] sm:$0xff] %v3790_v13  ;;  %v9971_v24 = vrot.slane %v7291_v29, 2 }
 0x162   :  { %v7345_v31 = vadd.f32 %v2102_v15, %v574_v5  ;;  %v2484_v36 = vsel %vm2397_vm1, %v2482_v55, %v2483_v47  ;;  %v2890_v45 = vrot.slane %v2273_v61, 2  ;;  %v852_v60 = vrot.slane %v137_v57, 1  ;;  %v53_v55 = vld [vmem:[%s9796_s0 + $0x978] sm:$0xfe]  ;;  %v311_v61 = vld [vmem:[%s9796_s0 + $0xd08] sm:$0xff] }
 0x163   :  { %v2682_v11 = vadd.f32 %v2484_v36, %v7247_v0  ;;  %v2891_v43 = vrot.slane %v2279_v2, 2  ;;  %v2906_v8 = vrot.slane %v2285_v56, 2  ;;  %v2499_v13 = vsel %vm2397_vm1, %v2483_v47, %v9971_v24  ;;  %v59_v47 = vld [vmem:[%s9796_s0 + $0x9a8] sm:$0xff]  ;;  %v317_v36 = vld [vmem:[%s9796_s0 + $0xd38] sm:$0xff] }
 0x164   :  { %v9973_v5 = vrot.slane %v7345_v31, 2  ;;  %v853_v15 = vrot.slane %v143_v32, 1  ;;  %v9976_v0 = vrot.slane %v7340_v41, 1  ;;  %v2688_v2 = vadd.f32 %v2499_v13, %v7252_v30  ;;  %v7379_v30 = vld [vmem:[%s9796_s0 + $0xd68] sm:$0xff] }
 0x165   :  { %v2892_v57 = vsel %vm2397_vm1, %v2890_v45, %v2891_v43  ;;  %v2907_v56 = vsel %vm2397_vm1, %v2891_v43, %v2906_v8  ;;  %v1260_v17 = vrot.slane %v305_v39, 1  ;;  %v473_v45 = vld [vmem:[%s9796_s0 + $0xf18] sm:$0xc0] }
 0x166   :  { %v2919_v32 = vsel %vm2397_vm1, %v2906_v8, %v9973_v5  ;;  %v3090_v24 = vadd.f32 %v2892_v57, %v1865_v33  ;;  %v3096_v35 = vadd.f32 %v2907_v56, %v1871_v42  ;;  %v854_v43 = vsel %vm764_vm0, %v852_v60, %v853_v15  ;;  %v221_v39 = vld [vmem:[%s9796_s0 + $0xbb8] sm:$0xf8]  ;;  %v479_v33 = vld [vmem:[%s9796_s0 + $0xf48] sm:$0xff] }
 0x167   :  { %v7385_v13 = vadd.f32 %v2919_v32, %v1877_v16  ;;  %v868_v42 = vsel %vm764_vm0, %v853_v15, %v9976_v0  ;;  %v7396_v8 = vadd.f32 %v854_v43, %v53_v55  ;;  %v1261_v57 = vrot.slane %v311_v61, 1  ;;  %v227_v16 = vld [vmem:[%s9796_s0 + $0xbe8] sm:$0xff]  ;;  %v485_v55 = vld [vmem:[%s9796_s0 + $0xf78] sm:$0xff] }
 0x168   :  { %v3299_v56 = vrot.slane %v3090_v24, 4  ;;  %v3300_v5 = vrot.slane %v3096_v35, 4  ;;  %v7401_v60 = vadd.f32 %v868_v42, %v59_v47  ;;  %v1275_v32 = vrot.slane %v317_v36, 1  ;;  %v389_v47 = vld [vmem:[%s9796_s0 + $0xdf8] sm:$0xe0]  ;;  %v7419_v36 = vld [vmem:[%s9796_s0 + $0xfa8] sm:$0xff] }
 0x169   :  { %v9980_v25 = vrot.slane %v7385_v13, 4  ;;  %v1262_v24 = vsel %vm764_vm0, %v1260_v17, %v1261_v57  ;;  %v9981_v35 = vrot.slane %v7379_v30, 1  ;;  %v1668_v61 = vrot.slane %v473_v45, 1  ;;  %v641_v43 = vld [vmem:[%s9796_s0 + $0x1188] sm:$0xff] }
 0x16a   :  { %v3301_v15 = vsel %vm3214_vm2, %v3299_v56, %v3300_v5  ;;  %v1276_v17 = vsel %vm764_vm0, %v1261_v57, %v1275_v32  ;;  %v1458_v42 = vadd.f32 %v1262_v24, %v221_v39  ;;  %v1669_v0 = vrot.slane %v479_v33, 1  ;;  %v395_v33 = vld [vmem:[%s9796_s0 + $0xe28] sm:$0xff] }
 0x16b   :  { %v3316_v45 = vsel %vm3214_vm2, %v3300_v5, %v9980_v25  ;;  %v3499_v56 = vadd.f32 %v3301_v15, %v2682_v11  ;;  %v1288_v46 = vsel %vm764_vm0, %v1275_v32, %v9981_v35  ;;  %v1464_v57 = vadd.f32 %v1276_v17, %v227_v16  ;;  %v7443_v11 = vld [vmem:[%s9796_s0 + $0x1218] sm:$0xff] }
 0x16c   :  { %v3505_v39 = vadd.f32 %v3316_v45, %v2688_v2  ;;  %v7445_v5 = vadd.f32 %v1288_v46, %v233_v21  ;;  %v1670_v24 = vsel %vm764_vm0, %v1668_v61, %v1669_v0  ;;  %v1683_v15 = vrot.slane %v485_v55, 1  ;;  %v401_v16 = vld [vmem:[%s9796_s0 + $0xe58] sm:$0xff]  ;;  %v563_v21 = vld [vmem:[%s9796_s0 + $0x1068] sm:$0xff] }
 0x16d   :  { %v3583_v25 = vmul.f32 0.125, %v3499_v56  ;;  %v557_v2 = vld [vmem:[%s9796_s0 + $0x1038] sm:$0x80]  ;;  %v9992_v32 = vrot.slane %v7419_v36, 1  ;;  %v1866_v17 = vadd.f32 %v1670_v24, %v389_v47  ;;  %v2070_v45 = vrot.slane %v641_v43, 1  ;;  %v575_v47 = vld [vmem:[%s9796_s0 + $0x10c8] sm:$0xff] }
 0x16e   :  { %v7455_v35 = vmul.f32 0.125, %v3505_v39  ;;  %v569_v46 = vld [vmem:[%s9796_s0 + $0x1098] sm:$0xff]  ;;  %v1684_v55 = vsel %vm764_vm0, %v1669_v0, %v1683_v15  ;;  %v2079_v61 = vrot.slane %v647_v19, 1  ;;  %v2091_v56 = vrot.slane %v653_v34, 1 }
 0x16f   :  { %v3791_v23 = vrot.slane %v3583_v25, 1  ;;  %v1696_v43 = vsel %vm764_vm0, %v1683_v15, %v9992_v32  ;;  %v1872_v39 = vadd.f32 %v1684_v55, %v395_v33  ;;  %v9990_v24 = vrot.slane %v7443_v11, 1  ;;  %v138_v33 = vld [vmem:[%s9796_s0 + $0xaa0] sm:$0xfc]  ;;  %v144_v15 = vld [vmem:[%s9796_s0 + $0xad0] sm:$0xff] }
 0x170   :  { %10430 = vst [vmem:[#allocation16_spill] sm:$0xff] %v7455_v35  ;;  %v9987_v1 = vrot.slane %v7455_v35, 1  ;;  %v1878_v38 = vadd.f32 %v1696_v43, %v401_v16  ;;  %v2080_v9 = vsel %vm764_vm0, %v2070_v45, %v2079_v61  ;;  %v2092_v19 = vsel %vm764_vm0, %v2079_v61, %v2091_v56  ;;  %v642_v32 = vld [vmem:[%s9796_s0 + $0x1190] sm:$0xff] }
 0x171   :  { %v2104_v34 = vsel %vm764_vm0, %v2091_v56, %v9990_v24  ;;  %v2274_v25 = vadd.f32 %v2070_v45, %v557_v2  ;;  %v2280_v0 = vadd.f32 %v2080_v9, %v563_v21  ;;  %v2286_v26 = vadd.f32 %v2092_v19, %v569_v46 }
 0x172   :  { %v3793_v16 = vsel %vm764_vm0, %v3791_v23, %v9987_v1  ;;  %v7486_v55 = vadd.f32 %v2104_v34, %v575_v47  ;;  %v2485_v61 = vrot.slane %v1458_v42, 2  ;;  %v2486_v43 = vrot.slane %v1464_v57, 2  ;;  %v7497_v23 = vld [vmem:[%s9796_s0 + $0xb00] sm:$0xff] }
 0x173   :  { %3991 = vst [vmem:[%s9797_s1 + $0x160] sm:$0xff] %v3793_v16  ;;  %v9989_v9 = vrot.slane %v7445_v5, 2  ;;  %v2893_v2 = vrot.slane %v2274_v25, 2  ;;  %v2894_v45 = vrot.slane %v2280_v0, 2  ;;  %v2908_v21 = vrot.slane %v2286_v26, 2  ;;  %v312_v16 = vld [vmem:[%s9796_s0 + $0xd10] sm:$0xff] }
 0x174   :  { %v2487_v46 = vsel %vm2397_vm1, %v2485_v61, %v2486_v43  ;;  %v9988_v56 = vrot.slane %v7486_v55, 2  ;;  %v306_v42 = vld [vmem:[%s9796_s0 + $0xce0] sm:$0xf0]  ;;  %v855_v57 = vrot.slane %v138_v33, 1  ;;  %v856_v47 = vrot.slane %v144_v15, 1 }
 0x175   :  { %v2501_v19 = vsel %vm2397_vm1, %v2486_v43, %v9989_v9  ;;  %v2683_v26 = vadd.f32 %v2487_v46, %v7396_v8  ;;  %v2895_v34 = vsel %vm2397_vm1, %v2893_v2, %v2894_v45  ;;  %v2909_v25 = vsel %vm2397_vm1, %v2894_v45, %v2908_v21  ;;  %v54_v0 = vld [vmem:[%s9796_s0 + $0x980] sm:$0xfe]  ;;  %v7524_v2 = vld [vmem:[%s9796_s0 + $0xd70] sm:$0xff] }
 0x176   :  { %v2689_v33 = vadd.f32 %v2501_v19, %v7401_v60  ;;  %v2921_v15 = vsel %vm2397_vm1, %v2908_v21, %v9988_v56  ;;  %v3091_v61 = vadd.f32 %v2895_v34, %v1866_v17  ;;  %v3097_v8 = vadd.f32 %v2909_v25, %v1872_v39  ;;  %v318_v43 = vld [vmem:[%s9796_s0 + $0xd40] sm:$0xff]  ;;  %v60_v60 = vld [vmem:[%s9796_s0 + $0x9b0] sm:$0xff] }
 0x177   :  { %v7526_v45 = vadd.f32 %v2921_v15, %v1878_v38  ;;  %v474_v17 = vld [vmem:[%s9796_s0 + $0xf20] sm:$0xc0]  ;;  %v857_v39 = vsel %vm764_vm0, %v855_v57, %v856_v47  ;;  %v9991_v21 = vrot.slane %v7497_v23, 1  ;;  %v1263_v46 = vrot.slane %v306_v42, 1  ;;  %v228_v56 = vld [vmem:[%s9796_s0 + $0xbf0] sm:$0xff] }
 0x178   :  { %v3302_v19 = vrot.slane %v3091_v61, 4  ;;  %v3303_v34 = vrot.slane %v3097_v8, 4  ;;  %v222_v38 = vld [vmem:[%s9796_s0 + $0xbc0] sm:$0xf8]  ;;  %v7539_v25 = vadd.f32 %v857_v39, %v54_v0  ;;  %v1264_v15 = vrot.slane %v312_v16, 1  ;;  %v480_v16 = vld [vmem:[%s9796_s0 + $0xf50] sm:$0xff] }
 0x179   :  { %10431 = vst [vmem:[#allocation18_spill] sm:$0xff] %v7526_v45  ;;  %v9994_v1 = vrot.slane %v7526_v45, 4  ;;  %v234_v57 = vld [vmem:[%s9796_s0 + $0xc20] sm:$0xff]  ;;  %v870_v42 = vsel %vm764_vm0, %v856_v47, %v9991_v21  ;;  %v1277_v61 = vrot.slane %v318_v43, 1  ;;  %v9997_v8 = vrot.slane %v7524_v2, 1  ;;  %v7562_v9 = vld [vmem:[%s9796_s0 + $0xfb0] sm:$0xff] }
 0x17a   :  { %v3304_v0 = vsel %vm3214_vm2, %v3302_v19, %v3303_v34  ;;  %v486_v39 = vld [vmem:[%s9796_s0 + $0xf80] sm:$0xff]  ;;  %v7564_v24 = vadd.f32 %v870_v42, %v60_v60  ;;  %v1265_v47 = vsel %vm764_vm0, %v1263_v46, %v1264_v15  ;;  %v1671_v43 = vrot.slane %v474_v17, 1  ;;  %v654_v60 = vld [vmem:[%s9796_s0 + $0x11f0] sm:$0xff] }
 0x17b   :  { %v3318_v19 = vsel %vm3214_vm2, %v3303_v34, %v9994_v1  ;;  %v3500_v21 = vadd.f32 %v3304_v0, %v2683_v26  ;;  %v1278_v46 = vsel %vm764_vm0, %v1264_v15, %v1277_v61  ;;  %v1290_v17 = vsel %vm764_vm0, %v1277_v61, %v9997_v8  ;;  %v390_v26 = vld [vmem:[%s9796_s0 + $0xe00] sm:$0xe0]  ;;  %v396_v15 = vld [vmem:[%s9796_s0 + $0xe30] sm:$0xff] }
 0x17c   :  { %v3506_v34 = vadd.f32 %v3318_v19, %v2689_v33  ;;  %v7589_v42 = vld [vmem:[%s9796_s0 + $0x1220] sm:$0xff]  ;;  %v1459_v0 = vadd.f32 %v1265_v47, %v222_v38  ;;  %v1465_v1 = vadd.f32 %v1278_v46, %v228_v56  ;;  %v7591_v27 = vadd.f32 %v1290_v17, %v234_v57  ;;  %v564_v46 = vld [vmem:[%s9796_s0 + $0x1070] sm:$0xff] }
 0x17d   :  { %10432 = vst [vmem:[#allocation15_spill] sm:$0xff] %v7589_v42  ;;  %v3584_v48 = vmul.f32 0.125, %v3500_v21  ;;  %v402_v33 = vld [vmem:[%s9796_s0 + $0xe60] sm:$0xff]  ;;  %v1672_v61 = vrot.slane %v480_v16, 1  ;;  %v1685_v19 = vrot.slane %v486_v39, 1  ;;  %v10005_v8 = vrot.slane %v7562_v9, 1 }
 0x17e   :  { %10433 = vst [vmem:[#allocation17_spill] sm:$0xff] %v7591_v27  ;;  %v7600_v59 = vmul.f32 0.125, %v3506_v34  ;;  %v558_v56 = vld [vmem:[%s9796_s0 + $0x1040] sm:$0x80]  ;;  %v2071_v38 = vrot.slane %v642_v32, 1  ;;  %v2081_v21 = vrot.slane %v648_v14, 1 }
 0x17f   :  { %v2093_v57 = vrot.slane %v654_v60, 1  ;;  %v3794_v47 = vrot.slane %v3584_v48, 1  ;;  %v570_v16 = vld [vmem:[%s9796_s0 + $0x10a0] sm:$0xff]  ;;  %v1673_v39 = vsel %vm764_vm0, %v1671_v43, %v1672_v61  ;;  %v1686_v17 = vsel %vm764_vm0, %v1672_v61, %v1685_v19 }
 0x180   :  { %10434 = vst [vmem:[#allocation7_spill] sm:$0xff] %v7600_v59  ;;  %v1698_v34 = vsel %vm764_vm0, %v1685_v19, %v10005_v8  ;;  %v10002_v14 = vrot.slane %v7600_v59, 1  ;;  %v1867_v32 = vadd.f32 %v1673_v39, %v390_v26  ;;  %v1873_v48 = vadd.f32 %v1686_v17, %v396_v15  ;;  %v139_v19 = vld [vmem:[%s9796_s0 + $0xaa8] sm:$0xfc]  ;;  %v145_v17 = vld [vmem:[%s9796_s0 + $0xad8] sm:$0xff] }
 0x181   :  { %v1879_v60 = vadd.f32 %v1698_v34, %v402_v33  ;;  %v2082_v22 = vsel %vm764_vm0, %v2071_v38, %v2081_v21  ;;  %v2094_v35 = vsel %vm764_vm0, %v2081_v21, %v2093_v57  ;;  %v10004_v43 = vrot.slane %v7589_v42, 1  ;;  %v7635_v21 = vld [vmem:[%s9796_s0 + $0xb08] sm:$0xff] }
 0x182   :  { %v2275_v61 = vadd.f32 %v2071_v38, %v558_v56  ;;  %v3796_v26 = vsel %vm764_vm0, %v3794_v47, %v10002_v14  ;;  %v2281_v15 = vadd.f32 %v2082_v22, %v564_v46  ;;  %v2287_v33 = vadd.f32 %v2094_v35, %v570_v16  ;;  %10435 = vst [vmem:[#allocation6_spill] sm:$0xff] %v7635_v21  ;;  %v307_v16 = vld [vmem:[%s9796_s0 + $0xce8] sm:$0xf0] }
 0x183   :  { %v2488_v39 = vrot.slane %v1459_v0, 2  ;;  %3992 = vst [vmem:[%s9797_s1 + $0x168] sm:$0xff] %v3796_v26  ;;  %v2106_v56 = vsel %vm764_vm0, %v2093_v57, %v10004_v43  ;;  %v2489_v22 = vrot.slane %v1465_v1, 2  ;;  %v10003_v35 = vrot.slane %v7591_v27, 2  ;;  %v55_v1 = vld [vmem:[%s9796_s0 + $0x988] sm:$0xfe] }
 0x184   :  { %v2896_v0 = vrot.slane %v2275_v61, 2  ;;  %v7644_v38 = vadd.f32 %v2106_v56, %v576_v49  ;;  %v2897_v47 = vrot.slane %v2281_v15, 2  ;;  %v2910_v46 = vrot.slane %v2287_v33, 2  ;;  %v313_v49 = vld [vmem:[%s9796_s0 + $0xd18] sm:$0xff] }
 0x185   :  { %v858_v34 = vrot.slane %v139_v19, 1  ;;  %v2490_v14 = vsel %vm2397_vm1, %v2488_v39, %v2489_v22  ;;  %v2503_v26 = vsel %vm2397_vm1, %v2489_v22, %v10003_v35  ;;  %v859_v57 = vrot.slane %v145_v17, 1  ;;  %v61_v56 = vld [vmem:[%s9796_s0 + $0x9b8] sm:$0xff]  ;;  %v319_v17 = vld [vmem:[%s9796_s0 + $0xd48] sm:$0xff] }
 0x186   :  { %10436 = vst [vmem:[#allocation4_spill] sm:$0xff] %v7644_v38  ;;  %v10010_v61 = vrot.slane %v7635_v21, 1  ;;  %v2684_v15 = vadd.f32 %v2490_v14, %v7539_v25  ;;  %v2690_v19 = vadd.f32 %v2503_v26, %v7564_v24  ;;  %v2898_v33 = vsel %vm2397_vm1, %v2896_v0, %v2897_v47  ;;  %v7674_v24 = vld [vmem:[%s9796_s0 + $0xd78] sm:$0xff]  ;;  %v475_v25 = vld [vmem:[%s9796_s0 + $0xf28] sm:$0xc0] }
 0x187   :  { %v2911_v39 = vsel %vm2397_vm1, %v2897_v47, %v2910_v46  ;;  %v10009_v22 = vrot.slane %v7644_v38, 2  ;;  %v3092_v35 = vadd.f32 %v2898_v33, %v1867_v32  ;;  %10437 = vst [vmem:[#allocation9_spill] sm:$0xff] %v7674_v24  ;;  %v860_v14 = vsel %vm764_vm0, %v858_v34, %v859_v57  ;;  %v223_v32 = vld [vmem:[%s9796_s0 + $0xbc8] sm:$0xf8]  ;;  %v229_v27 = vld [vmem:[%s9796_s0 + $0xbf8] sm:$0xff] }
 0x188   :  { %v3098_v43 = vadd.f32 %v2911_v39, %v1873_v48  ;;  %v481_v48 = vld [vmem:[%s9796_s0 + $0xf58] sm:$0xff]  ;;  %v872_v0 = vsel %vm764_vm0, %v859_v57, %v10010_v61  ;;  %v7689_v47 = vadd.f32 %v860_v14, %v55_v1  ;;  %v1266_v26 = vrot.slane %v307_v16, 1  ;;  %v235_v1 = vld [vmem:[%s9796_s0 + $0xc28] sm:$0xff] }
 0x189   :  { %v1267_v33 = vrot.slane %v313_v49, 1  ;;  %v2923_v34 = vsel %vm2397_vm1, %v2910_v46, %v10009_v22  ;;  %v3305_v39 = vrot.slane %v3092_v35, 4  ;;  %v7694_v59 = vadd.f32 %v872_v0, %v61_v56  ;;  %v487_v16 = vld [vmem:[%s9796_s0 + $0xf88] sm:$0xff]  ;;  %v7716_v57 = vld [vmem:[%s9796_s0 + $0xfb8] sm:$0xff] }
 0x18a   :  { %v3306_v8 = vrot.slane %v3098_v43, 4  ;;  %v7696_v45 = vadd.f32 %v2923_v34, %v1879_v60  ;;  %v1279_v35 = vrot.slane %v319_v17, 1  ;;  %v10012_v43 = vrot.slane %v7674_v24, 1  ;;  %v391_v49 = vld [vmem:[%s9796_s0 + $0xe08] sm:$0xe0]  ;;  %10439 = vst [vmem:[#allocation3_spill] sm:$0xff] %v7716_v57 }
 0x18b   :  { %v1268_v46 = vsel %vm764_vm0, %v1266_v26, %v1267_v33  ;;  %v1674_v14 = vrot.slane %v475_v25, 1  ;;  %v1675_v0 = vrot.slane %v481_v48, 1  ;;  %v643_v17 = vld [vmem:[%s9796_s0 + $0x1198] sm:$0xff] }
 0x18c   :  { %10438 = vst [vmem:[#allocation11_spill] sm:$0xff] %v7696_v45  ;;  %v3307_v60 = vsel %vm3214_vm2, %v3305_v39, %v3306_v8  ;;  %v1460_v56 = vadd.f32 %v1268_v46, %v223_v32  ;;  %v10013_v34 = vrot.slane %v7696_v45, 4  ;;  %v649_v39 = vld [vmem:[%s9796_s0 + $0x11c8] sm:$0xff]  ;;  %v1280_v22 = vsel %vm764_vm0, %v1267_v33, %v1279_v35  ;;  %v397_v25 = vld [vmem:[%s9796_s0 + $0xe38] sm:$0xff] }
 0x18d   :  { %v3501_v26 = vadd.f32 %v3307_v60, %v2684_v15  ;;  %v1292_v61 = vsel %vm764_vm0, %v1279_v35, %v10012_v43  ;;  %v655_v15 = vld [vmem:[%s9796_s0 + $0x11f8] sm:$0xff]  ;;  %v1466_v32 = vadd.f32 %v1280_v22, %v229_v27  ;;  %v1676_v46 = vsel %vm764_vm0, %v1674_v14, %v1675_v0  ;;  %v403_v35 = vld [vmem:[%s9796_s0 + $0xe68] sm:$0xff] }
 0x18e   :  { %v7735_v48 = vadd.f32 %v1292_v61, %v235_v1  ;;  %v1687_v60 = vrot.slane %v487_v16, 1  ;;  %v3320_v33 = vsel %vm3214_vm2, %v3306_v8, %v10013_v34  ;;  %v7747_v43 = vld [vmem:[%s9796_s0 + $0x1228] sm:$0xff]  ;;  %v10034_v27 = vrot.slane %v7716_v57, 1  ;;  %v565_v8 = vld [vmem:[%s9796_s0 + $0x1078] sm:$0xff] }
 0x18f   :  { %v3585_v38 = vmul.f32 0.125, %v3501_v26  ;;  %v1868_v61 = vadd.f32 %v1676_v46, %v391_v49  ;;  %v3507_v22 = vadd.f32 %v3320_v33, %v2690_v19  ;;  %v559_v1 = vld [vmem:[%s9796_s0 + $0x1048] sm:$0x80]  ;;  %v2072_v14 = vrot.slane %v643_v17, 1  ;;  %v577_v24 = vld [vmem:[%s9796_s0 + $0x10d8] sm:$0xff] }
 0x190   :  { %v1688_v16 = vsel %vm764_vm0, %v1675_v0, %v1687_v60  ;;  %v2083_v26 = vrot.slane %v649_v39, 1  ;;  %v571_v45 = vld [vmem:[%s9796_s0 + $0x10a8] sm:$0xff]  ;;  %v1700_v19 = vsel %vm764_vm0, %v1687_v60, %v10034_v27  ;;  %v2095_v46 = vrot.slane %v655_v15, 1 }
 0x191   :  { %v3797_v34 = vrot.slane %v3585_v38, 1  ;;  %v1874_v49 = vadd.f32 %v1688_v16, %v397_v25  ;;  %v7763_v33 = vmul.f32 0.125, %v3507_v22  ;;  %v1880_v0 = vadd.f32 %v1700_v19, %v403_v35  ;;  %v7774_v25 = vld [vmem:[%s9796_s0 + $0xb10] sm:$0xff] }
 0x192   :  { %v2084_v17 = vsel %vm764_vm0, %v2072_v14, %v2083_v26  ;;  %v10024_v38 = vrot.slane %v7747_v43, 1  ;;  %v2096_v39 = vsel %vm764_vm0, %v2083_v26, %v2095_v46  ;;  %v2276_v21 = vadd.f32 %v2072_v14, %v559_v1 }
 0x193   :  { %v2282_v42 = vadd.f32 %v2084_v17, %v565_v8  ;;  %v2491_v57 = vrot.slane %v1460_v56, 2  ;;  %v10019_v15 = vrot.slane %v7763_v33, 1  ;;  %v2288_v35 = vadd.f32 %v2096_v39, %v571_v45  ;;  %v62_v17 = vld [vmem:[%s9796_s0 + $0x9c0] sm:$0xff] }
 0x194   :  { %v2108_v60 = vsel %vm764_vm0, %v2095_v46, %v10024_v38  ;;  %v2492_v22 = vrot.slane %v1466_v32, 2  ;;  %v10021_v26 = vrot.slane %v7735_v48, 2  ;;  %v2899_v1 = vrot.slane %v2276_v21, 2  ;;  %v7793_v45 = vld [vmem:[%s9796_s0 + $0xd80] sm:$0xff]  ;;  %v7813_v46 = vld [vmem:[%s9796_s0 + $0x1230] sm:$0xff] }
 0x195   :  { %v7780_v16 = vadd.f32 %v2108_v60, %v577_v24  ;;  %v2900_v8 = vrot.slane %v2282_v42, 2  ;;  %v3799_v56 = vsel %vm764_vm0, %v3797_v34, %v10019_v15  ;;  %v2912_v19 = vrot.slane %v2288_v35, 2  ;;  %v7808_v32 = vld [vmem:[%s9796_s0 + $0xfc0] sm:$0xff] }
 0x196   :  { %v2493_v14 = vsel %vm2397_vm1, %v2491_v57, %v2492_v22  ;;  %v10023_v24 = vrot.slane %v7774_v25, 1  ;;  %3993 = vst [vmem:[%s9797_s1 + $0x170] sm:$0xff] %v3799_v56  ;;  %v2505_v42 = vsel %vm2397_vm1, %v2492_v22, %v10021_v26  ;;  %v7830_v56 = vld [vmem:[%s9796_s0 + $0xd88] sm:$0xff]  ;;  %v578_v15 = vld [vmem:[%s9796_s0 + $0x10e0] sm:$0xff]  ;;  %v10451_v27 = vrot.slane %v7193_v7, 1  ;;  %v580_v7 = vld [vmem:[%s9796_s0 + $0x10f0] sm:$0xff] }
 0x197   :  { %v2685_v21 = vadd.f32 %v2493_v14, %v7689_v47  ;;  %v2901_v57 = vsel %vm2397_vm1, %v2899_v1, %v2900_v8  ;;  %v10020_v34 = vrot.slane %v7780_v16, 2  ;;  %v2691_v39 = vadd.f32 %v2505_v42, %v7694_v59  ;;  %v7825_v1 = vld [vmem:[%s9796_s0 + $0xb18] sm:$0xff] }
 0x198   :  { %v2913_v60 = vsel %vm2397_vm1, %v2900_v8, %v2912_v19  ;;  %v3093_v35 = vadd.f32 %v2901_v57, %v1868_v61  ;;  %v10440_v47 = vrot.slane %v6874_v51, 1  ;;  %v236_v51 = vld [vmem:[%s9796_s0 + $0xc30] sm:$0xff]  ;;  %v10022_v14 = vrot.slane %v7793_v45, 1 }
 0x199   :  { %v2925_v59 = vsel %vm2397_vm1, %v2912_v19, %v10020_v34  ;;  %v3099_v61 = vadd.f32 %v2913_v60, %v1874_v49  ;;  %v10026_v49 = vrot.slane %v7808_v32, 1  ;;  %v10025_v19 = vrot.slane %v7813_v46, 1 }
 0x19a   :  { %v874_v22 = vsel %vm764_vm0, %v10440_v47, %v10023_v24  ;;  %v7839_v42 = vadd.f32 %v2925_v59, %v1880_v0  ;;  %v3308_v57 = vrot.slane %v3093_v35, 4  ;;  %v404_v47 = vld [vmem:[%s9796_s0 + $0xe70] sm:$0xff]  ;;  %v63_v35 = vld [vmem:[%s9796_s0 + $0x9c8] sm:$0xff]  ;;  %v10030_v59 = vrot.slane %v7830_v56, 1 }
 0x19b   :  { %v1059_v8 = vadd.f32 %v874_v22, %v62_v17  ;;  %v3309_v60 = vrot.slane %v3099_v61, 4  ;;  %v10441_v17 = vrot.slane %v6930_v54, 1  ;;  %v10027_v22 = vrot.slane %v7825_v1, 1  ;;  %v7875_v24 = vld [vmem:[%s9796_s0 + $0xfc8] sm:$0xff] }
 0x19c   :  { %v10031_v34 = vrot.slane %v7839_v42, 4  ;;  %v10442_v61 = vrot.slane %v6970_v53, 1  ;;  %v237_v53 = vld [vmem:[%s9796_s0 + $0xc38] sm:$0xff] }
 0x19d   :  { %v1294_v0 = vsel %vm764_vm0, %v10441_v17, %v10022_v14  ;;  %v10443_v17 = vrot.slane %v6994_v40, 1  ;;  %v7886_v40 = vld [vmem:[%s9796_s0 + $0x1238] sm:$0xff] }
 0x19e   :  { %v7860_v26 = vadd.f32 %v1294_v0, %v236_v51  ;;  %v1702_v54 = vsel %vm764_vm0, %v10442_v61, %v10026_v49  ;;  %v3310_v51 = vsel %vm3214_vm2, %v3308_v57, %v3309_v60  ;;  %v10444_v61 = vrot.slane %v7050_v12, 1  ;;  %v405_v49 = vld [vmem:[%s9796_s0 + $0xe78] sm:$0xff] }
 0x19f   :  { %v2110_v14 = vsel %vm764_vm0, %v10443_v17, %v10025_v19  ;;  %v1881_v0 = vadd.f32 %v1702_v54, %v404_v47  ;;  %v10445_v12 = vrot.slane %v7081_v10, 1  ;;  %v7921_v10 = vld [vmem:[%s9796_s0 + $0xb20] sm:$0xff] }
 0x1a0   :  { %v7878_v38 = vadd.f32 %v2110_v14, %v578_v15  ;;  %v876_v17 = vsel %vm764_vm0, %v10444_v61, %v10027_v22  ;;  %v3322_v15 = vsel %vm3214_vm2, %v3309_v60, %v10031_v34  ;;  %v3502_v14 = vadd.f32 %v3310_v51, %v2685_v21  ;;  %v64_v34 = vld [vmem:[%s9796_s0 + $0x9d0] sm:$0xff] }
 0x1a1   :  { %v10033_v57 = vrot.slane %v7860_v26, 2  ;;  %v1060_v47 = vadd.f32 %v876_v17, %v63_v35  ;;  %v3508_v54 = vadd.f32 %v3322_v15, %v2691_v39  ;;  %v1296_v61 = vsel %vm764_vm0, %v10445_v12, %v10030_v59  ;;  %v579_v35 = vld [vmem:[%s9796_s0 + $0x10e8] sm:$0xff] }
 0x1a2   :  { %v10028_v19 = vrot.slane %v7878_v38, 2  ;;  %v10029_v22 = vrot.slane %v7875_v24, 1  ;;  %v3586_v60 = vmul.f32 0.125, %v3502_v14  ;;  %v10446_v21 = vrot.slane %v7015_v20, 2 }
 0x1a3   :  { %v7915_v51 = vadd.f32 %v1296_v61, %v237_v53  ;;  %v10032_v17 = vrot.slane %v7886_v40, 1  ;;  %v7923_v15 = vmul.f32 0.125, %v3508_v54  ;;  %v10447_v20 = vrot.slane %v7044_v18, 2  ;;  %v7948_v18 = vld [vmem:[%s9796_s0 + $0x1240] sm:$0xff] }
 0x1a4   :  { %v2507_v39 = vsel %vm2397_vm1, %v10446_v21, %v10033_v57  ;;  %v10448_v53 = vrot.slane %v7116_v37, 1  ;;  %v7938_v21 = vld [vmem:[%s9796_s0 + $0xd90] sm:$0xff]  ;;  %v3800_v54 = vrot.slane %v3586_v60, 1  ;;  %v406_v57 = vld [vmem:[%s9796_s0 + $0xe80] sm:$0xff] }
 0x1a5   :  { %v2692_v14 = vadd.f32 %v2507_v39, %v1059_v8  ;;  %v2927_v12 = vsel %vm2397_vm1, %v10447_v20, %v10028_v19  ;;  %v7943_v8 = vld [vmem:[%s9796_s0 + $0xfd0] sm:$0xff]  ;;  %v10449_v20 = vrot.slane %v7142_v6, 1  ;;  %v10035_v19 = vrot.slane %v7923_v15, 1  ;;  %v238_v6 = vld [vmem:[%s9796_s0 + $0xc40] sm:$0xff] }
 0x1a6   :  { %v1704_v61 = vsel %vm764_vm0, %v10448_v53, %v10029_v22  ;;  %v7950_v39 = vadd.f32 %v2927_v12, %v1881_v0  ;;  %v10036_v59 = vrot.slane %v7915_v51, 2  ;;  %v10037_v0 = vrot.slane %v7921_v10, 1 }
 0x1a7   :  { %v1882_v37 = vadd.f32 %v1704_v61, %v405_v49  ;;  %v2112_v53 = vsel %vm764_vm0, %v10449_v20, %v10032_v17  ;;  %v10040_v60 = vrot.slane %v7938_v21, 1  ;;  %v10039_v12 = vrot.slane %v7943_v8, 1 }
 0x1a8   :  { %v7958_v22 = vadd.f32 %v2112_v53, %v579_v35  ;;  %v10041_v49 = vrot.slane %v7950_v39, 4  ;;  %v3802_v61 = vsel %vm764_vm0, %v3800_v54, %v10035_v19  ;;  %v10450_v20 = vrot.slane %v7144_v28, 2  ;;  %v7992_v54 = vld [vmem:[%s9796_s0 + $0xb28] sm:$0xff] }
 0x1a9   :  { %v878_v35 = vsel %vm764_vm0, %v10451_v27, %v10037_v0  ;;  %3994 = vst [vmem:[%s9797_s1 + $0x178] sm:$0xff] %v3802_v61  ;;  %v10452_v28 = vrot.slane %v7084_v44, 4  ;;  %v8013_v61 = vld [vmem:[%s9796_s0 + $0xd98] sm:$0xff] }
 0x1aa   :  { %v2509_v53 = vsel %vm2397_vm1, %v10450_v20, %v10036_v59  ;;  %v10038_v17 = vrot.slane %v7958_v22, 2  ;;  %v1061_v27 = vadd.f32 %v878_v35, %v64_v34  ;;  %v10453_v59 = vrot.slane %v7230_v58, 1 }
 0x1ab   :  { %v3324_v20 = vsel %vm3214_vm2, %v10452_v28, %v10041_v49  ;;  %v2693_v19 = vadd.f32 %v2509_v53, %v1060_v47  ;;  %v10454_v47 = vrot.slane %v7185_v4, 2  ;;  %v10455_v58 = vrot.slane %v7266_v50, 1 }
 0x1ac   :  { %v1298_v0 = vsel %vm764_vm0, %v10453_v59, %v10040_v60  ;;  %v3509_v44 = vadd.f32 %v3324_v20, %v2692_v14  ;;  %v8030_v59 = vld [vmem:[%s9796_s0 + $0xfd8] sm:$0xff]  ;;  %v8035_v14 = vld [vmem:[%s9796_s0 + $0x1248] sm:$0xff]  ;;  %v10457_v35 = vrot.slane %v7302_v62, 1 }
 0x1ad   :  { %v2929_v53 = vsel %vm2397_vm1, %v10454_v47, %v10038_v17  ;;  %v8020_v28 = vadd.f32 %v1298_v0, %v238_v6  ;;  %v1706_v34 = vsel %vm764_vm0, %v10455_v58, %v10039_v12  ;;  %v10456_v6 = vrot.slane %v7948_v18, 1  ;;  %v65_v20 = vld [vmem:[%s9796_s0 + $0x9d8] sm:$0xff]  ;;  %v239_v62 = vld [vmem:[%s9796_s0 + $0xc48] sm:$0xff] }
 0x1ae   :  { %v8037_v4 = vadd.f32 %v2929_v53, %v1882_v37  ;;  %v1883_v0 = vadd.f32 %v1706_v34, %v406_v57  ;;  %v10042_v47 = vrot.slane %v7992_v54, 1  ;;  %v8048_v58 = vmul.f32 0.125, %v3509_v44 }
 0x1af   :  { %v2114_v50 = vsel %vm764_vm0, %v10457_v35, %v10456_v6  ;;  %v10043_v37 = vrot.slane %v8020_v28, 2  ;;  %v10044_v57 = vrot.slane %v8013_v61, 1  ;;  %v10458_v34 = vrot.slane %v7340_v41, 1  ;;  %v407_v41 = vld [vmem:[%s9796_s0 + $0xe88] sm:$0xff] }
 0x1b0   :  { %v8050_v17 = vadd.f32 %v2114_v50, %v580_v7  ;;  %v10047_v53 = vrot.slane %v8037_v4, 4  ;;  %v10046_v44 = vrot.slane %v8030_v59, 1  ;;  %v10045_v35 = vrot.slane %v8048_v58, 1 }
 0x1b1   :  { %v880_v6 = vsel %vm764_vm0, %v10458_v34, %v10042_v47  ;;  %v10459_v50 = vrot.slane %v7291_v29, 2  ;;  %v8078_v34 = vld [vmem:[%s9796_s0 + $0xb30] sm:$0xff]  ;;  %v10460_v47 = vrot.slane %v7236_v3, 4  ;;  %v8101_v3 = vld [vmem:[%s9796_s0 + $0xda0] sm:$0xff] }
 0x1b2   :  { %v1062_v49 = vadd.f32 %v880_v6, %v65_v20  ;;  %v10461_v20 = vrot.slane %v7379_v30, 1 }
 0x1b3   :  { %v2511_v12 = vsel %vm2397_vm1, %v10459_v50, %v10043_v37  ;;  %v3326_v29 = vsel %vm3214_vm2, %v10460_v47, %v10047_v53  ;;  %v581_v50 = vld [vmem:[%s9796_s0 + $0x10f8] sm:$0xff]  ;;  %v10462_v37 = vrot.slane %v7419_v36, 1  ;;  %v10464_v47 = vrot.slane %v8050_v17, 2 }
 0x1b4   :  { %v2694_v7 = vadd.f32 %v2511_v12, %v1061_v27  ;;  %v1300_v6 = vsel %vm764_vm0, %v10461_v20, %v10044_v57  ;;  %v10463_v12 = vrot.slane %v7154_v63, 1  ;;  %v3510_v30 = vadd.f32 %v3326_v29, %v2693_v19  ;;  %v8123_v63 = vld [vmem:[%s9796_s0 + $0x1250] sm:$0xff] }
 0x1b5   :  { %v1708_v60 = vsel %vm764_vm0, %v10462_v37, %v10046_v44  ;;  %v10465_v20 = vrot.slane %v7345_v31, 2  ;;  %v8113_v57 = vadd.f32 %v1300_v6, %v239_v62  ;;  %v8118_v37 = vld [vmem:[%s9796_s0 + $0xfe0] sm:$0xff]  ;;  %10466 = vst [vmem:[#allocation2_spill] sm:$0xff] %v8123_v63  ;;  %v10467_v62 = vrot.slane %v8035_v14, 1 }
 0x1b6   :  { %v3804_v27 = vsel %vm764_vm0, %v10463_v12, %v10045_v35  ;;  %v1884_v31 = vadd.f32 %v1708_v60, %v407_v41  ;;  %v10468_v29 = vrot.slane %v7443_v11, 1  ;;  %v66_v12 = vld [vmem:[%s9796_s0 + $0x9e0] sm:$0xff]  ;;  %v10050_v60 = vrot.slane %v8101_v3, 1  ;;  %v240_v11 = vld [vmem:[%s9796_s0 + $0xc50] sm:$0xff] }
 0x1b7   :  { %v2931_v36 = vsel %vm2397_vm1, %v10465_v20, %v10464_v47  ;;  %3995 = vst [vmem:[%s9797_s1 + $0x180] sm:$0xff] %v3804_v27  ;;  %v10048_v47 = vrot.slane %v8078_v34, 1  ;;  %v8139_v20 = vmul.f32 0.125, %v3510_v30  ;;  %v10470_v27 = vrot.slane %v7497_v23, 1  ;;  %v408_v23 = vld [vmem:[%s9796_s0 + $0xe90] sm:$0xff] }
 0x1b8   :  { %v8128_v19 = vadd.f32 %v2931_v36, %v1883_v0  ;;  %v2116_v6 = vsel %vm764_vm0, %v10468_v29, %v10467_v62  ;;  %v10049_v0 = vrot.slane %v8113_v57, 2  ;;  %v10052_v30 = vrot.slane %v8118_v37, 1 }
 0x1b9   :  { %v8141_v35 = vadd.f32 %v2116_v6, %v581_v50  ;;  %v882_v36 = vsel %vm764_vm0, %v10470_v27, %v10048_v47  ;;  %v10051_v62 = vrot.slane %v8139_v20, 1  ;;  %v10471_v29 = vrot.slane %v7445_v5, 2  ;;  %v8169_v27 = vld [vmem:[%s9796_s0 + $0xb38] sm:$0xff] }
 0x1ba   :  { %v10053_v41 = vrot.slane %v8128_v19, 4  ;;  %v1063_v53 = vadd.f32 %v882_v36, %v66_v12  ;;  %10472 = vst [vmem:[#allocation10_spill] sm:$0xff] %v8169_v27  ;;  %v10473_v47 = vrot.slane %v7385_v13, 4  ;;  %v10474_v12 = vrot.slane %v7524_v2, 1  ;;  %v8192_v13 = vld [vmem:[%s9796_s0 + $0xda8] sm:$0xff] }
 0x1bb   :  { %10469 = vst [vmem:[#allocation8_spill] sm:$0xff] %v8141_v35  ;;  %v2513_v6 = vsel %vm2397_vm1, %v10471_v29, %v10049_v0  ;;  %v582_v29 = vld [vmem:[%s9796_s0 + $0x1100] sm:$0xff]  ;;  %v10475_v0 = vrot.slane %v7562_v9, 1  ;;  %10476 = vst [vmem:[#allocation5_spill] sm:$0xff] %v8192_v13 }
 0x1bc   :  { %v3328_v5 = vsel %vm3214_vm2, %v10473_v47, %v10053_v41  ;;  %v2695_v50 = vadd.f32 %v2513_v6, %v1062_v49  ;;  %v1302_v36 = vsel %vm764_vm0, %v10474_v12, %v10050_v60  ;;  %v10477_v49 = vrot.slane %v7307_v52, 1  ;;  %v8214_v52 = vld [vmem:[%s9796_s0 + $0x1258] sm:$0xff] }
 0x1bd   :  { %v1710_v44 = vsel %vm764_vm0, %v10475_v0, %v10052_v30  ;;  %v3511_v2 = vadd.f32 %v3328_v5, %v2694_v7  ;;  %v10478_v6 = vrot.slane %v8141_v35, 2  ;;  %v10479_v12 = vrot.slane %v7486_v55, 2  ;;  %v8209_v0 = vld [vmem:[%s9796_s0 + $0xfe8] sm:$0xff] }
 0x1be   :  { %v3806_v47 = vsel %vm764_vm0, %v10477_v49, %v10051_v62  ;;  %v8204_v60 = vadd.f32 %v1302_v36, %v240_v11  ;;  %10481 = vst [vmem:[#allocation12_spill] sm:$0xff] %v8209_v0  ;;  %v1885_v55 = vadd.f32 %v1710_v44, %v408_v23  ;;  %v10483_v11 = vrot.slane %v8123_v63, 1  ;;  %v10484_v5 = vld [vmem:[#allocation15_spill] sm:$0xff]  ;;  %v10494_v23 = vld [vmem:[#allocation9_spill] sm:$0xff] }
 0x1bf   :  { %v2933_v9 = vsel %vm2397_vm1, %v10479_v12, %v10478_v6  ;;  %3996 = vst [vmem:[%s9797_s1 + $0x188] sm:$0xff] %v3806_v47  ;;  %v10485_v36 = vrot.slane %v10484_v5, 1  ;;  %v67_v6 = vld [vmem:[%s9796_s0 + $0x9e8] sm:$0xff]  ;;  %v10055_v12 = vrot.slane %v8169_v27, 1  ;;  %v8230_v62 = vmul.f32 0.125, %v3511_v2  ;;  %v241_v47 = vld [vmem:[%s9796_s0 + $0xc58] sm:$0xff] }
 0x1c0   :  { %10480 = vst [vmem:[#allocation13_spill] sm:$0xff] %v8204_v60  ;;  %v8219_v7 = vadd.f32 %v2933_v9, %v1884_v31  ;;  %v10056_v31 = vrot.slane %v8204_v60, 2  ;;  %v10486_v9 = vld [vmem:[#allocation6_spill] sm:$0xff]  ;;  %v10496_v60 = vrot.slane %v8209_v0, 1  ;;  %v10497_v63 = vld [vmem:[#allocation3_spill] sm:$0xff] }
 0x1c1   :  { %v2118_v49 = vsel %vm764_vm0, %v10485_v36, %v10483_v11  ;;  %v10487_v11 = vrot.slane %v10486_v9, 1  ;;  %v409_v9 = vld [vmem:[%s9796_s0 + $0xe98] sm:$0xff]  ;;  %v10498_v35 = vrot.slane %v10497_v63, 1 }
 0x1c2   :  { %10482 = vst [vmem:[#allocation14_spill] sm:$0xff] %v8219_v7  ;;  %v8232_v30 = vadd.f32 %v2118_v49, %v582_v29  ;;  %v10488_v49 = vld [vmem:[#allocation17_spill] sm:$0xff]  ;;  %v10491_v29 = vld [vmem:[#allocation18_spill] sm:$0xff] }
 0x1c3   :  { %v884_v5 = vsel %vm764_vm0, %v10487_v11, %v10055_v12  ;;  %v10489_v41 = vrot.slane %v10488_v49, 2  ;;  %v8260_v11 = vld [vmem:[%s9796_s0 + $0xb40] sm:$0xff]  ;;  %v10490_v12 = vrot.slane %v8219_v7, 4  ;;  %v10492_v36 = vrot.slane %v10491_v29, 4 }
 0x1c4   :  { %v1064_v27 = vadd.f32 %v884_v5, %v67_v6  ;;  %v10495_v6 = vrot.slane %v10494_v23, 1  ;;  %v1712_v7 = vsel %vm764_vm0, %v10498_v35, %v10496_v60  ;;  %v8300_v35 = vld [vmem:[%s9796_s0 + $0xff0] sm:$0xff]  ;;  %v8305_v60 = vld [vmem:[%s9796_s0 + $0x1260] sm:$0xff] }
 0x1c5   :  { %v2515_v44 = vsel %vm2397_vm1, %v10489_v41, %v10056_v31  ;;  %v3330_v49 = vsel %vm3214_vm2, %v10492_v36, %v10490_v12  ;;  %v583_v41 = vld [vmem:[%s9796_s0 + $0x1108] sm:$0xff]  ;;  %v10493_v31 = vrot.slane %v8192_v13, 1  ;;  %v10499_v12 = vrot.slane %v8230_v62, 1  ;;  %10505 = vst [vmem:[#allocation15_spill] sm:$0xff] %v8300_v35 }
 0x1c6   :  { %v2696_v2 = vadd.f32 %v2515_v44, %v1063_v53  ;;  %v8283_v53 = vld [vmem:[%s9796_s0 + $0xdb0] sm:$0xff]  ;;  %v3512_v23 = vadd.f32 %v3330_v49, %v2695_v50  ;;  %v1886_v49 = vadd.f32 %v1712_v7, %v409_v9 }
 0x1c7   :  { %v1304_v5 = vsel %vm764_vm0, %v10495_v6, %v10493_v31  ;;  %v10500_v44 = vld [vmem:[#allocation16_spill] sm:$0xff]  ;;  %v10502_v31 = vrot.slane %v8232_v30, 2 }
 0x1c8   :  { %v10501_v29 = vrot.slane %v10500_v44, 1  ;;  %v10503_v6 = vld [vmem:[#allocation4_spill] sm:$0xff]  ;;  %v8295_v13 = vadd.f32 %v1304_v5, %v241_v47  ;;  %v10508_v47 = vrot.slane %v7747_v43, 1  ;;  %v10063_v44 = vrot.slane %v8260_v11, 1  ;;  %v242_v43 = vld [vmem:[%s9796_s0 + $0xc60] sm:$0xff] }
 0x1c9   :  { %v10504_v0 = vrot.slane %v10503_v6, 2 }
 0x1ca   :  { %v3808_v36 = vsel %vm764_vm0, %v10501_v29, %v10499_v12  ;;  %v68_v12 = vld [vmem:[%s9796_s0 + $0x9f0] sm:$0xff]  ;;  %v8321_v29 = vmul.f32 0.125, %v3512_v23  ;;  %v10068_v23 = vrot.slane %v8300_v35, 1 }
 0x1cb   :  { %v2935_v63 = vsel %vm2397_vm1, %v10504_v0, %v10502_v31  ;;  %3997 = vst [vmem:[%s9797_s1 + $0x190] sm:$0xff] %v3808_v36  ;;  %v10507_v0 = vrot.slane %v8214_v52, 1  ;;  %v10509_v36 = vrot.slane %v7774_v25, 1  ;;  %v410_v25 = vld [vmem:[%s9796_s0 + $0xea0] sm:$0xff] }
 0x1cc   :  { %v8310_v50 = vadd.f32 %v2935_v63, %v1885_v55  ;;  %v10064_v55 = vrot.slane %v8295_v13, 2 }
 0x1cd   :  { %v2120_v5 = vsel %vm764_vm0, %v10508_v47, %v10507_v0  ;;  %v886_v6 = vsel %vm764_vm0, %v10509_v36, %v10063_v44  ;;  %v10510_v0 = vrot.slane %v7735_v48, 2  ;;  %v8351_v36 = vld [vmem:[%s9796_s0 + $0xb48] sm:$0xff] }
 0x1ce   :  { %10506 = vst [vmem:[#allocation6_spill] sm:$0xff] %v8310_v50  ;;  %v8323_v31 = vadd.f32 %v2120_v5, %v583_v41  ;;  %v10066_v9 = vrot.slane %v8310_v50, 4  ;;  %v1065_v7 = vadd.f32 %v886_v6, %v68_v12  ;;  %v10511_v44 = vld [vmem:[#allocation11_spill] sm:$0xff]  ;;  %v10514_v12 = vrot.slane %v7793_v45, 1 }
 0x1cf   :  { %v2517_v47 = vsel %vm2397_vm1, %v10510_v0, %v10064_v55  ;;  %v10512_v41 = vrot.slane %v10511_v44, 4  ;;  %v584_v0 = vld [vmem:[%s9796_s0 + $0x1110] sm:$0xff]  ;;  %v10513_v55 = vrot.slane %v8283_v53, 1  ;;  %v10515_v5 = vrot.slane %v7808_v32, 1 }
 0x1d0   :  { %v2697_v63 = vadd.f32 %v2517_v47, %v1064_v27  ;;  %v8374_v27 = vld [vmem:[%s9796_s0 + $0xdb8] sm:$0xff]  ;;  %v10516_v44 = vrot.slane %v8321_v29, 1 }
 0x1d1   :  { %v3332_v48 = vsel %vm3214_vm2, %v10512_v41, %v10066_v9  ;;  %v1306_v6 = vsel %vm764_vm0, %v10514_v12, %v10513_v55  ;;  %v1714_v50 = vsel %vm764_vm0, %v10515_v5, %v10068_v23  ;;  %v10517_v41 = vld [vmem:[#allocation7_spill] sm:$0xff]  ;;  %v10519_v55 = vrot.slane %v8323_v31, 2  ;;  %v8391_v5 = vld [vmem:[%s9796_s0 + $0xff8] sm:$0xff] }
 0x1d2   :  { %v10518_v47 = vrot.slane %v10517_v41, 1  ;;  %v3513_v45 = vadd.f32 %v3332_v48, %v2696_v2  ;;  %v10520_v12 = vrot.slane %v7780_v16, 2  ;;  %v8386_v35 = vadd.f32 %v1306_v6, %v242_v43  ;;  %v8396_v41 = vld [vmem:[%s9796_s0 + $0x1268] sm:$0xff] }
 0x1d3   :  { %v1887_v16 = vadd.f32 %v1714_v50, %v410_v25  ;;  %v10521_v43 = vrot.slane %v8305_v60, 1  ;;  %v10522_v48 = vrot.slane %v7813_v46, 1  ;;  %v243_v46 = vld [vmem:[%s9796_s0 + $0xc68] sm:$0xff]  ;;  %v10523_v25 = vrot.slane %v7825_v1, 1 }
 0x1d4   :  { %v3810_v9 = vsel %vm764_vm0, %v10518_v47, %v10516_v44  ;;  %v2937_v32 = vsel %vm2397_vm1, %v10520_v12, %v10519_v55  ;;  %v69_v44 = vld [vmem:[%s9796_s0 + $0x9f8] sm:$0xff]  ;;  %v10069_v47 = vrot.slane %v8351_v36, 1  ;;  %v8412_v55 = vmul.f32 0.125, %v3513_v45  ;;  %v411_v1 = vld [vmem:[%s9796_s0 + $0xea8] sm:$0xff] }
 0x1d5   :  { %3998 = vst [vmem:[%s9797_s1 + $0x198] sm:$0xff] %v3810_v9  ;;  %v8401_v2 = vadd.f32 %v2937_v32, %v1886_v49  ;;  %v2122_v6 = vsel %vm764_vm0, %v10522_v48, %v10521_v43  ;;  %v10070_v49 = vrot.slane %v8386_v35, 2  ;;  %v10072_v45 = vrot.slane %v8391_v5, 1 }
 0x1d6   :  { %v8414_v12 = vadd.f32 %v2122_v6, %v584_v0  ;;  %v888_v32 = vsel %vm764_vm0, %v10523_v25, %v10069_v47  ;;  %v10524_v48 = vrot.slane %v7860_v26, 2  ;;  %v8442_v25 = vld [vmem:[%s9796_s0 + $0xb50] sm:$0xff]  ;;  %v10525_v47 = vrot.slane %v7839_v42, 4  ;;  %v8465_v42 = vld [vmem:[%s9796_s0 + $0xdc0] sm:$0xff] }
 0x1d7   :  { %v10071_v9 = vrot.slane %v8401_v2, 4  ;;  %v1066_v50 = vadd.f32 %v888_v32, %v69_v44  ;;  %v10527_v44 = vrot.slane %v7830_v56, 1  ;;  %v10528_v23 = vrot.slane %v7875_v24, 1 }
 0x1d8   :  { %v2519_v6 = vsel %vm2397_vm1, %v10524_v48, %v10070_v49  ;;  %v585_v48 = vld [vmem:[%s9796_s0 + $0x1118] sm:$0xff]  ;;  %v10526_v49 = vrot.slane %v8374_v27, 1 }
 0x1d9   :  { %v3334_v26 = vsel %vm3214_vm2, %v10525_v47, %v10071_v9  ;;  %v2698_v0 = vadd.f32 %v2519_v6, %v1065_v7  ;;  %v1716_v43 = vsel %vm764_vm0, %v10528_v23, %v10072_v45  ;;  %v10529_v7 = vrot.slane %v8412_v55, 1  ;;  %v8482_v23 = vld [vmem:[%s9796_s0 + $0x1000] sm:$0xff] }
 0x1da   :  { %v1308_v32 = vsel %vm764_vm0, %v10527_v44, %v10526_v49  ;;  %v10530_v47 = vrot.slane %v7763_v33, 1  ;;  %v3514_v56 = vadd.f32 %v3334_v26, %v2697_v63  ;;  %v10531_v49 = vrot.slane %v8414_v12, 2  ;;  %v8487_v33 = vld [vmem:[%s9796_s0 + $0x1270] sm:$0xff] }
 0x1db   :  { %v10532_v44 = vrot.slane %v7878_v38, 2  ;;  %v8477_v9 = vadd.f32 %v1308_v32, %v243_v46  ;;  %v1888_v38 = vadd.f32 %v1716_v43, %v411_v1  ;;  %v10533_v46 = vrot.slane %v8396_v41, 1 }
 0x1dc   :  { %v3812_v6 = vsel %vm764_vm0, %v10530_v47, %v10529_v7  ;;  %v10534_v26 = vrot.slane %v7886_v40, 1  ;;  %v70_v7 = vld [vmem:[%s9796_s0 + $0xa00] sm:$0xff]  ;;  %v10073_v47 = vrot.slane %v8442_v25, 1  ;;  %v244_v40 = vld [vmem:[%s9796_s0 + $0xc70] sm:$0xff]  ;;  %v10540_v45 = vrot.slane %v7943_v8, 1 }
 0x1dd   :  { %v2939_v24 = vsel %vm2397_vm1, %v10532_v44, %v10531_v49  ;;  %3999 = vst [vmem:[%s9797_s1 + $0x1a0] sm:$0xff] %v3812_v6  ;;  %v8503_v49 = vmul.f32 0.125, %v3514_v56  ;;  %v10535_v6 = vrot.slane %v7921_v10, 1  ;;  %v10076_v56 = vrot.slane %v8482_v23, 1  ;;  %v412_v10 = vld [vmem:[%s9796_s0 + $0xeb0] sm:$0xff] }
 0x1de   :  { %v8492_v63 = vadd.f32 %v2939_v24, %v1887_v16  ;;  %v2124_v32 = vsel %vm764_vm0, %v10534_v26, %v10533_v46  ;;  %v10074_v16 = vrot.slane %v8477_v9, 2  ;;  %v10536_v26 = vrot.slane %v7915_v51, 2 }
 0x1df   :  { %v8505_v44 = vadd.f32 %v2124_v32, %v585_v48  ;;  %v890_v24 = vsel %vm764_vm0, %v10535_v6, %v10073_v47  ;;  %v8533_v6 = vld [vmem:[%s9796_s0 + $0xb58] sm:$0xff]  ;;  %v10537_v47 = vrot.slane %v7950_v39, 4  ;;  %v1718_v46 = vsel %vm764_vm0, %v10540_v45, %v10076_v56  ;;  %v8556_v39 = vld [vmem:[%s9796_s0 + $0xdc8] sm:$0xff] }
 0x1e0   :  { %v10075_v1 = vrot.slane %v8492_v63, 4  ;;  %v2521_v32 = vsel %vm2397_vm1, %v10536_v26, %v10074_v16  ;;  %v1067_v43 = vadd.f32 %v890_v24, %v70_v7  ;;  %v586_v26 = vld [vmem:[%s9796_s0 + $0x1120] sm:$0xff]  ;;  %v10538_v16 = vrot.slane %v8465_v42, 1  ;;  %v8573_v45 = vld [vmem:[%s9796_s0 + $0x1008] sm:$0xff] }
 0x1e1   :  { %v2699_v48 = vadd.f32 %v2521_v32, %v1066_v50  ;;  %v10539_v7 = vrot.slane %v7938_v21, 1  ;;  %v10541_v50 = vrot.slane %v8503_v49, 1  ;;  %v10552_v56 = vrot.slane %v8030_v59, 1 }
 0x1e2   :  { %v3336_v51 = vsel %vm3214_vm2, %v10537_v47, %v10075_v1  ;;  %v10542_v47 = vrot.slane %v7923_v15, 1  ;;  %v8578_v15 = vld [vmem:[%s9796_s0 + $0x1278] sm:$0xff] }
 0x1e3   :  { %v1310_v24 = vsel %vm764_vm0, %v10539_v7, %v10538_v16  ;;  %v3515_v21 = vadd.f32 %v3336_v51, %v2698_v0  ;;  %v10543_v16 = vrot.slane %v8505_v44, 2  ;;  %v10544_v7 = vrot.slane %v7958_v22, 2 }
 0x1e4   :  { %v3814_v32 = vsel %vm764_vm0, %v10542_v47, %v10541_v50  ;;  %v8568_v1 = vadd.f32 %v1310_v24, %v244_v40  ;;  %v1889_v22 = vadd.f32 %v1718_v46, %v412_v10  ;;  %v10545_v40 = vrot.slane %v8487_v33, 1  ;;  %v71_v50 = vld [vmem:[%s9796_s0 + $0xa08] sm:$0xff] }
 0x1e5   :  { %v2941_v8 = vsel %vm2397_vm1, %v10544_v7, %v10543_v16  ;;  %4000 = vst [vmem:[%s9797_s1 + $0x1a8] sm:$0xff] %v3814_v32  ;;  %v10546_v51 = vrot.slane %v7948_v18, 1  ;;  %v10077_v47 = vrot.slane %v8533_v6, 1  ;;  %v8594_v16 = vmul.f32 0.125, %v3515_v21  ;;  %v245_v18 = vld [vmem:[%s9796_s0 + $0xc78] sm:$0xff] }
 0x1e6   :  { %v8583_v0 = vadd.f32 %v2941_v8, %v1888_v38  ;;  %v10078_v38 = vrot.slane %v8568_v1, 2  ;;  %v10547_v32 = vrot.slane %v7992_v54, 1  ;;  %v10080_v21 = vrot.slane %v8573_v45, 1  ;;  %v413_v54 = vld [vmem:[%s9796_s0 + $0xeb8] sm:$0xff] }
 0x1e7   :  { %v2126_v24 = vsel %vm764_vm0, %v10546_v51, %v10545_v40  ;;  %v10548_v51 = vrot.slane %v8020_v28, 2 }
 0x1e8   :  { %v8596_v7 = vadd.f32 %v2126_v24, %v586_v26  ;;  %v10079_v10 = vrot.slane %v8583_v0, 4  ;;  %v892_v8 = vsel %vm764_vm0, %v10547_v32, %v10077_v47  ;;  %v8624_v32 = vld [vmem:[%s9796_s0 + $0xb60] sm:$0xff]  ;;  %v10549_v47 = vrot.slane %v8037_v4, 4  ;;  %v8647_v4 = vld [vmem:[%s9796_s0 + $0xdd0] sm:$0xff] }
 0x1e9   :  { %v2523_v24 = vsel %vm2397_vm1, %v10548_v51, %v10078_v38  ;;  %v1068_v46 = vadd.f32 %v892_v8, %v71_v50  ;;  %v587_v51 = vld [vmem:[%s9796_s0 + $0x1128] sm:$0xff]  ;;  %v10550_v38 = vrot.slane %v8556_v39, 1  ;;  %v10551_v50 = vrot.slane %v8013_v61, 1 }
 0x1ea   :  { %v3338_v28 = vsel %vm3214_vm2, %v10549_v47, %v10079_v10  ;;  %v2700_v26 = vadd.f32 %v2523_v24, %v1067_v43  ;;  %v1720_v40 = vsel %vm764_vm0, %v10552_v56, %v10080_v21  ;;  %v10553_v43 = vrot.slane %v8594_v16, 1  ;;  %v8664_v56 = vld [vmem:[%s9796_s0 + $0x1010] sm:$0xff] }
 0x1eb   :  { %v1312_v8 = vsel %vm764_vm0, %v10551_v50, %v10550_v38  ;;  %v10554_v47 = vrot.slane %v8048_v58, 1  ;;  %v3516_v61 = vadd.f32 %v3338_v28, %v2699_v48  ;;  %v10555_v38 = vrot.slane %v8596_v7, 2  ;;  %10557 = vst [vmem:[#allocation17_spill] sm:$0xff] %v8664_v56  ;;  %v8669_v58 = vld [vmem:[%s9796_s0 + $0x1280] sm:$0xff] }
 0x1ec   :  { %v10556_v50 = vrot.slane %v8050_v17, 2  ;;  %v8659_v10 = vadd.f32 %v1312_v8, %v245_v18  ;;  %10558 = vst [vmem:[#allocation18_spill] sm:$0xff] %v8669_v58  ;;  %v1890_v17 = vadd.f32 %v1720_v40, %v413_v54  ;;  %v10559_v18 = vrot.slane %v8578_v15, 1 }
 0x1ed   :  { %v3816_v24 = vsel %vm764_vm0, %v10554_v47, %v10553_v43  ;;  %v10560_v28 = vrot.slane %v8035_v14, 1  ;;  %v72_v43 = vld [vmem:[%s9796_s0 + $0xa10] sm:$0xff]  ;;  %v10081_v47 = vrot.slane %v8624_v32, 1  ;;  %v246_v14 = vld [vmem:[%s9796_s0 + $0xc80] sm:$0xff]  ;;  %v10569_v21 = vrot.slane %v8118_v37, 1 }
 0x1ee   :  { %v2943_v59 = vsel %vm2397_vm1, %v10556_v50, %v10555_v38  ;;  %4001 = vst [vmem:[%s9797_s1 + $0x1b0] sm:$0xff] %v3816_v24  ;;  %v8685_v38 = vmul.f32 0.125, %v3516_v61  ;;  %v10563_v24 = vrot.slane %v8078_v34, 1  ;;  %v10085_v61 = vrot.slane %v8664_v56, 1  ;;  %v414_v34 = vld [vmem:[%s9796_s0 + $0xec0] sm:$0xff] }
 0x1ef   :  { %v8674_v48 = vadd.f32 %v2943_v59, %v1889_v22  ;;  %v2128_v8 = vsel %vm764_vm0, %v10560_v28, %v10559_v18  ;;  %v10082_v22 = vrot.slane %v8659_v10, 2  ;;  %v10564_v28 = vrot.slane %v8113_v57, 2 }
 0x1f0   :  { %10561 = vst [vmem:[#allocation9_spill] sm:$0xff] %v8685_v38  ;;  %v8687_v50 = vadd.f32 %v2128_v8, %v587_v51  ;;  %v894_v59 = vsel %vm764_vm0, %v10563_v24, %v10081_v47  ;;  %v8715_v24 = vld [vmem:[%s9796_s0 + $0xb68] sm:$0xff]  ;;  %v10566_v47 = vrot.slane %v8128_v19, 4  ;;  %v1722_v18 = vsel %vm764_vm0, %v10569_v21, %v10085_v61  ;;  %v8738_v19 = vld [vmem:[%s9796_s0 + $0xdd8] sm:$0xff] }
 0x1f1   :  { %v10083_v54 = vrot.slane %v8674_v48, 4  ;;  %v2525_v8 = vsel %vm2397_vm1, %v10564_v28, %v10082_v22  ;;  %v1069_v40 = vadd.f32 %v894_v59, %v72_v43  ;;  %10565 = vst [vmem:[#allocation16_spill] sm:$0xff] %v8715_v24  ;;  %v588_v28 = vld [vmem:[%s9796_s0 + $0x1130] sm:$0xff]  ;;  %v10567_v22 = vrot.slane %v8647_v4, 1  ;;  %v8755_v21 = vld [vmem:[%s9796_s0 + $0x1018] sm:$0xff] }
 0x1f2   :  { %10562 = vst [vmem:[#allocation3_spill] sm:$0xff] %v8687_v50  ;;  %v2701_v51 = vadd.f32 %v2525_v8, %v1068_v46  ;;  %v10568_v43 = vrot.slane %v8101_v3, 1  ;;  %v10570_v46 = vrot.slane %v8685_v38, 1 }
 0x1f3   :  { %v3340_v57 = vsel %vm3214_vm2, %v10566_v47, %v10083_v54  ;;  %v10571_v47 = vrot.slane %v8139_v20, 1  ;;  %v8760_v20 = vld [vmem:[%s9796_s0 + $0x1288] sm:$0xff] }
 0x1f4   :  { %v1314_v59 = vsel %vm764_vm0, %v10568_v43, %v10567_v22  ;;  %v3517_v3 = vadd.f32 %v3340_v57, %v2700_v26  ;;  %v10572_v22 = vrot.slane %v8687_v50, 2  ;;  %v10573_v43 = vld [vmem:[#allocation8_spill] sm:$0xff]  ;;  %v1891_v57 = vadd.f32 %v1722_v18, %v414_v34 }
 0x1f5   :  { %v3818_v8 = vsel %vm764_vm0, %v10571_v47, %v10570_v46  ;;  %v10574_v54 = vrot.slane %v10573_v43, 2  ;;  %v8750_v56 = vadd.f32 %v1314_v59, %v246_v14  ;;  %v10578_v14 = vld [vmem:[#allocation2_spill] sm:$0xff]  ;;  %v73_v47 = vld [vmem:[%s9796_s0 + $0xa18] sm:$0xff]  ;;  %v10591_v50 = vld [vmem:[#allocation12_spill] sm:$0xff] }
 0x1f6   :  { %4002 = vst [vmem:[%s9797_s1 + $0x1b8] sm:$0xff] %v3818_v8  ;;  %v10579_v59 = vrot.slane %v10578_v14, 1  ;;  %v8776_v43 = vmul.f32 0.125, %v3517_v3  ;;  %v247_v8 = vld [vmem:[%s9796_s0 + $0xc88] sm:$0xff]  ;;  %v10592_v38 = vrot.slane %v10591_v50, 1 }
 0x1f7   :  { %v2945_v37 = vsel %vm2397_vm1, %v10574_v54, %v10572_v22  ;;  %10575 = vst [vmem:[#allocation4_spill] sm:$0xff] %v8750_v56  ;;  %v10577_v54 = vrot.slane %v8669_v58, 1  ;;  %v10088_v22 = vrot.slane %v8715_v24, 1  ;;  %v10588_v58 = vld [vmem:[#allocation5_spill] sm:$0xff] }
 0x1f8   :  { %v8765_v26 = vadd.f32 %v2945_v37, %v1890_v17  ;;  %v10089_v17 = vrot.slane %v8750_v56, 2  ;;  %v10580_v37 = vld [vmem:[#allocation10_spill] sm:$0xff]  ;;  %v10590_v56 = vrot.slane %v8755_v21, 1 }
 0x1f9   :  { %v2130_v46 = vsel %vm764_vm0, %v10579_v59, %v10577_v54  ;;  %v10581_v54 = vrot.slane %v10580_v37, 1  ;;  %v415_v37 = vld [vmem:[%s9796_s0 + $0xec8] sm:$0xff] }
 0x1fa   :  { %10576 = vst [vmem:[#allocation11_spill] sm:$0xff] %v8765_v26  ;;  %v8778_v61 = vadd.f32 %v2130_v46, %v588_v28  ;;  %v10582_v46 = vld [vmem:[#allocation13_spill] sm:$0xff]  ;;  %v10585_v28 = vld [vmem:[#allocation14_spill] sm:$0xff] }
 0x1fb   :  { %v896_v14 = vsel %vm764_vm0, %v10581_v54, %v10088_v22  ;;  %v10583_v18 = vrot.slane %v10582_v46, 2  ;;  %v8806_v54 = vld [vmem:[%s9796_s0 + $0xb70] sm:$0xff]  ;;  %v10584_v22 = vrot.slane %v8765_v26, 4  ;;  %v10586_v59 = vrot.slane %v10585_v28, 4 }
 0x1fc   :  { %v1070_v24 = vadd.f32 %v896_v14, %v73_v47  ;;  %v10589_v47 = vrot.slane %v10588_v58, 1  ;;  %v1724_v26 = vsel %vm764_vm0, %v10592_v38, %v10590_v56  ;;  %v8846_v56 = vld [vmem:[%s9796_s0 + $0x1020] sm:$0x7f] }
 0x1fd   :  { %v2527_v34 = vsel %vm2397_vm1, %v10583_v18, %v10089_v17  ;;  %v3342_v46 = vsel %vm3214_vm2, %v10586_v59, %v10584_v22  ;;  %v589_v18 = vld [vmem:[%s9796_s0 + $0x1138] sm:$0xff]  ;;  %v10587_v17 = vrot.slane %v8738_v19, 1  ;;  %v10593_v22 = vrot.slane %v8776_v43, 1 }
 0x1fe   :  { %v2702_v3 = vadd.f32 %v2527_v34, %v1069_v40  ;;  %v8829_v40 = vld [vmem:[%s9796_s0 + $0xde0] sm:$0x1f]  ;;  %v10594_v34 = vrot.slane %v8230_v62, 1  ;;  %v3518_v58 = vadd.f32 %v3342_v46, %v2701_v51  ;;  %v10596_v59 = vrot.slane %v8232_v30, 2  ;;  %v674_v62 = vld [vmem:[%s9796_s0 + $0x1290] sm:$0x1] }
 0x1ff   :  { %v1316_v14 = vsel %vm764_vm0, %v10589_v47, %v10587_v17  ;;  %v10595_v17 = vrot.slane %v8778_v61, 2  ;;  %v1892_v30 = vadd.f32 %v1724_v26, %v415_v37  ;;  %v10599_v51 = vrot.slane %v8760_v20, 1  ;;  %v416_v26 = vld [vmem:[%s9796_s0 + $0xed0] sm:$0xff] }
 0x200   :  { %v3820_v28 = vsel %vm764_vm0, %v10594_v34, %v10593_v22  ;;  %v8841_v47 = vadd.f32 %v1316_v14, %v247_v8  ;;  %v10600_v8 = vrot.slane %v8214_v52, 1  ;;  %v74_v14 = vld [vmem:[%s9796_s0 + $0xa20] sm:$0xff]  ;;  %v10094_v22 = vrot.slane %v8806_v54, 1  ;;  %v248_v52 = vld [vmem:[%s9796_s0 + $0xc90] sm:$0xff] }
 0x201   :  { %v2947_v50 = vsel %vm2397_vm1, %v10596_v59, %v10595_v17  ;;  %4003 = vst [vmem:[%s9797_s1 + $0x1c0] sm:$0xff] %v3820_v28  ;;  %v8865_v34 = vmul.f32 0.125, %v3518_v58  ;;  %v10601_v28 = vrot.slane %v8260_v11, 1  ;;  %v10099_v58 = vrot.slane %v8846_v56, 1 }
 0x202   :  { %10597 = vst [vmem:[#allocation7_spill] sm:$0xff] %v8841_v47  ;;  %v8854_v38 = vadd.f32 %v2947_v50, %v1891_v57  ;;  %v2132_v46 = vsel %vm764_vm0, %v10600_v8, %v10599_v51  ;;  %v10095_v57 = vrot.slane %v8841_v47, 2  ;;  %v10602_v51 = vrot.slane %v8295_v13, 2 }
 0x203   :  { %v8867_v17 = vadd.f32 %v2132_v46, %v589_v18  ;;  %v898_v59 = vsel %vm764_vm0, %v10601_v28, %v10094_v22  ;;  %v2133_v18 = vrot.slane %v674_v62, 1  ;;  %v8894_v28 = vld [vmem:[%s9796_s0 + $0xb78] sm:$0xff]  ;;  %v10603_v62 = vld [vmem:[#allocation6_spill] sm:$0xff]  ;;  %v10607_v46 = vld [vmem:[#allocation15_spill] sm:$0xff] }
 0x204   :  { %10598 = vst [vmem:[#allocation8_spill] sm:$0xff] %v8854_v38  ;;  %v10098_v37 = vrot.slane %v8854_v38, 4  ;;  %v2529_v8 = vsel %vm2397_vm1, %v10602_v51, %v10095_v57  ;;  %v1071_v11 = vadd.f32 %v898_v59, %v74_v14  ;;  %v10604_v22 = vrot.slane %v10603_v62, 4  ;;  %v590_v51 = vld [vmem:[%s9796_s0 + $0x1140] sm:$0xff] }
 0x205   :  { %v2703_v50 = vadd.f32 %v2529_v8, %v1070_v24  ;;  %v10605_v57 = vrot.slane %v8829_v40, 1  ;;  %v10606_v14 = vrot.slane %v8283_v53, 1  ;;  %v10608_v47 = vrot.slane %v10607_v46, 1  ;;  %v8917_v24 = vld [vmem:[%s9796_s0 + $0xde8] sm:$0x1f] }
 0x206   :  { %v3344_v13 = vsel %vm3214_vm2, %v10604_v22, %v10098_v37  ;;  %v10609_v22 = vrot.slane %v8865_v34, 1  ;;  %v10610_v8 = vrot.slane %v8321_v29, 1  ;;  %v675_v29 = vld [vmem:[%s9796_s0 + $0x1298] sm:$0x1] }
 0x207   :  { %v1318_v59 = vsel %vm764_vm0, %v10606_v14, %v10605_v57  ;;  %v1726_v38 = vsel %vm764_vm0, %v10608_v47, %v10099_v58  ;;  %v3519_v53 = vadd.f32 %v3344_v13, %v2702_v3  ;;  %v10611_v57 = vrot.slane %v8867_v17, 2  ;;  %v8934_v47 = vld [vmem:[%s9796_s0 + $0x1028] sm:$0x7f]  ;;  %v417_v58 = vld [vmem:[%s9796_s0 + $0xed8] sm:$0xff] }
 0x208   :  { %v3822_v62 = vsel %vm764_vm0, %v10610_v8, %v10609_v22  ;;  %v10612_v14 = vrot.slane %v8323_v31, 2  ;;  %v8929_v37 = vadd.f32 %v1318_v59, %v248_v52  ;;  %v1893_v31 = vadd.f32 %v1726_v38, %v416_v26  ;;  %v75_v59 = vld [vmem:[%s9796_s0 + $0xa28] sm:$0xff] }
 0x209   :  { %4004 = vst [vmem:[%s9797_s1 + $0x1c8] sm:$0xff] %v3822_v62  ;;  %v10613_v13 = vrot.slane %v8305_v60, 1  ;;  %v10100_v22 = vrot.slane %v8894_v28, 1  ;;  %v8951_v8 = vmul.f32 0.125, %v3519_v53  ;;  %v249_v60 = vld [vmem:[%s9796_s0 + $0xc98] sm:$0xff]  ;;  %v10614_v26 = vrot.slane %v8351_v36, 1 }
 0x20a   :  { %v2949_v46 = vsel %vm2397_vm1, %v10612_v14, %v10611_v57  ;;  %v10101_v14 = vrot.slane %v8929_v37, 2  ;;  %v10104_v62 = vrot.slane %v8934_v47, 1 }
 0x20b   :  { %v8942_v3 = vadd.f32 %v2949_v46, %v1892_v30  ;;  %v2134_v52 = vsel %vm764_vm0, %v10613_v13, %v2133_v18  ;;  %v10107_v30 = vrot.slane %v8917_v24, 1  ;;  %v900_v18 = vsel %vm764_vm0, %v10614_v26, %v10100_v22  ;;  %v8980_v26 = vld [vmem:[%s9796_s0 + $0xb80] sm:$0xff] }
 0x20c   :  { %v8953_v57 = vadd.f32 %v2134_v52, %v590_v51  ;;  %v2135_v51 = vrot.slane %v675_v29, 1  ;;  %v10103_v53 = vrot.slane %v8951_v8, 1  ;;  %v10615_v46 = vrot.slane %v8386_v35, 2 }
 0x20d   :  { %v10102_v38 = vrot.slane %v8942_v3, 4  ;;  %v1072_v36 = vadd.f32 %v900_v18, %v75_v59  ;;  %v10616_v29 = vrot.slane %v8401_v2, 4  ;;  %v10617_v59 = vrot.slane %v8374_v27, 1  ;;  %v9003_v2 = vld [vmem:[%s9796_s0 + $0xdf0] sm:$0x1f] }
 0x20e   :  { %v2531_v13 = vsel %vm2397_vm1, %v10615_v46, %v10101_v14  ;;  %v591_v46 = vld [vmem:[%s9796_s0 + $0x1148] sm:$0xff]  ;;  %v10618_v14 = vrot.slane %v8391_v5, 1 }
 0x20f   :  { %v3346_v35 = vsel %vm3214_vm2, %v10616_v29, %v10102_v38  ;;  %v2704_v22 = vadd.f32 %v2531_v13, %v1071_v11  ;;  %v1320_v18 = vsel %vm764_vm0, %v10617_v59, %v10107_v30  ;;  %v10619_v11 = vrot.slane %v8412_v55, 1  ;;  %v676_v55 = vld [vmem:[%s9796_s0 + $0x12a0] sm:$0x1] }
 0x210   :  { %v1728_v52 = vsel %vm764_vm0, %v10618_v14, %v10104_v62  ;;  %v3520_v27 = vadd.f32 %v3346_v35, %v2703_v50  ;;  %v10620_v29 = vrot.slane %v8953_v57, 2  ;;  %v10621_v59 = vrot.slane %v8414_v12, 2  ;;  %v9020_v14 = vld [vmem:[%s9796_s0 + $0x1030] sm:$0x7f]  ;;  %v418_v62 = vld [vmem:[%s9796_s0 + $0xee0] sm:$0xff] }
 0x211   :  { %v3824_v13 = vsel %vm764_vm0, %v10619_v11, %v10103_v53  ;;  %v9015_v38 = vadd.f32 %v1320_v18, %v249_v60  ;;  %v1894_v12 = vadd.f32 %v1728_v52, %v417_v58  ;;  %v10622_v35 = vrot.slane %v8396_v41, 1  ;;  %v76_v18 = vld [vmem:[%s9796_s0 + $0xa30] sm:$0xff]  ;;  %v250_v41 = vld [vmem:[%s9796_s0 + $0xca0] sm:$0xff] }
 0x212   :  { %v2951_v5 = vsel %vm2397_vm1, %v10621_v59, %v10620_v29  ;;  %4005 = vst [vmem:[%s9797_s1 + $0x1d0] sm:$0xff] %v3824_v13  ;;  %v10105_v11 = vrot.slane %v8980_v26, 1  ;;  %v9037_v29 = vmul.f32 0.125, %v3520_v27  ;;  %v10109_v13 = vrot.slane %v9020_v14, 1 }
 0x213   :  { %v9028_v50 = vadd.f32 %v2951_v5, %v1893_v31  ;;  %v2136_v60 = vsel %vm764_vm0, %v10622_v35, %v2135_v51  ;;  %v10106_v53 = vrot.slane %v9015_v38, 2  ;;  %v10113_v31 = vrot.slane %v9003_v2, 1 }
 0x214   :  { %v9039_v59 = vadd.f32 %v2136_v60, %v591_v46  ;;  %v10623_v51 = vrot.slane %v8442_v25, 1  ;;  %v2137_v46 = vrot.slane %v676_v55, 1  ;;  %v10108_v27 = vrot.slane %v9037_v29, 1 }
 0x215   :  { %v10126_v58 = vrot.slane %v9028_v50, 4  ;;  %v10624_v5 = vrot.slane %v8477_v9, 2  ;;  %v10625_v55 = vrot.slane %v8492_v63, 4  ;;  %v9089_v63 = vld [vmem:[%s9796_s0 + $0xdf8] sm:$0x1f] }
 0x216   :  { %v902_v52 = vsel %vm764_vm0, %v10623_v51, %v10105_v11  ;;  %v10110_v60 = vrot.slane %v9039_v59, 2  ;;  %v9066_v51 = vld [vmem:[%s9796_s0 + $0xb88] sm:$0xff] }
 0x217   :  { %v2533_v35 = vsel %vm2397_vm1, %v10624_v5, %v10106_v53  ;;  %v1073_v25 = vadd.f32 %v902_v52, %v76_v18  ;;  %v3348_v9 = vsel %vm3214_vm2, %v10625_v55, %v10126_v58  ;;  %v592_v5 = vld [vmem:[%s9796_s0 + $0x1150] sm:$0xff]  ;;  %v10626_v18 = vrot.slane %v8465_v42, 1 }
 0x218   :  { %v2705_v11 = vadd.f32 %v2533_v35, %v1072_v36  ;;  %v10627_v53 = vrot.slane %v8482_v23, 1  ;;  %v10628_v36 = vrot.slane %v8503_v49, 1  ;;  %v3521_v42 = vadd.f32 %v3348_v9, %v2704_v22  ;;  %v677_v49 = vld [vmem:[%s9796_s0 + $0x12a8] sm:$0x1] }
 0x219   :  { %v1322_v52 = vsel %vm764_vm0, %v10626_v18, %v10113_v31  ;;  %v10629_v55 = vrot.slane %v8505_v44, 2  ;;  %v10630_v9 = vrot.slane %v8487_v33, 1  ;;  %v251_v33 = vld [vmem:[%s9796_s0 + $0xca8] sm:$0xff] }
 0x21a   :  { %v1730_v30 = vsel %vm764_vm0, %v10627_v53, %v10109_v13  ;;  %v3826_v35 = vsel %vm764_vm0, %v10628_v36, %v10108_v27  ;;  %v9101_v18 = vadd.f32 %v1322_v52, %v250_v41  ;;  %v9106_v53 = vld [vmem:[%s9796_s0 + $0x1038] sm:$0x7f]  ;;  %v10111_v36 = vrot.slane %v9066_v51, 1 }
 0x21b   :  { %v2953_v23 = vsel %vm2397_vm1, %v10629_v55, %v10110_v60  ;;  %4006 = vst [vmem:[%s9797_s1 + $0x1d8] sm:$0xff] %v3826_v35  ;;  %v1895_v44 = vadd.f32 %v1730_v30, %v418_v62  ;;  %v2138_v41 = vsel %vm764_vm0, %v10630_v9, %v2137_v46  ;;  %v77_v52 = vld [vmem:[%s9796_s0 + $0xa38] sm:$0xff]  ;;  %v9123_v55 = vmul.f32 0.125, %v3521_v42  ;;  %v419_v60 = vld [vmem:[%s9796_s0 + $0xee8] sm:$0xff] }
 0x21c   :  { %v9114_v22 = vadd.f32 %v2953_v23, %v1894_v12  ;;  %v9125_v27 = vadd.f32 %v2138_v41, %v592_v5  ;;  %v10112_v13 = vrot.slane %v9101_v18, 2  ;;  %v10116_v12 = vrot.slane %v9089_v63, 1 }
 0x21d   :  { %v10631_v62 = vrot.slane %v8533_v6, 1  ;;  %v10115_v35 = vrot.slane %v9106_v53, 1  ;;  %v2139_v5 = vrot.slane %v677_v49, 1  ;;  %v10114_v42 = vrot.slane %v9123_v55, 1 }
 0x21e   :  { %v10119_v30 = vrot.slane %v9114_v22, 4  ;;  %v10632_v23 = vrot.slane %v8568_v1, 2  ;;  %v10120_v41 = vrot.slane %v9125_v27, 2  ;;  %v10633_v49 = vrot.slane %v8583_v0, 4  ;;  %v9175_v0 = vld [vmem:[%s9796_s0 + $0xe00] sm:$0x1f] }
 0x21f   :  { %v904_v46 = vsel %vm764_vm0, %v10631_v62, %v10111_v36  ;;  %v9152_v62 = vld [vmem:[%s9796_s0 + $0xb90] sm:$0xff] }
 0x220   :  { %v2535_v9 = vsel %vm2397_vm1, %v10632_v23, %v10112_v13  ;;  %v1074_v6 = vadd.f32 %v904_v46, %v77_v52  ;;  %v3350_v1 = vsel %vm3214_vm2, %v10633_v49, %v10119_v30  ;;  %v593_v23 = vld [vmem:[%s9796_s0 + $0x1158] sm:$0xff]  ;;  %v10634_v52 = vrot.slane %v8556_v39, 1 }
 0x221   :  { %v2706_v36 = vadd.f32 %v2535_v9, %v1073_v25  ;;  %v10635_v13 = vrot.slane %v8573_v45, 1  ;;  %v10636_v25 = vrot.slane %v8594_v16, 1  ;;  %v3522_v39 = vadd.f32 %v3350_v1, %v2705_v11  ;;  %v678_v16 = vld [vmem:[%s9796_s0 + $0x12b0] sm:$0x1] }
 0x222   :  { %v1324_v46 = vsel %vm764_vm0, %v10634_v52, %v10116_v12  ;;  %v10637_v49 = vrot.slane %v8596_v7, 2  ;;  %v10638_v1 = vrot.slane %v8578_v15, 1  ;;  %v252_v15 = vld [vmem:[%s9796_s0 + $0xcb0] sm:$0xff] }
 0x223   :  { %v1732_v31 = vsel %vm764_vm0, %v10635_v13, %v10115_v35  ;;  %v3828_v9 = vsel %vm764_vm0, %v10636_v25, %v10114_v42  ;;  %v9187_v52 = vadd.f32 %v1324_v46, %v251_v33  ;;  %v9192_v13 = vld [vmem:[%s9796_s0 + $0x1040] sm:$0x7f]  ;;  %v10117_v25 = vrot.slane %v9152_v62, 1  ;;  %v420_v12 = vld [vmem:[%s9796_s0 + $0xef0] sm:$0xff] }
 0x224   :  { %v2955_v45 = vsel %vm2397_vm1, %v10637_v49, %v10120_v41  ;;  %4007 = vst [vmem:[%s9797_s1 + $0x1e0] sm:$0xff] %v3828_v9  ;;  %v1896_v7 = vadd.f32 %v1732_v31, %v419_v60  ;;  %v2140_v33 = vsel %vm764_vm0, %v10638_v1, %v2139_v5  ;;  %v78_v46 = vld [vmem:[%s9796_s0 + $0xa40] sm:$0xff]  ;;  %v9209_v49 = vmul.f32 0.125, %v3522_v39 }
 0x225   :  { %v9200_v11 = vadd.f32 %v2955_v45, %v1895_v44  ;;  %v9211_v42 = vadd.f32 %v2140_v33, %v593_v23  ;;  %v10118_v35 = vrot.slane %v9187_v52, 2  ;;  %v10121_v44 = vrot.slane %v9175_v0, 1 }
 0x226   :  { %v10639_v60 = vrot.slane %v8624_v32, 1  ;;  %v10124_v9 = vrot.slane %v9192_v13, 1  ;;  %v2141_v23 = vrot.slane %v678_v16, 1  ;;  %v10123_v39 = vrot.slane %v9209_v49, 1 }
 0x227   :  { %v10122_v31 = vrot.slane %v9200_v11, 4  ;;  %v10640_v45 = vrot.slane %v8659_v10, 2  ;;  %v10125_v33 = vrot.slane %v9211_v42, 2  ;;  %v10642_v16 = vrot.slane %v8674_v48, 4  ;;  %v9261_v48 = vld [vmem:[%s9796_s0 + $0xe08] sm:$0x1f] }
 0x228   :  { %v906_v5 = vsel %vm764_vm0, %v10639_v60, %v10117_v25  ;;  %v9238_v60 = vld [vmem:[%s9796_s0 + $0xb98] sm:$0xff] }
 0x229   :  { %v2537_v1 = vsel %vm2397_vm1, %v10640_v45, %v10118_v35  ;;  %v1075_v32 = vadd.f32 %v906_v5, %v78_v46  ;;  %10641 = vst [vmem:[#allocation2_spill] sm:$0xff] %v9238_v60  ;;  %v3352_v10 = vsel %vm3214_vm2, %v10642_v16, %v10122_v31  ;;  %v594_v45 = vld [vmem:[%s9796_s0 + $0x1160] sm:$0xff]  ;;  %v10643_v46 = vrot.slane %v8647_v4, 1  ;;  %v10644_v35 = vld [vmem:[#allocation17_spill] sm:$0xff] }
 0x22a   :  { %v2707_v25 = vadd.f32 %v2537_v1, %v1074_v6  ;;  %v10645_v30 = vrot.slane %v10644_v35, 1  ;;  %v10646_v6 = vld [vmem:[#allocation9_spill] sm:$0xff]  ;;  %v3523_v4 = vadd.f32 %v3352_v10, %v2706_v36 }
 0x22b   :  { %v1326_v5 = vsel %vm764_vm0, %v10643_v46, %v10121_v44  ;;  %v10647_v1 = vrot.slane %v10646_v6, 1  ;;  %v10648_v46 = vld [vmem:[#allocation3_spill] sm:$0xff]  ;;  %v679_v6 = vld [vmem:[%s9796_s0 + $0x12b8] sm:$0x1] }
 0x22c   :  { %v1734_v41 = vsel %vm764_vm0, %v10645_v30, %v10124_v9  ;;  %v10649_v44 = vrot.slane %v10648_v46, 2  ;;  %v9273_v31 = vadd.f32 %v1326_v5, %v252_v15  ;;  %v9278_v30 = vld [vmem:[%s9796_s0 + $0x1048] sm:$0x7f]  ;;  %v10127_v46 = vrot.slane %v9238_v60, 1 }
 0x22d   :  { %v3830_v16 = vsel %vm764_vm0, %v10647_v1, %v10123_v39  ;;  %v1897_v10 = vadd.f32 %v1734_v41, %v420_v12  ;;  %v10651_v1 = vld [vmem:[#allocation18_spill] sm:$0xff]  ;;  %v79_v5 = vld [vmem:[%s9796_s0 + $0xa48] sm:$0xff]  ;;  %v9295_v39 = vmul.f32 0.125, %v3523_v4  ;;  %v253_v41 = vld [vmem:[%s9796_s0 + $0xcb8] sm:$0xff] }
 0x22e   :  { %v2957_v35 = vsel %vm2397_vm1, %v10649_v44, %v10125_v33  ;;  %10650 = vst [vmem:[#allocation10_spill] sm:$0xff] %v9273_v31  ;;  %4008 = vst [vmem:[%s9797_s1 + $0x1e8] sm:$0xff] %v3830_v16  ;;  %v10652_v44 = vrot.slane %v10651_v1, 1  ;;  %v10128_v33 = vrot.slane %v9273_v31, 2  ;;  %v421_v12 = vld [vmem:[%s9796_s0 + $0xef8] sm:$0xff]  ;;  %v10663_v31 = vrot.slane %v8755_v21, 1 }
 0x22f   :  { %v9286_v36 = vadd.f32 %v2957_v35, %v1896_v7  ;;  %v10662_v7 = vrot.slane %v9278_v30, 1 }
 0x230   :  { %v2142_v15 = vsel %vm764_vm0, %v10652_v44, %v2141_v23  ;;  %v10653_v23 = vld [vmem:[#allocation16_spill] sm:$0xff] }
 0x231   :  { %v9297_v9 = vadd.f32 %v2142_v15, %v594_v45  ;;  %v10654_v16 = vrot.slane %v10653_v23, 1  ;;  %v2143_v45 = vrot.slane %v679_v6, 1  ;;  %v10655_v44 = vld [vmem:[#allocation4_spill] sm:$0xff]  ;;  %v10657_v6 = vrot.slane %v9286_v36, 4 }
 0x232   :  { %v10656_v15 = vrot.slane %v10655_v44, 2  ;;  %v1736_v60 = vsel %vm764_vm0, %v10663_v31, %v10662_v7  ;;  %v422_v31 = vld [vmem:[%s9796_s0 + $0xf00] sm:$0x3f]  ;;  %v9365_v7 = vld [vmem:[%s9796_s0 + $0xba8] sm:$0x7] }
 0x233   :  { %v908_v35 = vsel %vm764_vm0, %v10654_v16, %v10127_v46  ;;  %v9324_v16 = vld [vmem:[%s9796_s0 + $0xba0] sm:$0x7]  ;;  %v10658_v46 = vld [vmem:[#allocation11_spill] sm:$0xff] }
 0x234   :  { %v2539_v58 = vsel %vm2397_vm1, %v10656_v15, %v10128_v33  ;;  %v1076_v23 = vadd.f32 %v908_v35, %v79_v5  ;;  %v10659_v1 = vrot.slane %v10658_v46, 4  ;;  %v595_v15 = vld [vmem:[%s9796_s0 + $0x1168] sm:$0xff]  ;;  %v10660_v33 = vrot.slane %v9261_v48, 1 }
 0x235   :  { %v2708_v4 = vadd.f32 %v2539_v58, %v1075_v32  ;;  %v10661_v5 = vrot.slane %v8738_v19, 1  ;;  %v254_v58 = vld [vmem:[%s9796_s0 + $0xcc0] sm:$0xf]  ;;  %v10664_v32 = vrot.slane %v9295_v39, 1  ;;  %v10665_v46 = vrot.slane %v8776_v43, 1 }
 0x236   :  { %v3354_v44 = vsel %vm3214_vm2, %v10659_v1, %v10657_v6  ;;  %v10666_v19 = vrot.slane %v9297_v9, 2 }
 0x237   :  { %v1328_v35 = vsel %vm764_vm0, %v10661_v5, %v10660_v33  ;;  %v3832_v1 = vsel %vm764_vm0, %v10665_v46, %v10664_v32  ;;  %v3524_v6 = vadd.f32 %v3354_v44, %v2707_v25  ;;  %v10667_v33 = vrot.slane %v8778_v61, 2  ;;  %v80_v44 = vld [vmem:[%s9796_s0 + $0xa50] sm:$0xff] }
 0x238   :  { %v9357_v21 = vadd.f32 %v1328_v35, %v253_v41  ;;  %4009 = vst [vmem:[%s9797_s1 + $0x1f0] sm:$0xff] %v3832_v1  ;;  %v1898_v61 = vadd.f32 %v1736_v60, %v421_v12  ;;  %v10668_v25 = vrot.slane %v8760_v20, 1  ;;  %v10131_v35 = vrot.slane %v9324_v16, 1 }
 0x239   :  { %v2959_v5 = vsel %vm2397_vm1, %v10667_v33, %v10666_v19  ;;  %v9379_v32 = vmul.f32 0.125, %v3524_v6  ;;  %v10670_v60 = vrot.slane %v8806_v54, 1  ;;  %v81_v54 = vld [vmem:[%s9796_s0 + $0xa58] sm:$0xff] }
 0x23a   :  { %v9370_v43 = vadd.f32 %v2959_v5, %v1897_v10  ;;  %v2144_v41 = vsel %vm764_vm0, %v10668_v25, %v2143_v45  ;;  %v2540_v19 = vrot.slane %v9357_v21, 2  ;;  %v10669_v10 = vrot.slane %v8829_v40, 1  ;;  %v10672_v40 = vld [vmem:[#allocation7_spill] sm:$0xff] }
 0x23b   :  { %v9381_v46 = vadd.f32 %v2144_v41, %v595_v15  ;;  %v910_v12 = vsel %vm764_vm0, %v10670_v60, %v10131_v35  ;;  %v10671_v45 = vrot.slane %v8846_v56, 1  ;;  %v911_v15 = vrot.slane %v9365_v7, 1  ;;  %v10674_v56 = vld [vmem:[#allocation8_spill] sm:$0xff] }
 0x23c   :  { %v9386_v1 = vadd.f32 %v10669_v10, %v254_v58  ;;  %v10133_v20 = vrot.slane %v9370_v43, 4  ;;  %v10132_v33 = vrot.slane %v9379_v32, 1  ;;  %v10673_v58 = vrot.slane %v10672_v40, 2 }
 0x23d   :  { %v1899_v6 = vadd.f32 %v10671_v45, %v422_v31  ;;  %v2960_v25 = vrot.slane %v9381_v46, 2  ;;  %v1077_v41 = vadd.f32 %v910_v12, %v80_v44  ;;  %v10675_v31 = vrot.slane %v10674_v56, 4  ;;  %v255_v44 = vld [vmem:[%s9796_s0 + $0xcc8] sm:$0xf]  ;;  %v89_v46 = vld [vmem:[%s9796_s0 + $0xa98] sm:$0x3] }
 0x23e   :  { %v2541_v5 = vsel %vm2397_vm1, %v10673_v58, %v2540_v19  ;;  %v2542_v45 = vrot.slane %v9386_v1, 2  ;;  %v10676_v40 = vrot.slane %v8953_v57, 2  ;;  %v423_v12 = vld [vmem:[%s9796_s0 + $0xf08] sm:$0x3f]  ;;  %v10677_v58 = vrot.slane %v8865_v34, 1 }
 0x23f   :  { %v3356_v10 = vsel %vm3214_vm2, %v10675_v31, %v10133_v20  ;;  %v2709_v60 = vadd.f32 %v2541_v5, %v1076_v23  ;;  %v10678_v57 = vrot.slane %v8867_v17, 2  ;;  %v10679_v56 = vrot.slane %v8894_v28, 1  ;;  %v256_v34 = vld [vmem:[%s9796_s0 + $0xcd0] sm:$0xf] }
 0x240   :  { %v9415_v35 = vadd.f32 %v10676_v40, %v1899_v6  ;;  %v3834_v23 = vsel %vm764_vm0, %v10677_v58, %v10132_v33  ;;  %v3525_v5 = vadd.f32 %v3356_v10, %v2708_v4  ;;  %v9441_v40 = vld [vmem:[%s9796_s0 + $0xbb0] sm:$0x7]  ;;  %v10680_v28 = vrot.slane %v8929_v37, 2 }
 0x241   :  { %v2961_v6 = vsel %vm2397_vm1, %v10678_v57, %v2960_v25  ;;  %v912_v31 = vsel %vm764_vm0, %v10679_v56, %v911_v15  ;;  %4010 = vst [vmem:[%s9797_s1 + $0x1f8] sm:$0xff] %v3834_v23  ;;  %v10681_v33 = vrot.slane %v8917_v24, 1  ;;  %v10682_v23 = vrot.slane %v8934_v47, 1 }
 0x242   :  { %v9449_v17 = vadd.f32 %v2961_v6, %v1898_v61  ;;  %v2543_v4 = vsel %vm2397_vm1, %v10680_v28, %v2542_v45  ;;  %v3359_v10 = vrot.slane %v9415_v35, 4  ;;  %v1078_v58 = vadd.f32 %v912_v31, %v81_v54  ;;  %v424_v6 = vld [vmem:[%s9796_s0 + $0xf10] sm:$0x3f] }
 0x243   :  { %v9457_v57 = vmul.f32 0.125, %v3525_v5  ;;  %v2710_v56 = vadd.f32 %v2543_v4, %v1077_v41  ;;  %v9461_v20 = vadd.f32 %v10681_v33, %v255_v44  ;;  %v1900_v61 = vadd.f32 %v10682_v23, %v423_v12 }
 0x244   :  { %v3357_v37 = vrot.slane %v9449_v17, 4  ;;  %v10683_v54 = vrot.slane %v9028_v50, 4  ;;  %v913_v41 = vrot.slane %v9441_v40, 1  ;;  %v10684_v24 = vrot.slane %v9003_v2, 1  ;;  %v82_v50 = vld [vmem:[%s9796_s0 + $0xa60] sm:$0xff] }
 0x245   :  { %v10136_v47 = vrot.slane %v9457_v57, 1  ;;  %v2544_v12 = vrot.slane %v9461_v20, 2  ;;  %v10685_v31 = vrot.slane %v9039_v59, 2  ;;  %v10686_v4 = vrot.slane %v8942_v3, 4 }
 0x246   :  { %v3360_v5 = vsel %vm3214_vm2, %v10683_v54, %v3359_v10  ;;  %v9477_v33 = vadd.f32 %v10684_v24, %v256_v34  ;;  %v10687_v34 = vrot.slane %v8980_v26, 1  ;;  %v10688_v59 = vrot.slane %v9020_v14, 1  ;;  %v9504_v54 = vld [vmem:[%s9796_s0 + $0xbb8] sm:$0x7] }
 0x247   :  { %v3527_v44 = vadd.f32 %v3360_v5, %v2710_v56  ;;  %v9483_v28 = vadd.f32 %v10685_v31, %v1900_v61  ;;  %v3358_v2 = vsel %vm3214_vm2, %v10686_v4, %v3357_v37  ;;  %v10689_v3 = vrot.slane %v8951_v8, 1  ;;  %v257_v31 = vld [vmem:[%s9796_s0 + $0xcd8] sm:$0xf] }
 0x248   :  { %v914_v56 = vsel %vm764_vm0, %v10687_v34, %v913_v41  ;;  %v1901_v23 = vadd.f32 %v10688_v59, %v424_v6  ;;  %v2546_v61 = vrot.slane %v9477_v33, 2  ;;  %v3526_v24 = vadd.f32 %v3358_v2, %v2709_v60  ;;  %v425_v4 = vld [vmem:[%s9796_s0 + $0xf18] sm:$0x3f] }
 0x249   :  { %v3836_v5 = vsel %vm764_vm0, %v10689_v3, %v10136_v47  ;;  %v9511_v26 = vmul.f32 0.125, %v3527_v44  ;;  %v10690_v14 = vrot.slane %v9015_v38, 2  ;;  %v3361_v60 = vrot.slane %v9483_v28, 4 }
 0x24a   :  { %4011 = vst [vmem:[%s9797_s1 + $0x200] sm:$0xff] %v3836_v5  ;;  %v1079_v44 = vadd.f32 %v914_v56, %v82_v50  ;;  %v10691_v38 = vrot.slane %v9101_v18, 2  ;;  %v9533_v34 = vmul.f32 0.125, %v3526_v24  ;;  %v10692_v3 = vrot.slane %v9125_v27, 2  ;;  %v83_v27 = vld [vmem:[%s9796_s0 + $0xa68] sm:$0xff] }
 0x24b   :  { %v2545_v6 = vsel %vm2397_vm1, %v10690_v14, %v2544_v12  ;;  %v10134_v59 = vrot.slane %v9511_v26, 1  ;;  %v915_v5 = vrot.slane %v9504_v54, 1  ;;  %v10693_v18 = vrot.slane %v9114_v22, 4 }
 0x24c   :  { %v2711_v8 = vadd.f32 %v2545_v6, %v1078_v58  ;;  %v2547_v2 = vsel %vm2397_vm1, %v10691_v38, %v2546_v61  ;;  %v9538_v14 = vadd.f32 %v10692_v3, %v1901_v23  ;;  %v9544_v58 = vld [vmem:[%s9796_s0 + $0xbc0] sm:$0x7]  ;;  %v10694_v23 = vrot.slane %v9089_v63, 1 }
 0x24d   :  { %v3362_v50 = vsel %vm3214_vm2, %v10693_v18, %v3361_v60  ;;  %v2712_v56 = vadd.f32 %v2547_v2, %v1079_v44  ;;  %v10695_v6 = vrot.slane %v9106_v53, 1  ;;  %v10135_v3 = vrot.slane %v9533_v34, 1 }
 0x24e   :  { %v9556_v24 = vadd.f32 %v10694_v23, %v257_v31  ;;  %v10696_v22 = vrot.slane %v9123_v55, 1  ;;  %v3528_v44 = vadd.f32 %v3362_v50, %v2711_v8  ;;  %v3363_v2 = vrot.slane %v9538_v14, 4  ;;  %v84_v8 = vld [vmem:[%s9796_s0 + $0xa70] sm:$0xff]  ;;  %v258_v50 = vld [vmem:[%s9796_s0 + $0xce0] sm:$0xf] }
 0x24f   :  { %v1902_v38 = vadd.f32 %v10695_v6, %v425_v4  ;;  %v10697_v63 = vrot.slane %v9066_v51, 1  ;;  %v10698_v4 = vrot.slane %v9211_v42, 2  ;;  %v917_v23 = vrot.slane %v9544_v58, 1 }
 0x250   :  { %v3840_v18 = vsel %vm764_vm0, %v10696_v22, %v10134_v59  ;;  %v10137_v31 = vrot.slane %v9556_v24, 2  ;;  %v10699_v51 = vrot.slane %v9037_v29, 1  ;;  %v9592_v22 = vmul.f32 0.125, %v3528_v44 }
 0x251   :  { %4013 = vst [vmem:[%s9797_s1 + $0x210] sm:$0xff] %v3840_v18  ;;  %v916_v53 = vsel %vm764_vm0, %v10697_v63, %v915_v5  ;;  %v9578_v55 = vadd.f32 %v10698_v4, %v1902_v38  ;;  %v10700_v42 = vrot.slane %v9200_v11, 4  ;;  %v426_v63 = vld [vmem:[%s9796_s0 + $0xf20] sm:$0x3f]  ;;  %v9605_v4 = vld [vmem:[%s9796_s0 + $0xbc8] sm:$0x7]  ;;  %v1086_v1 = vadd.f32 %v915_v5, %v89_v46 }
 0x252   :  { %v3838_v6 = vsel %vm764_vm0, %v10699_v51, %v10135_v3  ;;  %v1080_v18 = vadd.f32 %v916_v53, %v83_v27  ;;  %v10701_v11 = vrot.slane %v9187_v52, 2  ;;  %v10702_v53 = vrot.slane %v9152_v62, 1 }
 0x253   :  { %v3364_v38 = vsel %vm3214_vm2, %v10700_v42, %v3363_v2  ;;  %4012 = vst [vmem:[%s9797_s1 + $0x208] sm:$0xff] %v3838_v6  ;;  %v3365_v44 = vrot.slane %v9578_v55, 4  ;;  %v259_v42 = vld [vmem:[%s9796_s0 + $0xce8] sm:$0xf]  ;;  %v10703_v52 = vrot.slane %v9175_v0, 1  ;;  %v10704_v62 = vrot.slane %v9286_v36, 4 }
 0x254   :  { %v3529_v29 = vadd.f32 %v3364_v38, %v2712_v56  ;;  %v2549_v27 = vsel %vm2397_vm1, %v10701_v11, %v10137_v31  ;;  %v918_v51 = vsel %vm764_vm0, %v10702_v53, %v917_v23  ;;  %v3841_v56 = vrot.slane %v9592_v22, 1  ;;  %v427_v11 = vld [vmem:[%s9796_s0 + $0xf28] sm:$0x3f]  ;;  %v85_v0 = vld [vmem:[%s9796_s0 + $0xa78] sm:$0xff] }
 0x255   :  { %v2713_v6 = vadd.f32 %v2549_v27, %v1080_v18  ;;  %v1081_v38 = vadd.f32 %v918_v51, %v84_v8  ;;  %v1495_v59 = vadd.f32 %v10703_v52, %v258_v50  ;;  %v3366_v53 = vsel %vm3214_vm2, %v10704_v62, %v3365_v44 }
 0x256   :  { %v9630_v3 = vmul.f32 0.125, %v3529_v29  ;;  %v10705_v47 = vrot.slane %v9192_v13, 1  ;;  %v919_v8 = vrot.slane %v9605_v4, 1  ;;  %v10706_v50 = vrot.slane %v9209_v49, 1  ;;  %v10709_v4 = vld [vmem:[#allocation2_spill] sm:$0xff] }
 0x257   :  { %v3530_v29 = vadd.f32 %v3366_v53, %v2713_v6  ;;  %v2550_v27 = vrot.slane %v1495_v59, 2  ;;  %v10707_v36 = vrot.slane %v9261_v48, 1  ;;  %v10710_v52 = vrot.slane %v10709_v4, 1  ;;  %v86_v48 = vld [vmem:[%s9796_s0 + $0xa80] sm:$0x3] }
 0x258   :  { %v1903_v31 = vadd.f32 %v10705_v47, %v426_v63  ;;  %v3842_v18 = vsel %vm764_vm0, %v10706_v50, %v3841_v56  ;;  %v3843_v13 = vrot.slane %v9630_v3, 1  ;;  %v10708_v47 = vrot.slane %v9297_v9, 2  ;;  %v87_v59 = vld [vmem:[%s9796_s0 + $0xa88] sm:$0x3]  ;;  %v10712_v53 = vld [vmem:[#allocation10_spill] sm:$0xff] }
 0x259   :  { %v1496_v51 = vadd.f32 %v10707_v36, %v259_v42  ;;  %4014 = vst [vmem:[%s9797_s1 + $0x218] sm:$0xff] %v3842_v18  ;;  %v920_v49 = vsel %vm764_vm0, %v10710_v52, %v919_v8  ;;  %v10711_v62 = vrot.slane %v9278_v30, 1  ;;  %v9667_v42 = vmul.f32 0.125, %v3530_v29  ;;  %v88_v30 = vld [vmem:[%s9796_s0 + $0xa90] sm:$0x3] }
 0x25a   :  { %v3128_v63 = vadd.f32 %v10708_v47, %v1903_v31  ;;  %v10713_v9 = vrot.slane %v10712_v53, 2  ;;  %v1082_v50 = vadd.f32 %v920_v49, %v85_v0  ;;  %v10715_v52 = vrot.slane %v9324_v16, 1 }
 0x25b   :  { %v1904_v6 = vadd.f32 %v10711_v62, %v427_v11  ;;  %v2552_v18 = vrot.slane %v1496_v51, 2  ;;  %v10714_v11 = vrot.slane %v9295_v39, 1  ;;  %v3845_v0 = vrot.slane %v9667_v42, 1 }
 0x25c   :  { %v2551_v31 = vsel %vm2397_vm1, %v10713_v9, %v2550_v27  ;;  %v3367_v4 = vrot.slane %v3128_v63, 4  ;;  %v1083_v39 = vadd.f32 %v10715_v52, %v86_v48  ;;  %v10716_v63 = vrot.slane %v9370_v43, 4  ;;  %v91_v43 = vld [vmem:[%s9796_s0 + $0xaa8] sm:$0x3] }
 0x25d   :  { %v3844_v36 = vsel %vm764_vm0, %v10714_v11, %v3843_v13  ;;  %v2714_v47 = vadd.f32 %v2551_v31, %v1081_v38  ;;  %v3129_v29 = vadd.f32 %v2960_v25, %v1904_v6  ;;  %v2553_v51 = vsel %vm2397_vm1, %v2540_v19, %v2552_v18  ;;  %v90_v25 = vld [vmem:[%s9796_s0 + $0xaa0] sm:$0x3] }
 0x25e   :  { %4015 = vst [vmem:[%s9797_s1 + $0x220] sm:$0xff] %v3844_v36  ;;  %v1084_v38 = vadd.f32 %v911_v15, %v87_v59  ;;  %v3368_v21 = vsel %vm3214_vm2, %v10716_v63, %v3367_v4  ;;  %v2715_v49 = vadd.f32 %v2553_v51, %v1082_v50  ;;  %v1085_v16 = vadd.f32 %v913_v41, %v88_v30 }
 0x25f   :  { %v3369_v19 = vrot.slane %v3129_v29, 4  ;;  %v10717_v7 = vrot.slane %v9379_v32, 1  ;;  %v3531_v62 = vadd.f32 %v3368_v21, %v2714_v47  ;;  %v2716_v6 = vadd.f32 %v2542_v45, %v1083_v39 }
 0x260   :  { %v2717_v48 = vadd.f32 %v2544_v12, %v1084_v38  ;;  %v2718_v40 = vadd.f32 %v2546_v61, %v1085_v16  ;;  %v1087_v20 = vadd.f32 %v917_v23, %v90_v25  ;;  %v1088_v54 = vadd.f32 %v919_v8, %v91_v43 }
 0x261   :  { %v3846_v15 = vsel %vm764_vm0, %v10717_v7, %v3845_v0  ;;  %v3370_v32 = vsel %vm3214_vm2, %v3357_v37, %v3369_v19  ;;  %v3615_v45 = vmul.f32 0.125, %v3531_v62  ;;  %v3533_v12 = vadd.f32 %v3359_v10, %v2716_v6 }
 0x262   :  { %4016 = vst [vmem:[%s9797_s1 + $0x228] sm:$0xff] %v3846_v15  ;;  %v3532_v41 = vadd.f32 %v3370_v32, %v2715_v49  ;;  %v3534_v59 = vadd.f32 %v3361_v60, %v2717_v48  ;;  %v3535_v17 = vadd.f32 %v3363_v2, %v2718_v40  ;;  %v10718_v37 = vrot.slane %v9556_v24, 2 }
 0x263   :  { %v2720_v61 = vadd.f32 %v2550_v27, %v1087_v20  ;;  %v3847_v5 = vrot.slane %v3615_v45, 1  ;;  %v3617_v58 = vmul.f32 0.125, %v3533_v12  ;;  %v2721_v9 = vadd.f32 %v2552_v18, %v1088_v54 }
 0x264   :  { %v2719_v33 = vadd.f32 %v10718_v37, %v1086_v1  ;;  %v3616_v42 = vmul.f32 0.125, %v3532_v41  ;;  %v3618_v23 = vmul.f32 0.125, %v3534_v59  ;;  %v3619_v53 = vmul.f32 0.125, %v3535_v17 }
 0x265   :  { %v3537_v10 = vadd.f32 %v3367_v4, %v2720_v61  ;;  %v10719_v28 = vrot.slane %v9457_v57, 1  ;;  %v3851_v2 = vrot.slane %v3617_v58, 1  ;;  %v3538_v50 = vadd.f32 %v3369_v19, %v2721_v9 }
 0x266   :  { %v3536_v35 = vadd.f32 %v3365_v44, %v2719_v33  ;;  %v3849_v14 = vrot.slane %v3616_v42, 1  ;;  %v3853_v24 = vrot.slane %v3618_v23, 1  ;;  %v3855_v8 = vrot.slane %v3619_v53, 1 }
 0x267   :  { %v3848_v60 = vsel %vm764_vm0, %v10719_v28, %v3847_v5  ;;  %v3621_v31 = vmul.f32 0.125, %v3537_v10  ;;  %v10720_v55 = vrot.slane %v9533_v34, 1  ;;  %v10721_v18 = vrot.slane %v9511_v26, 1  ;;  %4025 = vst [vmem:[%s9797_s1 + $0x270] sm:$0x1] %v3851_v2 }
 0x268   :  { %4017 = vst [vmem:[%s9797_s1 + $0x230] sm:$0xff] %v3848_v60  ;;  %v3620_v27 = vmul.f32 0.125, %v3536_v35  ;;  %v3854_v30 = vsel %vm764_vm0, %v3841_v56, %v3853_v24  ;;  %4026 = vst [vmem:[%s9797_s1 + $0x278] sm:$0x1] %v3853_v24  ;;  %v3856_v26 = vsel %vm764_vm0, %v3843_v13, %v3855_v8  ;;  %v3622_v56 = vmul.f32 0.125, %v3538_v50 }
 0x269   :  { %v3850_v44 = vsel %vm764_vm0, %v10720_v55, %v3849_v14  ;;  %v3852_v57 = vsel %vm764_vm0, %v10721_v18, %v3851_v2  ;;  %4020 = vst [vmem:[%s9797_s1 + $0x248] sm:$0xff] %v3854_v30  ;;  %4027 = vst [vmem:[%s9797_s1 + $0x280] sm:$0x1] %v3855_v8  ;;  %v3859_v22 = vrot.slane %v3621_v31, 1 }
 0x26a   :  { %4018 = vst [vmem:[%s9797_s1 + $0x238] sm:$0xff] %v3850_v44  ;;  %4019 = vst [vmem:[%s9797_s1 + $0x240] sm:$0xff] %v3852_v57  ;;  %v3857_v34 = vrot.slane %v3620_v27, 1  ;;  %v3861_v13 = vrot.slane %v3622_v56, 1 }
 0x26b   :  { %4021 = vst [vmem:[%s9797_s1 + $0x250] sm:$0xff] %v3856_v26  ;;  %v3860_v3 = vsel %vm764_vm0, %v3847_v5, %v3859_v22  ;;  %4029 = vst [vmem:[%s9797_s1 + $0x290] sm:$0x1] %v3859_v22 }
 0x26c   :  { %v3858_v11 = vsel %vm764_vm0, %v3845_v0, %v3857_v34  ;;  %4028 = vst [vmem:[%s9797_s1 + $0x288] sm:$0x1] %v3857_v34  ;;  %4023 = vst [vmem:[%s9797_s1 + $0x260] sm:$0xff] %v3860_v3  ;;  %v3862_v36 = vsel %vm764_vm0, %v3849_v14, %v3861_v13 }
 0x26d   :  { %4022 = vst [vmem:[%s9797_s1 + $0x258] sm:$0xff] %v3858_v11  ;;  %4030 = vst [vmem:[%s9797_s1 + $0x298] sm:$0x1] %v3861_v13 }
 0x26e   :  { %4024 = vst [vmem:[%s9797_s1 + $0x268] sm:$0xff] %v3862_v36 }

</bundles_post_ra>
